<compile_context>
chip_gen: v7x
topology: tpu7x:2x2x1
jax: 0.10.0
libtpu: 0.0.40
codegen_flags: <defaults>
</compile_context>

<pallas_src>
import functools

import jax
import jax.numpy as jnp
from jax import lax
from jax.experimental import pallas as pl
from jax.experimental.pallas import tpu as pltpu

EPS = 1e-5
LANE = 128                        # channel dims padded to multiples of this (lane-dense)
MXU_DTYPE = jnp.bfloat16          # MXU operand dtype (accumulation stays f32)
BLOCK_ROWS_TARGET = 16            # TODO(synk): sweep per generation; also tile W for very wide layers


def _round_up(x, m):
    return (x + m - 1) // m * m


def _cdiv(a, b):
    return -(-a // b)


def _largest_divisor(n, target):
    best = 1
    for t in range(1, min(n, target) + 1):
        if n % t == 0:
            best = t
    return best


@functools.lru_cache(maxsize=1)
def _vmem_limit_bytes():
    cap = 64 * 1024 * 1024
    try:
        cap = int(pltpu.get_tpu_info().vmem_capacity_bytes)
    except Exception:
        pass
    # ~100 MiB on v5e/v6e (128 MiB physical), ~48 MiB on v7x (64 MiB physical).
    return max(32 * 1024 * 1024, min(cap - 16 * 1024 * 1024, 100 * 1024 * 1024))


def _compiler_params():
    return pltpu.CompilerParams(
        dimension_semantics=("parallel", "parallel"),
        vmem_limit_bytes=_vmem_limit_bytes(),
    )


# -----------------------------------------------------------------------------
# Kernel 1: (optional fused BN+ReLU of the previous stage) -> 3x3 conv (pad=1)
#           + per-band BatchNorm partial sums.
# -----------------------------------------------------------------------------
def _conv_stats_kernel(*refs, apply_act, h_real):
    if apply_act:
        xm_ref, xt_ref, xb_ref, w_ref, scale_ref, shift_ref, y_ref, s_ref = refs
    else:
        xm_ref, xt_ref, xb_ref, w_ref, y_ref, s_ref = refs
        scale_ref = shift_ref = None

    _, TH, W, C = xm_ref.shape
    cout = y_ref.shape[-1]
    f32 = jnp.float32

    row0 = pl.program_id(1) * TH               # global index of the band's first row

    def act(v):
        if not apply_act:
            return v
        a = jnp.maximum(v.astype(f32) * scale_ref[0] + shift_ref[0], 0.0)
        return a.astype(v.dtype)

    xm = act(xm_ref[0])                        # (TH, W, C) main rows
    xt = act(xt_ref[0])                        # (1, W, C)  row row0-1 (clamped)
    xb = act(xb_ref[0])                        # (1, W, C)  row row0+TH (clamped)

    # Zero rows that fall outside the real image: the top/bottom conv padding rows and
    # any rows past h_real in a partial last band (keeps BN stats + padding exact).
    rows = row0 + lax.broadcasted_iota(jnp.int32, (TH, 1, 1), 0)
    zero = jnp.zeros((), xm.dtype)
    xm = jnp.where(rows < h_real, xm, zero)
    xt = jnp.where(row0 > 0, xt, zero)
    xb = jnp.where(row0 + TH < h_real, xb, zero)

    def dx_group(g):
        # g: (R, W, C) -> (R*W, 3*C), dx-major channel packing; zero columns stand in
        # for the padding=1 left/right borders (no pre-padded HBM copy needed).
        r = g.shape[0]
        zcol = jnp.zeros((r, 1, C), g.dtype)
        left = jnp.concatenate([zcol, g[:, : W - 1, :]], axis=1)     # dx=0 tap (col w-1)
        right = jnp.concatenate([g[:, 1:, :], zcol], axis=1)         # dx=2 tap (col w+1)
        return jnp.concatenate([left, g, right], axis=-1).reshape(r * W, 3 * C)

    # Row groups per dy: output row o uses input rows row0+o-1 / row0+o / row0+o+1.
    if TH > 1:
        rows_dy0 = jnp.concatenate([xt, xm[: TH - 1]], axis=0)
        rows_dy2 = jnp.concatenate([xm[1:], xb], axis=0)
    else:
        rows_dy0, rows_dy2 = xt, xb

    # Three accumulating MXU dots with K = 3*C (instead of one 9*C im2col buffer).
    acc = jnp.dot(dx_group(rows_dy0), w_ref[0], preferred_element_type=f32)
    acc = acc + jnp.dot(dx_group(xm), w_ref[1], preferred_element_type=f32)
    acc = acc + jnp.dot(dx_group(rows_dy2), w_ref[2], preferred_element_type=f32)
    acc = acc.reshape(TH, W, cout)

    # Mask output rows past the real image (partial last band) so stats stay exact.
    acc = jnp.where(rows < h_real, acc, 0.0)

    y_ref[...] = acc.reshape(1, TH, W, cout).astype(y_ref.dtype)

    flat = acc.reshape(TH * W, cout)
    s_ref[...] = jnp.stack(
        [jnp.sum(flat, axis=0), jnp.sum(flat * flat, axis=0)], axis=0
    ).reshape(1, 1, 2, cout)


# -----------------------------------------------------------------------------
# Kernel 2: standalone folded BatchNorm (one FMA) + ReLU — final stage only.
# -----------------------------------------------------------------------------
def _bn_relu_kernel(y_ref, scale_ref, shift_ref, o_ref):
    y = y_ref[...].astype(jnp.float32)
    o_ref[...] = jnp.maximum(y * scale_ref[0] + shift_ref[0], 0.0).astype(o_ref.dtype)


# -----------------------------------------------------------------------------
# Wrappers
# -----------------------------------------------------------------------------
def _conv_stage(x_nhwc, w_hwio, in_scale, in_shift, *, h_real, th):
    """One Conv2d(3x3, pad=1, bias=False) stage over (N, Hpad, W, Cin_p) activations.

    Returns (pre-BN conv output (N, Hpad, W, Cout_p) bf16, per-band [sum, sumsq]).
    If in_scale / in_shift are given, the previous stage's BN+ReLU is fused in.
    """
    N, Hpad, W, cin_p = x_nhwc.shape
    kh, kw, cin, cout = w_hwio.shape
    assert (kh, kw) == (3, 3) and cin <= cin_p and Hpad % th == 0
    cout_p = _round_up(cout, LANE)
    GH = Hpad // th
    apply_act = in_scale is not None

    # (3, 3, cin, cout) -> (3 dy, 3*Cin_p, Cout_p): dx-major rows, zero-padded channels.
    w = jnp.pad(w_hwio, ((0, 0), (0, 0), (0, cin_p - cin), (0, cout_p - cout)))
    w_packed = w.reshape(3, 3 * cin_p, cout_p).astype(MXU_DTYPE)
    # TODO(synk): single-buffer the constant weight block (pipeline_mode=pl.Buffered(1))
    # to save one weight copy of VMEM on deep layers (matters most on v7x's 64 MiB).

    in_specs = [
        pl.BlockSpec((1, th, W, cin_p), lambda n, h: (n, h, 0, 0)),                                  # main rows
        pl.BlockSpec((1, 1, W, cin_p), lambda n, h: (n, jnp.maximum(h * th - 1, 0), 0, 0)),          # top halo
        pl.BlockSpec((1, 1, W, cin_p), lambda n, h: (n, jnp.minimum(h * th + th, Hpad - 1), 0, 0)),  # bottom halo
        pl.BlockSpec((3, 3 * cin_p, cout_p), lambda n, h: (0, 0, 0)),                                # packed weight
    ]
    args = [x_nhwc, x_nhwc, x_nhwc, w_packed]
    if apply_act:
        in_specs += [pl.BlockSpec((1, cin_p), lambda n, h: (0, 0)),
                     pl.BlockSpec((1, cin_p), lambda n, h: (0, 0))]
        args += [in_scale, in_shift]

    kernel = functools.partial(_conv_stats_kernel, apply_act=apply_act, h_real=h_real)
    y, stats = pl.pallas_call(
        kernel,
        grid=(N, GH),
        in_specs=in_specs,
        out_specs=[
            pl.BlockSpec((1, th, W, cout_p), lambda n, h: (n, h, 0, 0)),
            pl.BlockSpec((1, 1, 2, cout_p), lambda n, h: (n, h, 0, 0)),
        ],
        out_shape=[
            jax.ShapeDtypeStruct((N, Hpad, W, cout_p), MXU_DTYPE),
            jax.ShapeDtypeStruct((N, GH, 2, cout_p), jnp.float32),
        ],
        compiler_params=_compiler_params(),
    )(*args)
    return y, stats


def _fold_bn(stats, gamma, beta, count, cout_p):
    """Fold train-mode BatchNorm into per-channel (scale, shift) from per-band partials."""
    total = jnp.sum(stats[:, :, 0, :], axis=(0, 1))
    total_sq = jnp.sum(stats[:, :, 1, :], axis=(0, 1))
    mean = total / count
    # TODO(synk): E[x^2]-E[x]^2 in f32 can cancel for large-mean activations; use a
    # shifted / Welford-style merge of the per-band partials if that regime matters.
    var = jnp.maximum(total_sq / count - mean * mean, 0.0)
    inv = lax.rsqrt(var + EPS)
    # NOTE: padded channels MUST keep gamma = beta = 0 so they stay exactly zero downstream.
    g = jnp.pad(gamma.astype(jnp.float32), (0, cout_p - gamma.shape[0]))
    b = jnp.pad(beta.astype(jnp.float32), (0, cout_p - beta.shape[0]))
    scale = (g * inv).reshape(1, cout_p)
    shift = (b - mean * g * inv).reshape(1, cout_p)
    return scale, shift


def _bn_relu(y, scale, shift, out_dtype):
    N, Hpad, W, cout_p = y.shape
    th = _largest_divisor(Hpad, 64)      # purely memory bound -> big row bands
    GH = Hpad // th
    return pl.pallas_call(
        _bn_relu_kernel,
        grid=(N, GH),
        in_specs=[
            pl.BlockSpec((1, th, W, cout_p), lambda n, h: (n, h, 0, 0)),
            pl.BlockSpec((1, cout_p), lambda n, h: (0, 0)),
            pl.BlockSpec((1, cout_p), lambda n, h: (0, 0)),
        ],
        out_specs=pl.BlockSpec((1, th, W, cout_p), lambda n, h: (n, h, 0, 0)),
        out_shape=jax.ShapeDtypeStruct((N, Hpad, W, cout_p), out_dtype),
        compiler_params=_compiler_params(),
    )(y, scale, shift)


def double_conv(x_nchw, params):
    """DoubleConv forward: (N, Cin, H, W) -> (N, Cout, H, W)."""
    N, cin, H, W = x_nchw.shape
    cout = params["g2"].shape[0]
    cin_p = _round_up(cin, LANE)
    cout_p = _round_up(cout, LANE)
    count = float(N * H * W)

    # NCHW -> NHWC, lane-pad channels; pad rows only if the band size doesn't divide H.
    x = jnp.transpose(x_nchw, (0, 2, 3, 1)).astype(MXU_DTYPE)
    x = jnp.pad(x, ((0, 0), (0, 0), (0, 0), (0, cin_p - cin)))
    gh = _cdiv(H, min(H, BLOCK_ROWS_TARGET))
    th = _cdiv(H, gh)
    hpad = gh * th
    if hpad != H:
        x = jnp.pad(x, ((0, 0), (0, hpad - H), (0, 0), (0, 0)))

    # stage 1: conv1 + BN1 partials (no input activation)
    y1, s1 = _conv_stage(x, params["w1"], None, None, h_real=H, th=th)
    scale1, shift1 = _fold_bn(s1, params["g1"], params["b1"], count, cout_p)

    # stage 2: fused BN1+ReLU1 -> conv2 + BN2 partials
    y2, s2 = _conv_stage(y1, params["w2"], scale1, shift1, h_real=H, th=th)
    scale2, shift2 = _fold_bn(s2, params["g2"], params["b2"], count, cout_p)

    # final BN2 + ReLU2
    out = _bn_relu(y2, scale2, shift2, out_dtype=jnp.float32)

    # TODO(synk): emit the final stage directly in the consumer's layout to avoid this
    # trailing XLA slice + NHWC->NCHW transpose when feeding another fused kernel.
    out = out[:, :H, :, :cout]
    return jnp.transpose(out, (0, 3, 1, 2))


# -----------------------------------------------------------------------------
# Pure-JAX reference (PyTorch module, train mode) + parameter init
# -----------------------------------------------------------------------------
def reference_double_conv(x_nchw, params_oihw):
    def block(x, w, g, b):
        y = lax.conv_general_dilated(
            x, w, window_strides=(1, 1), padding="SAME",
            dimension_numbers=("NCHW", "OIHW", "NCHW"))
        mean = jnp.mean(y, axis=(0, 2, 3), keepdims=True)
        var = jnp.mean((y - mean) ** 2, axis=(0, 2, 3), keepdims=True)
        y = (y - mean) * lax.rsqrt(var + EPS)
        y = y * g.reshape(1, -1, 1, 1) + b.reshape(1, -1, 1, 1)
        return jnp.maximum(y, 0.0)

    h = block(x_nchw, params_oihw["w1"], params_oihw["g1"], params_oihw["b1"])
    h = block(h, params_oihw["w2"], params_oihw["g2"], params_oihw["b2"])
    return h


def init_params(key, in_channels, out_channels):
    k1, k2, k3, k4, k5, k6 = jax.random.split(key, 6)
    w1_oihw = 0.1 * jax.random.normal(k1, (out_channels, in_channels, 3, 3), jnp.float32)
    w2_oihw = 0.1 * jax.random.normal(k2, (out_channels, out_channels, 3, 3), jnp.float32)
    g1 = 1.0 + 0.1 * jax.random.normal(k3, (out_channels,), jnp.float32)
    b1 = 0.1 * jax.random.normal(k4, (out_channels,), jnp.float32)
    g2 = 1.0 + 0.1 * jax.random.normal(k5, (out_channels,), jnp.float32)
    b2 = 0.1 * jax.random.normal(k6, (out_channels,), jnp.float32)

    params_oihw = dict(w1=w1_oihw, w2=w2_oihw, g1=g1, b1=b1, g2=g2, b2=b2)
    params_kernel = dict(                     # kernels take HWIO weights
        w1=jnp.transpose(w1_oihw, (2, 3, 1, 0)),
        w2=jnp.transpose(w2_oihw, (2, 3, 1, 0)),
        g1=g1, b1=b1, g2=g2, b2=b2,
    )
    return params_kernel, params_oihw


if __name__ == "__main__":
    root = jax.random.PRNGKey(0)
    kx, kp, kx2, kp2 = jax.random.split(root, 4)

    # Primary check at the module's small shapes.
    N, Cin, Cout, H, W = 2, 4, 8, 16, 16
    x = jax.random.normal(kx, (N, Cin, H, W), jnp.float32)
    params_kernel, params_oihw = init_params(kp, Cin, Cout)
    out = jax.block_until_ready(jax.jit(double_conv)(x, params_kernel))
    assert out.shape == (N, Cout, H, W), out.shape
    ref = jax.block_until_ready(reference_double_conv(x, params_oihw))
    err = float(jnp.max(jnp.abs(out - ref)))
    # bf16 MXU operands / bf16 intermediate activations vs. the all-f32 reference.
    assert jnp.allclose(out, ref, atol=5e-2, rtol=5e-2), err

    # Ragged-shape check: H not a multiple of the row band, odd W / channel counts.
    N2, Cin2, Cout2, H2, W2 = 1, 3, 5, 17, 12
    x2 = jax.random.normal(kx2, (N2, Cin2, H2, W2), jnp.float32)
    pk2, po2 = init_params(kp2, Cin2, Cout2)
    out2 = jax.block_until_ready(jax.jit(double_conv)(x2, pk2))
    assert out2.shape == (N2, Cout2, H2, W2), out2.shape
    ref2 = jax.block_until_ready(reference_double_conv(x2, po2))
    err2 = float(jnp.max(jnp.abs(out2 - ref2)))
    assert jnp.allclose(out2, ref2, atol=5e-2, rtol=5e-2), err2

    print("KERNEL_OK")
</pallas_src>

<mosaic_0001>
module attributes {stable_mosaic.version = 11 : i64} {
  func.func @_conv_stats_kernel(%arg0: i32, %arg1: i32, %arg2: memref<1x16x16x128xbf16, #tpu.memory_space<vmem>>, %arg3: memref<1x1x16x128xbf16, #tpu.memory_space<vmem>>, %arg4: memref<1x1x16x128xbf16, #tpu.memory_space<vmem>>, %arg5: memref<3x384x128xbf16, #tpu.memory_space<vmem>>, %arg6: memref<1x16x16x128xbf16, #tpu.memory_space<vmem>>, %arg7: memref<1x1x2x128xf32, #tpu.memory_space<vmem>>) attributes {dimension_semantics = [#tpu.dimension_semantics<parallel>, #tpu.dimension_semantics<parallel>], iteration_bounds = array<i64: 2, 1>, scalar_prefetch = 0 : i64, scratch_operands = 0 : i64, tpu.core_type = #tpu.core_type<tc>, window_params = [{transform_indices = @transform_0, window_bounds = array<i64: 1, 16, 16, 128>}, {transform_indices = @transform_1, window_bounds = array<i64: 1, 1, 16, 128>}, {transform_indices = @transform_2, window_bounds = array<i64: 1, 1, 16, 128>}, {pipeline_mode = #tpu.pipeline_mode<synchronous>, transform_indices = @transform_3, window_bounds = array<i64: 3, 384, 128>}, {transform_indices = @transform_4, window_bounds = array<i64: 1, 16, 16, 128>}, {transform_indices = @transform_5, window_bounds = array<i64: 1, 1, 2, 128>}]} {
    %c16_i32 = arith.constant 16 : i32
    %0 = arith.muli %arg1, %c16_i32 : i32
    %c0 = arith.constant 0 : index
    %c0_0 = arith.constant 0 : index
    %c0_1 = arith.constant 0 : index
    %c0_2 = arith.constant 0 : index
    %1 = vector.load %arg2[%c0, %c0_0, %c0_1, %c0_2] : memref<1x16x16x128xbf16, #tpu.memory_space<vmem>>, vector<1x16x16x128xbf16>
    %2 = vector.shape_cast %1 : vector<1x16x16x128xbf16> to vector<16x16x128xbf16>
    %c0_3 = arith.constant 0 : index
    %c0_4 = arith.constant 0 : index
    %c0_5 = arith.constant 0 : index
    %c0_6 = arith.constant 0 : index
    %3 = vector.load %arg3[%c0_3, %c0_4, %c0_5, %c0_6] : memref<1x1x16x128xbf16, #tpu.memory_space<vmem>>, vector<1x1x16x128xbf16>
    %4 = vector.shape_cast %3 : vector<1x1x16x128xbf16> to vector<1x16x128xbf16>
    %c0_7 = arith.constant 0 : index
    %c0_8 = arith.constant 0 : index
    %c0_9 = arith.constant 0 : index
    %c0_10 = arith.constant 0 : index
    %5 = vector.load %arg4[%c0_7, %c0_8, %c0_9, %c0_10] : memref<1x1x16x128xbf16, #tpu.memory_space<vmem>>, vector<1x1x16x128xbf16>
    %6 = vector.shape_cast %5 : vector<1x1x16x128xbf16> to vector<1x16x128xbf16>
    %7 = tpu.iota {dimensions = array<i32: 0>} : vector<16x1x1xi32>
    %8 = vector.broadcast %0 : i32 to vector<16x1x1xi32>
    %9 = arith.addi %8, %7 : vector<16x1x1xi32>
    %c16_i32_11 = arith.constant 16 : i32
    %10 = vector.broadcast %c16_i32_11 : i32 to vector<16x1x1xi32>
    %11 = arith.cmpi slt, %9, %10 : vector<16x1x1xi32>
    %cst = arith.constant 0.000000e+00 : bf16
    %12 = vector.shape_cast %11 : vector<16x1x1xi1> to vector<16x1x1xi1>
    %13 = vector.broadcast %12 : vector<16x1x1xi1> to vector<16x16x128xi1>
    %14 = vector.broadcast %cst : bf16 to vector<16x16x128xbf16>
    %15 = arith.select %13, %2, %14 : vector<16x16x128xi1>, vector<16x16x128xbf16>
    %c0_i32 = arith.constant 0 : i32
    %16 = arith.cmpi sgt, %0, %c0_i32 : i32
    %cst_12 = arith.constant 0.000000e+00 : bf16
    %17 = vector.broadcast %cst_12 : bf16 to vector<1x16x128xbf16>
    %18 = arith.select %16, %4, %17 : vector<1x16x128xbf16>
    %c16_i32_13 = arith.constant 16 : i32
    %19 = arith.addi %0, %c16_i32_13 : i32
    %c16_i32_14 = arith.constant 16 : i32
    %20 = arith.cmpi slt, %19, %c16_i32_14 : i32
    %cst_15 = arith.constant 0.000000e+00 : bf16
    %21 = vector.broadcast %cst_15 : bf16 to vector<1x16x128xbf16>
    %22 = arith.select %20, %6, %21 : vector<1x16x128xbf16>
    %23 = vector.extract_strided_slice %15 {offsets = [0, 0, 0], sizes = [15, 16, 128], strides = [1, 1, 1]} : vector<16x16x128xbf16> to vector<15x16x128xbf16>
    %24 = tpu.concatenate %18, %23 in 0 : vector<1x16x128xbf16>, vector<15x16x128xbf16> -> vector<16x16x128xbf16>
    %25 = vector.extract_strided_slice %15 {offsets = [1, 0, 0], sizes = [15, 16, 128], strides = [1, 1, 1]} : vector<16x16x128xbf16> to vector<15x16x128xbf16>
    %26 = tpu.concatenate %25, %22 in 0 : vector<15x16x128xbf16>, vector<1x16x128xbf16> -> vector<16x16x128xbf16>
    %cst_16 = arith.constant 0.000000e+00 : bf16
    %27 = vector.broadcast %cst_16 : bf16 to vector<16x1x128xbf16>
    %28 = vector.extract_strided_slice %24 {offsets = [0, 0, 0], sizes = [16, 15, 128], strides = [1, 1, 1]} : vector<16x16x128xbf16> to vector<16x15x128xbf16>
    %29 = tpu.concatenate %27, %28 in 1 : vector<16x1x128xbf16>, vector<16x15x128xbf16> -> vector<16x16x128xbf16>
    %30 = vector.extract_strided_slice %24 {offsets = [0, 1, 0], sizes = [16, 15, 128], strides = [1, 1, 1]} : vector<16x16x128xbf16> to vector<16x15x128xbf16>
    %31 = tpu.concatenate %30, %27 in 1 : vector<16x15x128xbf16>, vector<16x1x128xbf16> -> vector<16x16x128xbf16>
    %32 = tpu.concatenate %29, %24, %31 in 2 : vector<16x16x128xbf16>, vector<16x16x128xbf16>, vector<16x16x128xbf16> -> vector<16x16x384xbf16>
    %33 = vector.shape_cast %32 : vector<16x16x384xbf16> to vector<256x384xbf16>
    %c0_17 = arith.constant 0 : index
    %c0_18 = arith.constant 0 : index
    %c0_19 = arith.constant 0 : index
    %34 = vector.load %arg5[%c0_17, %c0_18, %c0_19] : memref<3x384x128xbf16, #tpu.memory_space<vmem>>, vector<1x384x128xbf16>
    %35 = vector.shape_cast %34 : vector<1x384x128xbf16> to vector<384x128xbf16>
    %cst_20 = arith.constant dense<0.000000e+00> : vector<256x128xf32>
    %36 = tpu.matmul %33, %35, %cst_20 {dimension_numbers = #tpu.dot_dimension_numbers<[1], [0], [0], [1], [0, 0, 1, 1], [], []>} : vector<256x384xbf16>, vector<384x128xbf16>, vector<256x128xf32> -> vector<256x128xf32>
    %cst_21 = arith.constant 0.000000e+00 : bf16
    %37 = vector.broadcast %cst_21 : bf16 to vector<16x1x128xbf16>
    %38 = vector.extract_strided_slice %15 {offsets = [0, 0, 0], sizes = [16, 15, 128], strides = [1, 1, 1]} : vector<16x16x128xbf16> to vector<16x15x128xbf16>
    %39 = tpu.concatenate %37, %38 in 1 : vector<16x1x128xbf16>, vector<16x15x128xbf16> -> vector<16x16x128xbf16>
    %40 = vector.extract_strided_slice %15 {offsets = [0, 1, 0], sizes = [16, 15, 128], strides = [1, 1, 1]} : vector<16x16x128xbf16> to vector<16x15x128xbf16>
    %41 = tpu.concatenate %40, %37 in 1 : vector<16x15x128xbf16>, vector<16x1x128xbf16> -> vector<16x16x128xbf16>
    %42 = tpu.concatenate %39, %15, %41 in 2 : vector<16x16x128xbf16>, vector<16x16x128xbf16>, vector<16x16x128xbf16> -> vector<16x16x384xbf16>
    %43 = vector.shape_cast %42 : vector<16x16x384xbf16> to vector<256x384xbf16>
    %c1 = arith.constant 1 : index
    %c0_22 = arith.constant 0 : index
    %c0_23 = arith.constant 0 : index
    %44 = vector.load %arg5[%c1, %c0_22, %c0_23] : memref<3x384x128xbf16, #tpu.memory_space<vmem>>, vector<1x384x128xbf16>
    %45 = vector.shape_cast %44 : vector<1x384x128xbf16> to vector<384x128xbf16>
    %cst_24 = arith.constant dense<0.000000e+00> : vector<256x128xf32>
    %46 = tpu.matmul %43, %45, %cst_24 {dimension_numbers = #tpu.dot_dimension_numbers<[1], [0], [0], [1], [0, 0, 1, 1], [], []>} : vector<256x384xbf16>, vector<384x128xbf16>, vector<256x128xf32> -> vector<256x128xf32>
    %47 = arith.addf %36, %46 : vector<256x128xf32>
    %cst_25 = arith.constant 0.000000e+00 : bf16
    %48 = vector.broadcast %cst_25 : bf16 to vector<16x1x128xbf16>
    %49 = vector.extract_strided_slice %26 {offsets = [0, 0, 0], sizes = [16, 15, 128], strides = [1, 1, 1]} : vector<16x16x128xbf16> to vector<16x15x128xbf16>
    %50 = tpu.concatenate %48, %49 in 1 : vector<16x1x128xbf16>, vector<16x15x128xbf16> -> vector<16x16x128xbf16>
    %51 = vector.extract_strided_slice %26 {offsets = [0, 1, 0], sizes = [16, 15, 128], strides = [1, 1, 1]} : vector<16x16x128xbf16> to vector<16x15x128xbf16>
    %52 = tpu.concatenate %51, %48 in 1 : vector<16x15x128xbf16>, vector<16x1x128xbf16> -> vector<16x16x128xbf16>
    %53 = tpu.concatenate %50, %26, %52 in 2 : vector<16x16x128xbf16>, vector<16x16x128xbf16>, vector<16x16x128xbf16> -> vector<16x16x384xbf16>
    %54 = vector.shape_cast %53 : vector<16x16x384xbf16> to vector<256x384xbf16>
    %c2 = arith.constant 2 : index
    %c0_26 = arith.constant 0 : index
    %c0_27 = arith.constant 0 : index
    %55 = vector.load %arg5[%c2, %c0_26, %c0_27] : memref<3x384x128xbf16, #tpu.memory_space<vmem>>, vector<1x384x128xbf16>
    %56 = vector.shape_cast %55 : vector<1x384x128xbf16> to vector<384x128xbf16>
    %cst_28 = arith.constant dense<0.000000e+00> : vector<256x128xf32>
    %57 = tpu.matmul %54, %56, %cst_28 {dimension_numbers = #tpu.dot_dimension_numbers<[1], [0], [0], [1], [0, 0, 1, 1], [], []>} : vector<256x384xbf16>, vector<384x128xbf16>, vector<256x128xf32> -> vector<256x128xf32>
    %58 = arith.addf %47, %57 : vector<256x128xf32>
    %59 = vector.shape_cast %58 : vector<256x128xf32> to vector<16x16x128xf32>
    %c16_i32_29 = arith.constant 16 : i32
    %60 = vector.broadcast %c16_i32_29 : i32 to vector<16x1x1xi32>
    %61 = arith.cmpi slt, %9, %60 : vector<16x1x1xi32>
    %cst_30 = arith.constant 0.000000e+00 : f32
    %62 = vector.shape_cast %61 : vector<16x1x1xi1> to vector<16x1x1xi1>
    %63 = vector.broadcast %62 : vector<16x1x1xi1> to vector<16x16x128xi1>
    %64 = vector.broadcast %cst_30 : f32 to vector<16x16x128xf32>
    %65 = arith.select %63, %59, %64 : vector<16x16x128xi1>, vector<16x16x128xf32>
    %66 = vector.shape_cast %65 : vector<16x16x128xf32> to vector<1x16x16x128xf32>
    %67 = arith.truncf %66 : vector<1x16x16x128xf32> to vector<1x16x16x128xbf16>
    %c0_31 = arith.constant 0 : index
    %c0_32 = arith.constant 0 : index
    %c0_33 = arith.constant 0 : index
    %c0_34 = arith.constant 0 : index
    %68 = vector.load %arg6[%c0_31, %c0_32, %c0_33, %c0_34] : memref<1x16x16x128xbf16, #tpu.memory_space<vmem>>, vector<1x16x16x128xbf16>
    tpu.vector_store %arg6[%c0_31, %c0_32, %c0_33, %c0_34], %67 {strides = array<i32>} : memref<1x16x16x128xbf16, #tpu.memory_space<vmem>>, vector<1x16x16x128xbf16>,
    %69 = vector.shape_cast %65 : vector<16x16x128xf32> to vector<256x128xf32>
    %cst_35 = arith.constant dense<0.000000e+00> : vector<128xf32>
    %70 = vector.multi_reduction <add>, %69, %cst_35 [0] : vector<256x128xf32> to vector<128xf32>
    %71 = arith.mulf %69, %69 : vector<256x128xf32>
    %cst_36 = arith.constant dense<0.000000e+00> : vector<128xf32>
    %72 = vector.multi_reduction <add>, %71, %cst_36 [0] : vector<256x128xf32> to vector<128xf32>
    %73 = vector.shape_cast %70 : vector<128xf32> to vector<1x128xf32>
    %74 = vector.shape_cast %72 : vector<128xf32> to vector<1x128xf32>
    %75 = tpu.concatenate %73, %74 in 0 : vector<1x128xf32>, vector<1x128xf32> -> vector<2x128xf32>
    %76 = vector.shape_cast %75 : vector<2x128xf32> to vector<1x1x2x128xf32>
    %c0_37 = arith.constant 0 : index
    %c0_38 = arith.constant 0 : index
    %c0_39 = arith.constant 0 : index
    %c0_40 = arith.constant 0 : index
    %77 = vector.load %arg7[%c0_37, %c0_38, %c0_39, %c0_40] : memref<1x1x2x128xf32, #tpu.memory_space<vmem>>, vector<1x1x2x128xf32>
    tpu.vector_store %arg7[%c0_37, %c0_38, %c0_39, %c0_40], %76 {strides = array<i32>} : memref<1x1x2x128xf32, #tpu.memory_space<vmem>>, vector<1x1x2x128xf32>,
    return
  }
  func.func @transform_0(%arg0: i32, %arg1: i32) -> (i32, i32, i32, i32) {
    %c0_i32 = arith.constant 0 : i32
    %c0_i32_0 = arith.constant 0 : i32
    %c0_i32_1 = arith.constant 0 : i32
    return %arg0, %arg1, %c0_i32, %c0_i32_0 : i32, i32, i32, i32
  }
  func.func @transform_1(%arg0: i32, %arg1: i32) -> (i32, i32, i32, i32) {
    %c16_i32 = arith.constant 16 : i32
    %0 = arith.muli %arg1, %c16_i32 : i32
    %c1_i32 = arith.constant 1 : i32
    %1 = arith.subi %0, %c1_i32 : i32
    %c0_i32 = arith.constant 0 : i32
    %2 = arith.maxsi %1, %c0_i32 : i32
    %c0_i32_0 = arith.constant 0 : i32
    %c0_i32_1 = arith.constant 0 : i32
    %c0_i32_2 = arith.constant 0 : i32
    return %arg0, %2, %c0_i32_0, %c0_i32_1 : i32, i32, i32, i32
  }
  func.func @transform_2(%arg0: i32, %arg1: i32) -> (i32, i32, i32, i32) {
    %c16_i32 = arith.constant 16 : i32
    %0 = arith.muli %arg1, %c16_i32 : i32
    %c16_i32_0 = arith.constant 16 : i32
    %1 = arith.addi %0, %c16_i32_0 : i32
    %c15_i32 = arith.constant 15 : i32
    %2 = arith.minsi %1, %c15_i32 : i32
    %c0_i32 = arith.constant 0 : i32
    %c0_i32_1 = arith.constant 0 : i32
    %c0_i32_2 = arith.constant 0 : i32
    return %arg0, %2, %c0_i32, %c0_i32_1 : i32, i32, i32, i32
  }
  func.func @transform_3(%arg0: i32, %arg1: i32) -> (i32, i32, i32) {
    %c0_i32 = arith.constant 0 : i32
    %c0_i32_0 = arith.constant 0 : i32
    %c0_i32_1 = arith.constant 0 : i32
    %c0_i32_2 = arith.constant 0 : i32
    return %c0_i32, %c0_i32_0, %c0_i32_1 : i32, i32, i32
  }
  func.func @transform_4(%arg0: i32, %arg1: i32) -> (i32, i32, i32, i32) {
    %c0_i32 = arith.constant 0 : i32
    %c0_i32_0 = arith.constant 0 : i32
    %c0_i32_1 = arith.constant 0 : i32
    return %arg0, %arg1, %c0_i32, %c0_i32_0 : i32, i32, i32, i32
  }
  func.func @transform_5(%arg0: i32, %arg1: i32) -> (i32, i32, i32, i32) {
    %c0_i32 = arith.constant 0 : i32
    %c0_i32_0 = arith.constant 0 : i32
    %c0_i32_1 = arith.constant 0 : i32
    return %arg0, %arg1, %c0_i32, %c0_i32_0 : i32, i32, i32, i32
  }
}

module attributes {stable_mosaic.version = 11 : i64} {
  func.func @_bn_relu_kernel(%arg0: i32, %arg1: i32, %arg2: memref<1x16x16x128xbf16, #tpu.memory_space<vmem>>, %arg3: memref<1x128xf32, #tpu.memory_space<vmem>>, %arg4: memref<1x128xf32, #tpu.memory_space<vmem>>, %arg5: memref<1x16x16x128xf32, #tpu.memory_space<vmem>>) attributes {dimension_semantics = [#tpu.dimension_semantics<parallel>, #tpu.dimension_semantics<parallel>], iteration_bounds = array<i64: 2, 1>, scalar_prefetch = 0 : i64, scratch_operands = 0 : i64, tpu.core_type = #tpu.core_type<tc>, window_params = [{transform_indices = @transform_0, window_bounds = array<i64: 1, 16, 16, 128>}, {pipeline_mode = #tpu.pipeline_mode<synchronous>, transform_indices = @transform_1, window_bounds = array<i64: 1, 128>}, {pipeline_mode = #tpu.pipeline_mode<synchronous>, transform_indices = @transform_2, window_bounds = array<i64: 1, 128>}, {transform_indices = @transform_3, window_bounds = array<i64: 1, 16, 16, 128>}]} {
    %c0 = arith.constant 0 : index
    %c0_0 = arith.constant 0 : index
    %c0_1 = arith.constant 0 : index
    %c0_2 = arith.constant 0 : index
    %0 = vector.load %arg2[%c0, %c0_0, %c0_1, %c0_2] : memref<1x16x16x128xbf16, #tpu.memory_space<vmem>>, vector<1x16x16x128xbf16>
    %1 = arith.extf %0 : vector<1x16x16x128xbf16> to vector<1x16x16x128xf32>
    %c0_3 = arith.constant 0 : index
    %c0_4 = arith.constant 0 : index
    %2 = vector.load %arg3[%c0_3, %c0_4] : memref<1x128xf32, #tpu.memory_space<vmem>>, vector<1x128xf32>
    %3 = vector.shape_cast %2 : vector<1x128xf32> to vector<128xf32>
    %4 = vector.shape_cast %3 : vector<128xf32> to vector<1x1x1x128xf32>
    %5 = vector.broadcast %4 : vector<1x1x1x128xf32> to vector<1x16x16x128xf32>
    %6 = arith.mulf %1, %5 : vector<1x16x16x128xf32>
    %c0_5 = arith.constant 0 : index
    %c0_6 = arith.constant 0 : index
    %7 = vector.load %arg4[%c0_5, %c0_6] : memref<1x128xf32, #tpu.memory_space<vmem>>, vector<1x128xf32>
    %8 = vector.shape_cast %7 : vector<1x128xf32> to vector<128xf32>
    %9 = vector.shape_cast %8 : vector<128xf32> to vector<1x1x1x128xf32>
    %10 = vector.broadcast %9 : vector<1x1x1x128xf32> to vector<1x16x16x128xf32>
    %11 = arith.addf %6, %10 : vector<1x16x16x128xf32>
    %cst = arith.constant 0.000000e+00 : f32
    %12 = vector.broadcast %cst : f32 to vector<1x16x16x128xf32>
    %13 = arith.maximumf %11, %12 : vector<1x16x16x128xf32>
    %c0_7 = arith.constant 0 : index
    %c0_8 = arith.constant 0 : index
    %c0_9 = arith.constant 0 : index
    %c0_10 = arith.constant 0 : index
    %14 = vector.load %arg5[%c0_7, %c0_8, %c0_9, %c0_10] : memref<1x16x16x128xf32, #tpu.memory_space<vmem>>, vector<1x16x16x128xf32>
    tpu.vector_store %arg5[%c0_7, %c0_8, %c0_9, %c0_10], %13 {strides = array<i32>} : memref<1x16x16x128xf32, #tpu.memory_space<vmem>>, vector<1x16x16x128xf32>,
    return
  }
  func.func @transform_0(%arg0: i32, %arg1: i32) -> (i32, i32, i32, i32) {
    %c0_i32 = arith.constant 0 : i32
    %c0_i32_0 = arith.constant 0 : i32
    %c0_i32_1 = arith.constant 0 : i32
    return %arg0, %arg1, %c0_i32, %c0_i32_0 : i32, i32, i32, i32
  }
  func.func @transform_1(%arg0: i32, %arg1: i32) -> (i32, i32) {
    %c0_i32 = arith.constant 0 : i32
    %c0_i32_0 = arith.constant 0 : i32
    %c0_i32_1 = arith.constant 0 : i32
    return %c0_i32, %c0_i32_0 : i32, i32
  }
  func.func @transform_2(%arg0: i32, %arg1: i32) -> (i32, i32) {
    %c0_i32 = arith.constant 0 : i32
    %c0_i32_0 = arith.constant 0 : i32
    %c0_i32_1 = arith.constant 0 : i32
    return %c0_i32, %c0_i32_0 : i32, i32
  }
  func.func @transform_3(%arg0: i32, %arg1: i32) -> (i32, i32, i32, i32) {
    %c0_i32 = arith.constant 0 : i32
    %c0_i32_0 = arith.constant 0 : i32
    %c0_i32_1 = arith.constant 0 : i32
    return %arg0, %arg1, %c0_i32, %c0_i32_0 : i32, i32, i32, i32
  }
}

module attributes {stable_mosaic.version = 11 : i64} {
  func.func @_conv_stats_kernel(%arg0: i32, %arg1: i32, %arg2: memref<1x16x16x128xbf16, #tpu.memory_space<vmem>>, %arg3: memref<1x1x16x128xbf16, #tpu.memory_space<vmem>>, %arg4: memref<1x1x16x128xbf16, #tpu.memory_space<vmem>>, %arg5: memref<3x384x128xbf16, #tpu.memory_space<vmem>>, %arg6: memref<1x128xf32, #tpu.memory_space<vmem>>, %arg7: memref<1x128xf32, #tpu.memory_space<vmem>>, %arg8: memref<1x16x16x128xbf16, #tpu.memory_space<vmem>>, %arg9: memref<1x1x2x128xf32, #tpu.memory_space<vmem>>) attributes {dimension_semantics = [#tpu.dimension_semantics<parallel>, #tpu.dimension_semantics<parallel>], iteration_bounds = array<i64: 2, 1>, scalar_prefetch = 0 : i64, scratch_operands = 0 : i64, tpu.core_type = #tpu.core_type<tc>, window_params = [{transform_indices = @transform_0, window_bounds = array<i64: 1, 16, 16, 128>}, {transform_indices = @transform_1, window_bounds = array<i64: 1, 1, 16, 128>}, {transform_indices = @transform_2, window_bounds = array<i64: 1, 1, 16, 128>}, {pipeline_mode = #tpu.pipeline_mode<synchronous>, transform_indices = @transform_3, window_bounds = array<i64: 3, 384, 128>}, {pipeline_mode = #tpu.pipeline_mode<synchronous>, transform_indices = @transform_4, window_bounds = array<i64: 1, 128>}, {pipeline_mode = #tpu.pipeline_mode<synchronous>, transform_indices = @transform_5, window_bounds = array<i64: 1, 128>}, {transform_indices = @transform_6, window_bounds = array<i64: 1, 16, 16, 128>}, {transform_indices = @transform_7, window_bounds = array<i64: 1, 1, 2, 128>}]} {
    %c16_i32 = arith.constant 16 : i32
    %0 = arith.muli %arg1, %c16_i32 : i32
    %c0 = arith.constant 0 : index
    %c0_0 = arith.constant 0 : index
    %c0_1 = arith.constant 0 : index
    %c0_2 = arith.constant 0 : index
    %1 = vector.load %arg2[%c0, %c0_0, %c0_1, %c0_2] : memref<1x16x16x128xbf16, #tpu.memory_space<vmem>>, vector<1x16x16x128xbf16>
    %2 = vector.shape_cast %1 : vector<1x16x16x128xbf16> to vector<16x16x128xbf16>
    %3 = arith.extf %2 : vector<16x16x128xbf16> to vector<16x16x128xf32>
    %c0_3 = arith.constant 0 : index
    %c0_4 = arith.constant 0 : index
    %4 = vector.load %arg6[%c0_3, %c0_4] : memref<1x128xf32, #tpu.memory_space<vmem>>, vector<1x128xf32>
    %5 = vector.shape_cast %4 : vector<1x128xf32> to vector<128xf32>
    %6 = vector.shape_cast %5 : vector<128xf32> to vector<1x1x128xf32>
    %7 = vector.broadcast %6 : vector<1x1x128xf32> to vector<16x16x128xf32>
    %8 = arith.mulf %3, %7 : vector<16x16x128xf32>
    %c0_5 = arith.constant 0 : index
    %c0_6 = arith.constant 0 : index
    %9 = vector.load %arg7[%c0_5, %c0_6] : memref<1x128xf32, #tpu.memory_space<vmem>>, vector<1x128xf32>
    %10 = vector.shape_cast %9 : vector<1x128xf32> to vector<128xf32>
    %11 = vector.shape_cast %10 : vector<128xf32> to vector<1x1x128xf32>
    %12 = vector.broadcast %11 : vector<1x1x128xf32> to vector<16x16x128xf32>
    %13 = arith.addf %8, %12 : vector<16x16x128xf32>
    %cst = arith.constant 0.000000e+00 : f32
    %14 = vector.broadcast %cst : f32 to vector<16x16x128xf32>
    %15 = arith.maximumf %13, %14 : vector<16x16x128xf32>
    %16 = arith.truncf %15 : vector<16x16x128xf32> to vector<16x16x128xbf16>
    %c0_7 = arith.constant 0 : index
    %c0_8 = arith.constant 0 : index
    %c0_9 = arith.constant 0 : index
    %c0_10 = arith.constant 0 : index
    %17 = vector.load %arg3[%c0_7, %c0_8, %c0_9, %c0_10] : memref<1x1x16x128xbf16, #tpu.memory_space<vmem>>, vector<1x1x16x128xbf16>
    %18 = vector.shape_cast %17 : vector<1x1x16x128xbf16> to vector<1x16x128xbf16>
    %19 = arith.extf %18 : vector<1x16x128xbf16> to vector<1x16x128xf32>
    %c0_11 = arith.constant 0 : index
    %c0_12 = arith.constant 0 : index
    %20 = vector.load %arg6[%c0_11, %c0_12] : memref<1x128xf32, #tpu.memory_space<vmem>>, vector<1x128xf32>
    %21 = vector.shape_cast %20 : vector<1x128xf32> to vector<128xf32>
    %22 = vector.shape_cast %21 : vector<128xf32> to vector<1x1x128xf32>
    %23 = vector.broadcast %22 : vector<1x1x128xf32> to vector<1x16x128xf32>
    %24 = arith.mulf %19, %23 : vector<1x16x128xf32>
    %c0_13 = arith.constant 0 : index
    %c0_14 = arith.constant 0 : index
    %25 = vector.load %arg7[%c0_13, %c0_14] : memref<1x128xf32, #tpu.memory_space<vmem>>, vector<1x128xf32>
    %26 = vector.shape_cast %25 : vector<1x128xf32> to vector<128xf32>
    %27 = vector.shape_cast %26 : vector<128xf32> to vector<1x1x128xf32>
    %28 = vector.broadcast %27 : vector<1x1x128xf32> to vector<1x16x128xf32>
    %29 = arith.addf %24, %28 : vector<1x16x128xf32>
    %cst_15 = arith.constant 0.000000e+00 : f32
    %30 = vector.broadcast %cst_15 : f32 to vector<1x16x128xf32>
    %31 = arith.maximumf %29, %30 : vector<1x16x128xf32>
    %32 = arith.truncf %31 : vector<1x16x128xf32> to vector<1x16x128xbf16>
    %c0_16 = arith.constant 0 : index
    %c0_17 = arith.constant 0 : index
    %c0_18 = arith.constant 0 : index
    %c0_19 = arith.constant 0 : index
    %33 = vector.load %arg4[%c0_16, %c0_17, %c0_18, %c0_19] : memref<1x1x16x128xbf16, #tpu.memory_space<vmem>>, vector<1x1x16x128xbf16>
    %34 = vector.shape_cast %33 : vector<1x1x16x128xbf16> to vector<1x16x128xbf16>
    %35 = arith.extf %34 : vector<1x16x128xbf16> to vector<1x16x128xf32>
    %c0_20 = arith.constant 0 : index
    %c0_21 = arith.constant 0 : index
    %36 = vector.load %arg6[%c0_20, %c0_21] : memref<1x128xf32, #tpu.memory_space<vmem>>, vector<1x128xf32>
    %37 = vector.shape_cast %36 : vector<1x128xf32> to vector<128xf32>
    %38 = vector.shape_cast %37 : vector<128xf32> to vector<1x1x128xf32>
    %39 = vector.broadcast %38 : vector<1x1x128xf32> to vector<1x16x128xf32>
    %40 = arith.mulf %35, %39 : vector<1x16x128xf32>
    %c0_22 = arith.constant 0 : index
    %c0_23 = arith.constant 0 : index
    %41 = vector.load %arg7[%c0_22, %c0_23] : memref<1x128xf32, #tpu.memory_space<vmem>>, vector<1x128xf32>
    %42 = vector.shape_cast %41 : vector<1x128xf32> to vector<128xf32>
    %43 = vector.shape_cast %42 : vector<128xf32> to vector<1x1x128xf32>
    %44 = vector.broadcast %43 : vector<1x1x128xf32> to vector<1x16x128xf32>
    %45 = arith.addf %40, %44 : vector<1x16x128xf32>
    %cst_24 = arith.constant 0.000000e+00 : f32
    %46 = vector.broadcast %cst_24 : f32 to vector<1x16x128xf32>
    %47 = arith.maximumf %45, %46 : vector<1x16x128xf32>
    %48 = arith.truncf %47 : vector<1x16x128xf32> to vector<1x16x128xbf16>
    %49 = tpu.iota {dimensions = array<i32: 0>} : vector<16x1x1xi32>
    %50 = vector.broadcast %0 : i32 to vector<16x1x1xi32>
    %51 = arith.addi %50, %49 : vector<16x1x1xi32>
    %c16_i32_25 = arith.constant 16 : i32
    %52 = vector.broadcast %c16_i32_25 : i32 to vector<16x1x1xi32>
    %53 = arith.cmpi slt, %51, %52 : vector<16x1x1xi32>
    %cst_26 = arith.constant 0.000000e+00 : bf16
    %54 = vector.shape_cast %53 : vector<16x1x1xi1> to vector<16x1x1xi1>
    %55 = vector.broadcast %54 : vector<16x1x1xi1> to vector<16x16x128xi1>
    %56 = vector.broadcast %cst_26 : bf16 to vector<16x16x128xbf16>
    %57 = arith.select %55, %16, %56 : vector<16x16x128xi1>, vector<16x16x128xbf16>
    %c0_i32 = arith.constant 0 : i32
    %58 = arith.cmpi sgt, %0, %c0_i32 : i32
    %cst_27 = arith.constant 0.000000e+00 : bf16
    %59 = vector.broadcast %cst_27 : bf16 to vector<1x16x128xbf16>
    %60 = arith.select %58, %32, %59 : vector<1x16x128xbf16>
    %c16_i32_28 = arith.constant 16 : i32
    %61 = arith.addi %0, %c16_i32_28 : i32
    %c16_i32_29 = arith.constant 16 : i32
    %62 = arith.cmpi slt, %61, %c16_i32_29 : i32
    %cst_30 = arith.constant 0.000000e+00 : bf16
    %63 = vector.broadcast %cst_30 : bf16 to vector<1x16x128xbf16>
    %64 = arith.select %62, %48, %63 : vector<1x16x128xbf16>
    %65 = vector.extract_strided_slice %57 {offsets = [0, 0, 0], sizes = [15, 16, 128], strides = [1, 1, 1]} : vector<16x16x128xbf16> to vector<15x16x128xbf16>
    %66 = tpu.concatenate %60, %65 in 0 : vector<1x16x128xbf16>, vector<15x16x128xbf16> -> vector<16x16x128xbf16>
    %67 = vector.extract_strided_slice %57 {offsets = [1, 0, 0], sizes = [15, 16, 128], strides = [1, 1, 1]} : vector<16x16x128xbf16> to vector<15x16x128xbf16>
    %68 = tpu.concatenate %67, %64 in 0 : vector<15x16x128xbf16>, vector<1x16x128xbf16> -> vector<16x16x128xbf16>
    %cst_31 = arith.constant 0.000000e+00 : bf16
    %69 = vector.broadcast %cst_31 : bf16 to vector<16x1x128xbf16>
    %70 = vector.extract_strided_slice %66 {offsets = [0, 0, 0], sizes = [16, 15, 128], strides = [1, 1, 1]} : vector<16x16x128xbf16> to vector<16x15x128xbf16>
    %71 = tpu.concatenate %69, %70 in 1 : vector<16x1x128xbf16>, vector<16x15x128xbf16> -> vector<16x16x128xbf16>
    %72 = vector.extract_strided_slice %66 {offsets = [0, 1, 0], sizes = [16, 15, 128], strides = [1, 1, 1]} : vector<16x16x128xbf16> to vector<16x15x128xbf16>
    %73 = tpu.concatenate %72, %69 in 1 : vector<16x15x128xbf16>, vector<16x1x128xbf16> -> vector<16x16x128xbf16>
    %74 = tpu.concatenate %71, %66, %73 in 2 : vector<16x16x128xbf16>, vector<16x16x128xbf16>, vector<16x16x128xbf16> -> vector<16x16x384xbf16>
    %75 = vector.shape_cast %74 : vector<16x16x384xbf16> to vector<256x384xbf16>
    %c0_32 = arith.constant 0 : index
    %c0_33 = arith.constant 0 : index
    %c0_34 = arith.constant 0 : index
    %76 = vector.load %arg5[%c0_32, %c0_33, %c0_34] : memref<3x384x128xbf16, #tpu.memory_space<vmem>>, vector<1x384x128xbf16>
    %77 = vector.shape_cast %76 : vector<1x384x128xbf16> to vector<384x128xbf16>
    %cst_35 = arith.constant dense<0.000000e+00> : vector<256x128xf32>
    %78 = tpu.matmul %75, %77, %cst_35 {dimension_numbers = #tpu.dot_dimension_numbers<[1], [0], [0], [1], [0, 0, 1, 1], [], []>} : vector<256x384xbf16>, vector<384x128xbf16>, vector<256x128xf32> -> vector<256x128xf32>
    %cst_36 = arith.constant 0.000000e+00 : bf16
    %79 = vector.broadcast %cst_36 : bf16 to vector<16x1x128xbf16>
    %80 = vector.extract_strided_slice %57 {offsets = [0, 0, 0], sizes = [16, 15, 128], strides = [1, 1, 1]} : vector<16x16x128xbf16> to vector<16x15x128xbf16>
    %81 = tpu.concatenate %79, %80 in 1 : vector<16x1x128xbf16>, vector<16x15x128xbf16> -> vector<16x16x128xbf16>
    %82 = vector.extract_strided_slice %57 {offsets = [0, 1, 0], sizes = [16, 15, 128], strides = [1, 1, 1]} : vector<16x16x128xbf16> to vector<16x15x128xbf16>
    %83 = tpu.concatenate %82, %79 in 1 : vector<16x15x128xbf16>, vector<16x1x128xbf16> -> vector<16x16x128xbf16>
    %84 = tpu.concatenate %81, %57, %83 in 2 : vector<16x16x128xbf16>, vector<16x16x128xbf16>, vector<16x16x128xbf16> -> vector<16x16x384xbf16>
    %85 = vector.shape_cast %84 : vector<16x16x384xbf16> to vector<256x384xbf16>
    %c1 = arith.constant 1 : index
    %c0_37 = arith.constant 0 : index
    %c0_38 = arith.constant 0 : index
    %86 = vector.load %arg5[%c1, %c0_37, %c0_38] : memref<3x384x128xbf16, #tpu.memory_space<vmem>>, vector<1x384x128xbf16>
    %87 = vector.shape_cast %86 : vector<1x384x128xbf16> to vector<384x128xbf16>
    %cst_39 = arith.constant dense<0.000000e+00> : vector<256x128xf32>
    %88 = tpu.matmul %85, %87, %cst_39 {dimension_numbers = #tpu.dot_dimension_numbers<[1], [0], [0], [1], [0, 0, 1, 1], [], []>} : vector<256x384xbf16>, vector<384x128xbf16>, vector<256x128xf32> -> vector<256x128xf32>
    %89 = arith.addf %78, %88 : vector<256x128xf32>
    %cst_40 = arith.constant 0.000000e+00 : bf16
    %90 = vector.broadcast %cst_40 : bf16 to vector<16x1x128xbf16>
    %91 = vector.extract_strided_slice %68 {offsets = [0, 0, 0], sizes = [16, 15, 128], strides = [1, 1, 1]} : vector<16x16x128xbf16> to vector<16x15x128xbf16>
    %92 = tpu.concatenate %90, %91 in 1 : vector<16x1x128xbf16>, vector<16x15x128xbf16> -> vector<16x16x128xbf16>
    %93 = vector.extract_strided_slice %68 {offsets = [0, 1, 0], sizes = [16, 15, 128], strides = [1, 1, 1]} : vector<16x16x128xbf16> to vector<16x15x128xbf16>
    %94 = tpu.concatenate %93, %90 in 1 : vector<16x15x128xbf16>, vector<16x1x128xbf16> -> vector<16x16x128xbf16>
    %95 = tpu.concatenate %92, %68, %94 in 2 : vector<16x16x128xbf16>, vector<16x16x128xbf16>, vector<16x16x128xbf16> -> vector<16x16x384xbf16>
    %96 = vector.shape_cast %95 : vector<16x16x384xbf16> to vector<256x384xbf16>
    %c2 = arith.constant 2 : index
    %c0_41 = arith.constant 0 : index
    %c0_42 = arith.constant 0 : index
    %97 = vector.load %arg5[%c2, %c0_41, %c0_42] : memref<3x384x128xbf16, #tpu.memory_space<vmem>>, vector<1x384x128xbf16>
    %98 = vector.shape_cast %97 : vector<1x384x128xbf16> to vector<384x128xbf16>
    %cst_43 = arith.constant dense<0.000000e+00> : vector<256x128xf32>
    %99 = tpu.matmul %96, %98, %cst_43 {dimension_numbers = #tpu.dot_dimension_numbers<[1], [0], [0], [1], [0, 0, 1, 1], [], []>} : vector<256x384xbf16>, vector<384x128xbf16>, vector<256x128xf32> -> vector<256x128xf32>
    %100 = arith.addf %89, %99 : vector<256x128xf32>
    %101 = vector.shape_cast %100 : vector<256x128xf32> to vector<16x16x128xf32>
    %c16_i32_44 = arith.constant 16 : i32
    %102 = vector.broadcast %c16_i32_44 : i32 to vector<16x1x1xi32>
    %103 = arith.cmpi slt, %51, %102 : vector<16x1x1xi32>
    %cst_45 = arith.constant 0.000000e+00 : f32
    %104 = vector.shape_cast %103 : vector<16x1x1xi1> to vector<16x1x1xi1>
    %105 = vector.broadcast %104 : vector<16x1x1xi1> to vector<16x16x128xi1>
    %106 = vector.broadcast %cst_45 : f32 to vector<16x16x128xf32>
    %107 = arith.select %105, %101, %106 : vector<16x16x128xi1>, vector<16x16x128xf32>
    %108 = vector.shape_cast %107 : vector<16x16x128xf32> to vector<1x16x16x128xf32>
    %109 = arith.truncf %108 : vector<1x16x16x128xf32> to vector<1x16x16x128xbf16>
    %c0_46 = arith.constant 0 : index
    %c0_47 = arith.constant 0 : index
    %c0_48 = arith.constant 0 : index
    %c0_49 = arith.constant 0 : index
    %110 = vector.load %arg8[%c0_46, %c0_47, %c0_48, %c0_49] : memref<1x16x16x128xbf16, #tpu.memory_space<vmem>>, vector<1x16x16x128xbf16>
    tpu.vector_store %arg8[%c0_46, %c0_47, %c0_48, %c0_49], %109 {strides = array<i32>} : memref<1x16x16x128xbf16, #tpu.memory_space<vmem>>, vector<1x16x16x128xbf16>,
    %111 = vector.shape_cast %107 : vector<16x16x128xf32> to vector<256x128xf32>
    %cst_50 = arith.constant dense<0.000000e+00> : vector<128xf32>
    %112 = vector.multi_reduction <add>, %111, %cst_50 [0] : vector<256x128xf32> to vector<128xf32>
    %113 = arith.mulf %111, %111 : vector<256x128xf32>
    %cst_51 = arith.constant dense<0.000000e+00> : vector<128xf32>
    %114 = vector.multi_reduction <add>, %113, %cst_51 [0] : vector<256x128xf32> to vector<128xf32>
    %115 = vector.shape_cast %112 : vector<128xf32> to vector<1x128xf32>
    %116 = vector.shape_cast %114 : vector<128xf32> to vector<1x128xf32>
    %117 = tpu.concatenate %115, %116 in 0 : vector<1x128xf32>, vector<1x128xf32> -> vector<2x128xf32>
    %118 = vector.shape_cast %117 : vector<2x128xf32> to vector<1x1x2x128xf32>
    %c0_52 = arith.constant 0 : index
    %c0_53 = arith.constant 0 : index
    %c0_54 = arith.constant 0 : index
    %c0_55 = arith.constant 0 : index
    %119 = vector.load %arg9[%c0_52, %c0_53, %c0_54, %c0_55] : memref<1x1x2x128xf32, #tpu.memory_space<vmem>>, vector<1x1x2x128xf32>
    tpu.vector_store %arg9[%c0_52, %c0_53, %c0_54, %c0_55], %118 {strides = array<i32>} : memref<1x1x2x128xf32, #tpu.memory_space<vmem>>, vector<1x1x2x128xf32>,
    return
  }
  func.func @transform_0(%arg0: i32, %arg1: i32) -> (i32, i32, i32, i32) {
    %c0_i32 = arith.constant 0 : i32
    %c0_i32_0 = arith.constant 0 : i32
    %c0_i32_1 = arith.constant 0 : i32
    return %arg0, %arg1, %c0_i32, %c0_i32_0 : i32, i32, i32, i32
  }
  func.func @transform_1(%arg0: i32, %arg1: i32) -> (i32, i32, i32, i32) {
    %c16_i32 = arith.constant 16 : i32
    %0 = arith.muli %arg1, %c16_i32 : i32
    %c1_i32 = arith.constant 1 : i32
    %1 = arith.subi %0, %c1_i32 : i32
    %c0_i32 = arith.constant 0 : i32
    %2 = arith.maxsi %1, %c0_i32 : i32
    %c0_i32_0 = arith.constant 0 : i32
    %c0_i32_1 = arith.constant 0 : i32
    %c0_i32_2 = arith.constant 0 : i32
    return %arg0, %2, %c0_i32_0, %c0_i32_1 : i32, i32, i32, i32
  }
  func.func @transform_2(%arg0: i32, %arg1: i32) -> (i32, i32, i32, i32) {
    %c16_i32 = arith.constant 16 : i32
    %0 = arith.muli %arg1, %c16_i32 : i32
    %c16_i32_0 = arith.constant 16 : i32
    %1 = arith.addi %0, %c16_i32_0 : i32
    %c15_i32 = arith.constant 15 : i32
    %2 = arith.minsi %1, %c15_i32 : i32
    %c0_i32 = arith.constant 0 : i32
    %c0_i32_1 = arith.constant 0 : i32
    %c0_i32_2 = arith.constant 0 : i32
    return %arg0, %2, %c0_i32, %c0_i32_1 : i32, i32, i32, i32
  }
  func.func @transform_3(%arg0: i32, %arg1: i32) -> (i32, i32, i32) {
    %c0_i32 = arith.constant 0 : i32
    %c0_i32_0 = arith.constant 0 : i32
    %c0_i32_1 = arith.constant 0 : i32
    %c0_i32_2 = arith.constant 0 : i32
    return %c0_i32, %c0_i32_0, %c0_i32_1 : i32, i32, i32
  }
  func.func @transform_4(%arg0: i32, %arg1: i32) -> (i32, i32) {
    %c0_i32 = arith.constant 0 : i32
    %c0_i32_0 = arith.constant 0 : i32
    %c0_i32_1 = arith.constant 0 : i32
    return %c0_i32, %c0_i32_0 : i32, i32
  }
  func.func @transform_5(%arg0: i32, %arg1: i32) -> (i32, i32) {
    %c0_i32 = arith.constant 0 : i32
    %c0_i32_0 = arith.constant 0 : i32
    %c0_i32_1 = arith.constant 0 : i32
    return %c0_i32, %c0_i32_0 : i32, i32
  }
  func.func @transform_6(%arg0: i32, %arg1: i32) -> (i32, i32, i32, i32) {
    %c0_i32 = arith.constant 0 : i32
    %c0_i32_0 = arith.constant 0 : i32
    %c0_i32_1 = arith.constant 0 : i32
    return %arg0, %arg1, %c0_i32, %c0_i32_0 : i32, i32, i32, i32
  }
  func.func @transform_7(%arg0: i32, %arg1: i32) -> (i32, i32, i32, i32) {
    %c0_i32 = arith.constant 0 : i32
    %c0_i32_0 = arith.constant 0 : i32
    %c0_i32_1 = arith.constant 0 : i32
    return %arg0, %arg1, %c0_i32, %c0_i32_0 : i32, i32, i32, i32
  }
}

</mosaic_0001>

<bundles_post_ra>
// kernel: double_conv.5
= control target key start
LH: loop header
LB: loop body
LE: loop exit
PB: predicated region body
PF: predicated region fallthrough
CT: control target
= control target key end

     0   :  { %s679_s12 = smov 0   ;;  %s681_s13 = smov 0   ;;  %s842_s0 = inlined_call_operand.vmem [shape: bf16[2,16,16,128], index: 0, kind: input, shape index: {}]   ;;  %s843_s1 = inlined_call_operand.vmem [shape: f32[1,128], index: 1, kind: input, shape index: {}]   ;;  %s844_s2 = inlined_call_operand.vmem [shape: f32[1,128], index: 2, kind: input, shape index: {}]   ;;  %s845_s3 = inlined_call_operand.vmem [shape: f32[2,16,16,128], index: 3, kind: output, shape index: {}]  }
   0x1   :  { %s683_s14 = smov 0  }
   0x2 LB: > { %s25_s15 = sadd.s32 1, %s653_s13  ;;  %p521_p0 = scmp.ge.s32.totalorder %s657_s14, 1  ;;  %s657_s14 = sphi %s683_s14, %s13_s14   ;;  %s653_s13 = sphi %s681_s13, %s847_s13   ;;  %s649_s12 = sphi %s679_s12, %s846_s12  }
   0x3   : > { %p27_p1 = scmp.ge.s32.totalorder %s25_s15, 2  ;;  %p159_p2 = scmp.lt.s32.totalorder %s657_s14, 3 }
   0x5   : > { %s849_s15 = smov (%p27_p1, %s25_s15), 0  ;;  %p160_p3 = pnand %p521_p0, %p159_p2 }
   0x6   : > { %p194_p4 = scmp.lt.s32.totalorder (!%p160_p3), %s649_s12, 1  ;;  %v708_v0 = vld [vmem:[%s843_s1] ss:$0 sm:$0xff] (!%p160_p3) }
   0x7   : > { %163 = sbr.rel (%p160_p3) target bundleno = 54 (0x36), region = 32  ;;  %v717_v9 = vld [vmem:[%s844_s2] ss:$0 sm:$0xff] (!%p160_p3) }
   0xe   : > { %s851_s12 = smov (!%p194_p4, %s649_s12), 1 }
   0xf   : > { %s530_s16 = sshll.u32 %s851_s12, 7  ;;  %s531_s24 = sshll.u32 %s851_s12, 8 }
  0x10   : > { %s703_s19 = scalar_lea.vmem %s842_s0, %s530_s16  ;;  %s735_s27 = scalar_lea.vmem %s845_s3, %s531_s24 }
  0x11   : > { %v533_v1 = vld [vmem:[%s703_s19] sm:$0xff]   ;;  %v596_v2 = vld [vmem:[%s703_s19 + $0x8] sm:$0xff]   ;;  %v597_v3 = vld [vmem:[%s703_s19 + $0x10] sm:$0xff]  }
  0x12   : > { %v534_v4 = vunpack.c.l.bf16 %v533_v1  ;;  %v535_v5 = vunpack.c.h.bf16 %v533_v1  ;;  %v538_v6 = vunpack.c.l.bf16 %v596_v2  ;;  %v539_v7 = vunpack.c.h.bf16 %v596_v2  ;;  %v598_v8 = vld [vmem:[%s703_s19 + $0x18] sm:$0xff]   ;;  %v599_v30 = vld [vmem:[%s703_s19 + $0x20] sm:$0xff]   ;;  %v600_v31 = vld [vmem:[%s703_s19 + $0x28] sm:$0xff]  }
  0x13   : > { %v542_v10 = vunpack.c.l.bf16 %v597_v3  ;;  %v543_v11 = vunpack.c.h.bf16 %v597_v3  ;;  %v546_v12 = vunpack.c.l.bf16 %v598_v8  ;;  %v547_v13 = vunpack.c.h.bf16 %v598_v8  ;;  %v601_v36 = vld [vmem:[%s703_s19 + $0x30] sm:$0xff]   ;;  %v602_v37 = vld [vmem:[%s703_s19 + $0x38] sm:$0xff]   ;;  %v603_v3 = vld [vmem:[%s703_s19 + $0x40] sm:$0xff]  }
  0x14   : > { %v286_v14 = vmul.f32 %v534_v4, %v708_v0  ;;  %v287_v15 = vmul.f32 %v535_v5, %v708_v0  ;;  %v288_v16 = vmul.f32 %v538_v6, %v708_v0  ;;  %v289_v17 = vmul.f32 %v539_v7, %v708_v0  ;;  %v604_v4 = vld [vmem:[%s703_s19 + $0x48] sm:$0xff]  }
  0x15   : > { %v290_v18 = vmul.f32 %v542_v10, %v708_v0  ;;  %v291_v19 = vmul.f32 %v543_v11, %v708_v0  ;;  %v292_v20 = vmul.f32 %v546_v12, %v708_v0  ;;  %v293_v21 = vmul.f32 %v547_v13, %v708_v0  ;;  %v605_v10 = vld [vmem:[%s703_s19 + $0x50] sm:$0xff]   ;;  %v606_v11 = vld [vmem:[%s703_s19 + $0x58] sm:$0xff]  }
  0x16   : > { %v325_v22 = vadd.f32 %v717_v9, %v286_v14  ;;  %v326_v23 = vadd.f32 %v717_v9, %v287_v15  ;;  %v327_v24 = vadd.f32 %v717_v9, %v288_v16  ;;  %v328_v25 = vadd.f32 %v717_v9, %v289_v17 }
  0x17   : > { %v329_v26 = vadd.f32 %v717_v9, %v290_v18  ;;  %v330_v27 = vadd.f32 %v717_v9, %v291_v19  ;;  %v331_v28 = vadd.f32 %v717_v9, %v292_v20  ;;  %v332_v29 = vadd.f32 %v717_v9, %v293_v21 }
  0x18   : > { %v357_v32 = vmax.f32 %v325_v22, 0.0  ;;  %v358_v33 = vmax.f32 %v326_v23, 0.0  ;;  %v359_v34 = vmax.f32 %v327_v24, 0.0  ;;  %v360_v35 = vmax.f32 %v328_v25, 0.0 }
  0x19   : > { %v361_v38 = vmax.f32 %v329_v26, 0.0  ;;  %v362_v39 = vmax.f32 %v330_v27, 0.0  ;;  %v363_v40 = vmax.f32 %v331_v28, 0.0  ;;  %v364_v41 = vmax.f32 %v332_v29, 0.0 }
  0x1a   : > { %389 = vst [vmem:[%s735_s27] sm:$0xff] %v357_v32  ;;  %390 = vst [vmem:[%s735_s27 + $0x8] sm:$0xff] %v358_v33  ;;  %v550_v42 = vunpack.c.l.bf16 %v599_v30  ;;  %v551_v43 = vunpack.c.h.bf16 %v599_v30  ;;  %v554_v44 = vunpack.c.l.bf16 %v600_v31  ;;  %v555_v45 = vunpack.c.h.bf16 %v600_v31 }
  0x1b   : > { %391 = vst [vmem:[%s735_s27 + $0x10] sm:$0xff] %v359_v34  ;;  %392 = vst [vmem:[%s735_s27 + $0x18] sm:$0xff] %v360_v35  ;;  %v558_v46 = vunpack.c.l.bf16 %v601_v36  ;;  %v559_v47 = vunpack.c.h.bf16 %v601_v36  ;;  %v562_v48 = vunpack.c.l.bf16 %v602_v37  ;;  %v563_v49 = vunpack.c.h.bf16 %v602_v37 }
  0x1c   : > { %393 = vst [vmem:[%s735_s27 + $0x20] sm:$0xff] %v361_v38  ;;  %394 = vst [vmem:[%s735_s27 + $0x28] sm:$0xff] %v362_v39  ;;  %v294_v50 = vmul.f32 %v550_v42, %v708_v0  ;;  %v295_v51 = vmul.f32 %v551_v43, %v708_v0  ;;  %v296_v52 = vmul.f32 %v554_v44, %v708_v0  ;;  %v566_v16 = vunpack.c.l.bf16 %v603_v3 }
  0x1d   : > { %395 = vst [vmem:[%s735_s27 + $0x30] sm:$0xff] %v363_v40  ;;  %396 = vst [vmem:[%s735_s27 + $0x38] sm:$0xff] %v364_v41  ;;  %v297_v53 = vmul.f32 %v555_v45, %v708_v0  ;;  %v298_v54 = vmul.f32 %v558_v46, %v708_v0  ;;  %v299_v55 = vmul.f32 %v559_v47, %v708_v0  ;;  %v567_v17 = vunpack.c.h.bf16 %v603_v3  ;;  %v607_v40 = vld [vmem:[%s703_s19 + $0x60] sm:$0xff]   ;;  %v608_v41 = vld [vmem:[%s703_s19 + $0x68] sm:$0xff]  }
  0x1e   : > { %v300_v56 = vmul.f32 %v562_v48, %v708_v0  ;;  %v301_v57 = vmul.f32 %v563_v49, %v708_v0  ;;  %v333_v58 = vadd.f32 %v717_v9, %v294_v50  ;;  %v334_v59 = vadd.f32 %v717_v9, %v295_v51  ;;  %v609_v46 = vld [vmem:[%s703_s19 + $0x70] sm:$0xff]   ;;  %v610_v47 = vld [vmem:[%s703_s19 + $0x78] sm:$0xff]  }
  0x1f   : > { %v335_v60 = vadd.f32 %v717_v9, %v296_v52  ;;  %v336_v61 = vadd.f32 %v717_v9, %v297_v53  ;;  %v337_v62 = vadd.f32 %v717_v9, %v298_v54  ;;  %v338_v63 = vadd.f32 %v717_v9, %v299_v55 }
  0x20   : > { %v339_v1 = vadd.f32 %v717_v9, %v300_v56  ;;  %v340_v2 = vadd.f32 %v717_v9, %v301_v57  ;;  %v365_v5 = vmax.f32 %v333_v58, 0.0  ;;  %v366_v6 = vmax.f32 %v334_v59, 0.0 }
  0x21   : > { %v367_v7 = vmax.f32 %v335_v60, 0.0  ;;  %v368_v8 = vmax.f32 %v336_v61, 0.0  ;;  %v369_v12 = vmax.f32 %v337_v62, 0.0  ;;  %v370_v13 = vmax.f32 %v338_v63, 0.0 }
  0x22   : > { %v371_v14 = vmax.f32 %v339_v1, 0.0  ;;  %v372_v15 = vmax.f32 %v340_v2, 0.0  ;;  %397 = vst [vmem:[%s735_s27 + $0x40] sm:$0xff] %v365_v5  ;;  %398 = vst [vmem:[%s735_s27 + $0x48] sm:$0xff] %v366_v6  ;;  %v570_v18 = vunpack.c.l.bf16 %v604_v4  ;;  %v571_v19 = vunpack.c.h.bf16 %v604_v4 }
  0x23   : > { %399 = vst [vmem:[%s735_s27 + $0x50] sm:$0xff] %v367_v7  ;;  %400 = vst [vmem:[%s735_s27 + $0x58] sm:$0xff] %v368_v8  ;;  %v574_v20 = vunpack.c.l.bf16 %v605_v10  ;;  %v575_v21 = vunpack.c.h.bf16 %v605_v10  ;;  %v578_v22 = vunpack.c.l.bf16 %v606_v11  ;;  %v579_v23 = vunpack.c.h.bf16 %v606_v11 }
  0x24   : > { %401 = vst [vmem:[%s735_s27 + $0x60] sm:$0xff] %v369_v12  ;;  %402 = vst [vmem:[%s735_s27 + $0x68] sm:$0xff] %v370_v13  ;;  %v302_v24 = vmul.f32 %v566_v16, %v708_v0  ;;  %v303_v25 = vmul.f32 %v567_v17, %v708_v0  ;;  %v304_v26 = vmul.f32 %v570_v18, %v708_v0  ;;  %v582_v52 = vunpack.c.l.bf16 %v607_v40 }
  0x25   : > { %403 = vst [vmem:[%s735_s27 + $0x70] sm:$0xff] %v371_v14  ;;  %404 = vst [vmem:[%s735_s27 + $0x78] sm:$0xff] %v372_v15  ;;  %v305_v27 = vmul.f32 %v571_v19, %v708_v0  ;;  %v306_v28 = vmul.f32 %v574_v20, %v708_v0  ;;  %v307_v29 = vmul.f32 %v575_v21, %v708_v0  ;;  %v583_v53 = vunpack.c.h.bf16 %v607_v40 }
  0x26   : > { %v308_v30 = vmul.f32 %v578_v22, %v708_v0  ;;  %v309_v31 = vmul.f32 %v579_v23, %v708_v0  ;;  %v341_v32 = vadd.f32 %v717_v9, %v302_v24  ;;  %v342_v33 = vadd.f32 %v717_v9, %v303_v25 }
  0x27   : > { %v343_v34 = vadd.f32 %v717_v9, %v304_v26  ;;  %v344_v35 = vadd.f32 %v717_v9, %v305_v27  ;;  %v345_v36 = vadd.f32 %v717_v9, %v306_v28  ;;  %v346_v37 = vadd.f32 %v717_v9, %v307_v29 }
  0x28   : > { %v347_v38 = vadd.f32 %v717_v9, %v308_v30  ;;  %v348_v39 = vadd.f32 %v717_v9, %v309_v31  ;;  %v373_v42 = vmax.f32 %v341_v32, 0.0  ;;  %v374_v43 = vmax.f32 %v342_v33, 0.0 }
  0x29   : > { %v375_v44 = vmax.f32 %v343_v34, 0.0  ;;  %v376_v45 = vmax.f32 %v344_v35, 0.0  ;;  %v377_v48 = vmax.f32 %v345_v36, 0.0  ;;  %v378_v49 = vmax.f32 %v346_v37, 0.0 }
  0x2a   : > { %v379_v50 = vmax.f32 %v347_v38, 0.0  ;;  %v380_v51 = vmax.f32 %v348_v39, 0.0  ;;  %405 = vst [vmem:[%s735_s27 + $0x80] sm:$0xff] %v373_v42  ;;  %406 = vst [vmem:[%s735_s27 + $0x88] sm:$0xff] %v374_v43  ;;  %v586_v54 = vunpack.c.l.bf16 %v608_v41  ;;  %v587_v55 = vunpack.c.h.bf16 %v608_v41 }
  0x2b   : > { %407 = vst [vmem:[%s735_s27 + $0x90] sm:$0xff] %v375_v44  ;;  %408 = vst [vmem:[%s735_s27 + $0x98] sm:$0xff] %v376_v45  ;;  %v590_v56 = vunpack.c.l.bf16 %v609_v46  ;;  %v591_v57 = vunpack.c.h.bf16 %v609_v46  ;;  %v594_v58 = vunpack.c.l.bf16 %v610_v47  ;;  %v595_v59 = vunpack.c.h.bf16 %v610_v47 }
  0x2c   : > { %409 = vst [vmem:[%s735_s27 + $0xa0] sm:$0xff] %v377_v48  ;;  %410 = vst [vmem:[%s735_s27 + $0xa8] sm:$0xff] %v378_v49  ;;  %v310_v60 = vmul.f32 %v582_v52, %v708_v0  ;;  %v311_v61 = vmul.f32 %v583_v53, %v708_v0  ;;  %v312_v62 = vmul.f32 %v586_v54, %v708_v0 }
  0x2d   : > { %411 = vst [vmem:[%s735_s27 + $0xb0] sm:$0xff] %v379_v50  ;;  %412 = vst [vmem:[%s735_s27 + $0xb8] sm:$0xff] %v380_v51  ;;  %v313_v63 = vmul.f32 %v587_v55, %v708_v0  ;;  %v314_v1 = vmul.f32 %v590_v56, %v708_v0  ;;  %v315_v2 = vmul.f32 %v591_v57, %v708_v0 }
  0x2e   : > { %v316_v3 = vmul.f32 %v594_v58, %v708_v0  ;;  %v317_v4 = vmul.f32 %v595_v59, %v708_v0  ;;  %v349_v5 = vadd.f32 %v717_v9, %v310_v60  ;;  %v350_v6 = vadd.f32 %v717_v9, %v311_v61 }
  0x2f   : > { %v351_v7 = vadd.f32 %v717_v9, %v312_v62  ;;  %v352_v8 = vadd.f32 %v717_v9, %v313_v63  ;;  %v353_v10 = vadd.f32 %v717_v9, %v314_v1  ;;  %v354_v11 = vadd.f32 %v717_v9, %v315_v2 }
  0x30   : > { %v355_v0 = vadd.f32 %v717_v9, %v316_v3  ;;  %v356_v12 = vadd.f32 %v717_v9, %v317_v4  ;;  %v381_v13 = vmax.f32 %v349_v5, 0.0  ;;  %v382_v14 = vmax.f32 %v350_v6, 0.0 }
  0x31   : > { %v383_v15 = vmax.f32 %v351_v7, 0.0  ;;  %v384_v16 = vmax.f32 %v352_v8, 0.0  ;;  %v385_v17 = vmax.f32 %v353_v10, 0.0  ;;  %v386_v18 = vmax.f32 %v354_v11, 0.0 }
  0x32   : > { %v387_v19 = vmax.f32 %v355_v0, 0.0  ;;  %v388_v20 = vmax.f32 %v356_v12, 0.0  ;;  %413 = vst [vmem:[%s735_s27 + $0xc0] sm:$0xff] %v381_v13  ;;  %414 = vst [vmem:[%s735_s27 + $0xc8] sm:$0xff] %v382_v14 }
  0x33   : > { %415 = vst [vmem:[%s735_s27 + $0xd0] sm:$0xff] %v383_v15  ;;  %416 = vst [vmem:[%s735_s27 + $0xd8] sm:$0xff] %v384_v16 }
  0x34   : > { %417 = vst [vmem:[%s735_s27 + $0xe0] sm:$0xff] %v385_v17  ;;  %418 = vst [vmem:[%s735_s27 + $0xe8] sm:$0xff] %v386_v18 }
  0x35   : > { %419 = vst [vmem:[%s735_s27 + $0xf0] sm:$0xff] %v387_v19  ;;  %420 = vst [vmem:[%s735_s27 + $0xf8] sm:$0xff] %v388_v20 }
  0x36 PF: > { %s13_s14 = sadd.s32 1, %s657_s14   ;;  %s846_s12 = smov %s653_s13 }
  0x37   : > { %p10_p5 = scmp.ge.s32.totalorder %s13_s14, 4   ;;  %s847_s13 = smov %s849_s15 }
  0x39   :  { %12 = sbr.rel (!%p10_p5) target bundleno = 2 (0x2), region = 62 }

// kernel: double_conv.4
= control target key start
LH: loop header
LB: loop body
LE: loop exit
PB: predicated region body
PF: predicated region fallthrough
CT: control target
= control target key end

     0   :  { %s4386_s24 = smov 0   ;;  %s4388_s1 = smov 0   ;;  %s5575_s0 = inlined_call_operand.vmem [shape: bf16[2,16,16,128], index: 0, kind: input, shape index: {}, may-alias: {0,1,2}]   ;;  %s5576_s1 = inlined_call_operand.vmem [shape: bf16[2,16,16,128], index: 1, kind: input, shape index: {}, may-alias: {0,1,2}]   ;;  %s5577_s2 = inlined_call_operand.vmem [shape: bf16[2,16,16,128], index: 2, kind: input, shape index: {}, may-alias: {0,1,2}]   ;;  %s5578_s3 = inlined_call_operand.vmem [shape: bf16[3,384,128], index: 3, kind: input, shape index: {}]   ;;  %s5579_s4 = inlined_call_operand.vmem [shape: f32[1,128], index: 4, kind: input, shape index: {}]   ;;  %s5580_s5 = inlined_call_operand.vmem [shape: f32[1,128], index: 5, kind: input, shape index: {}]   ;;  %s5581_s6 = inlined_call_operand.vmem [shape: bf16[2,16,16,128], index: 6, kind: output, shape index: {0}]   ;;  %s5582_s7 = inlined_call_operand.vmem [shape: f32[2,1,2,128], index: 7, kind: output, shape index: {1}]  }
   0x1   :  { %s4390_s2 = smov 0  }
   0x2 LB: > { %s30_s25 = sadd.s32 1, %s4339_s1  ;;  %p3071_p0 = scmp.ge.s32.totalorder %s4343_s2, 1  ;;  %s4343_s2 = sphi %s4390_s2, %s18_s2   ;;  %s4339_s1 = sphi %s4388_s1, %s5611_s1   ;;  %s4335_s24 = sphi %s4386_s24, %s5610_s24  }
   0x3   : > { %p32_p1 = scmp.ge.s32.totalorder %s30_s25, 2  ;;  %p328_p2 = scmp.lt.s32.totalorder %s4343_s2, 3 }
   0x5   : > { %s5613_s25 = smov (%p32_p1, %s30_s25), 0  ;;  %p329_p3 = pnand %p3071_p0, %p328_p2 }
   0x6   : > { %v4249_v0 = vld [vmem:[%s5578_s3 + $0x100] sm:$0xff] (!%p329_p3)   ;;  %v4252_v3 = vld [vmem:[%s5578_s3 + $0x108] sm:$0xff] (!%p329_p3)   ;;  %v4255_v6 = vld [vmem:[%s5578_s3 + $0x110] sm:$0xff] (!%p329_p3)   ;;  %p404_p4 = scmp.lt.s32.totalorder (!%p329_p3), %s4335_s24, 1  ;;  %vm899_vm0 = vcmask (!%p329_p3), 1040384   ;;  %v5592_v29 = vmov (!%p329_p3), 0  }
   0x7   : > { %332 = sbr.rel (%p329_p3) target bundleno = 569 (0x239), region = 44  ;;  %v4412_v1 = vld [vmem:[%s5578_s3 + $0x140] sm:$0xff] (!%p329_p3)   ;;  %3496 = vmatprep.subr.bf16.mxu0 (!%p329_p3), %v4249_v0  ;;  %v4425_v4 = vld [vmem:[%s5578_s3 + $0x148] sm:$0xff] (!%p329_p3)   ;;  %v4437_v7 = vld [vmem:[%s5578_s3 + $0x150] sm:$0xff] (!%p329_p3)   ;;  %vm900_vm1 = vsmask.f32 (!%p329_p3), 256 }
   0x8   : > { %v4251_v2 = vld [vmem:[%s5578_s3 + $0xc0] sm:$0xff] (!%p329_p3)   ;;  %4048 = vmatprep.subr.bf16.mxu1 (!%p329_p3), %v4412_v1  ;;  %v4254_v5 = vld [vmem:[%s5578_s3 + $0xc8] sm:$0xff] (!%p329_p3)   ;;  %v4257_v8 = vld [vmem:[%s5578_s3 + $0xd0] sm:$0xff] (!%p329_p3)   ;;  %v774_v30 = vrot.slane (!%p329_p3), %v5592_v29, 7  ;;  %vm967_vm2 = vsmask.f32 (!%p329_p3), 7424 }
   0x9   : > { %3497 = vmatpush3.bf16.msra.mxu0 (!%p329_p3), %v4251_v2  ;;  %4056 = vmatpush3.bf16.msra.mxu1 (!%p329_p3), %v4412_v1  ;;  %v4258_v9 = vld [vmem:[%s5578_s3 + $0x118] sm:$0xff] (!%p329_p3)   ;;  %v4261_v12 = vld [vmem:[%s5578_s3 + $0x120] sm:$0xff] (!%p329_p3)   ;;  %v4264_v15 = vld [vmem:[%s5578_s3 + $0x128] sm:$0xff] (!%p329_p3)   ;;  %vm966_vm4 = vcmask (!%p329_p3), 1047552  }
   0xa   : > { %3498 = vmatprep.subr.bf16.mxu0 (!%p329_p3), %v4252_v3  ;;  %4049 = vmatprep.subr.bf16.mxu1 (!%p329_p3), %v4425_v4  ;;  %v4450_v10 = vld [vmem:[%s5578_s3 + $0x158] sm:$0xff] (!%p329_p3)   ;;  %v4464_v13 = vld [vmem:[%s5578_s3 + $0x160] sm:$0xff] (!%p329_p3)   ;;  %v4480_v16 = vld [vmem:[%s5578_s3 + $0x168] sm:$0xff] (!%p329_p3)  }
   0xb   : > { %v4260_v11 = vld [vmem:[%s5578_s3 + $0xd8] sm:$0xff] (!%p329_p3)   ;;  %v4263_v14 = vld [vmem:[%s5578_s3 + $0xe0] sm:$0xff] (!%p329_p3)   ;;  %v4266_v17 = vld [vmem:[%s5578_s3 + $0xe8] sm:$0xff] (!%p329_p3)  }
   0xc   : > { %v4267_v18 = vld [vmem:[%s5578_s3 + $0x130] sm:$0xff] (!%p329_p3)   ;;  %v4270_v21 = vld [vmem:[%s5578_s3 + $0x138] sm:$0xff] (!%p329_p3)   ;;  %v4514_v23 = vld [vmem:[%s5579_s4] ss:$0 sm:$0xff] (!%p329_p3) }
   0xd   : > { %3499 = vmatpush3.bf16.msra.mxu0 (!%p329_p3), %v4254_v5  ;;  %4057 = vmatpush3.bf16.msra.mxu1 (!%p329_p3), %v4425_v4  ;;  %v4494_v19 = vld [vmem:[%s5578_s3 + $0x170] sm:$0xff] (!%p329_p3)   ;;  %v4520_v24 = vld [vmem:[%s5578_s3 + $0x178] sm:$0xff] (!%p329_p3)   ;;  %v4528_v31 = vld [vmem:[%s5580_s5] ss:$0 sm:$0xff] (!%p329_p3) }
   0xe   : > { %3500 = vmatprep.subr.bf16.mxu0 %v4255_v6  ;;  %4050 = vmatprep.subr.bf16.mxu1 %v4437_v7  ;;  %s5615_s24 = smov (!%p404_p4, %s4335_s24), 1  ;;  %v4269_v20 = vld [vmem:[%s5578_s3 + $0xf0] sm:$0xff]   ;;  %v4272_v36 = vld [vmem:[%s5578_s3 + $0xf8] sm:$0xff]   ;;  %vm4540_vm3 = vmand %vm899_vm0, %vm900_vm1 }
   0xf   : > { %s3285_s16 = sshll.u32 %s5615_s24, 7  ;;  %v4273_v46 = vld [vmem:[%s5578_s3 + $0x40] sm:$0xff]   ;;  %v4558_v51 = vsel %vm4540_vm3, 0, %v774_v30  ;;  %vm4591_vm5 = vmand %vm966_vm4, %vm967_vm2 }
  0x10   : > { %s4501_s27 = scalar_lea.vmem %s5575_s0, %s3285_s16  ;;  %v5065_v41 = vld [vmem:[%s5578_s3 + $0x200] sm:$0xff]   ;;  %s5493_s17 = scalar_lea.vmem %s5581_s6, %s3285_s16 }
  0x11   : > { %3501 = vmatpush3.bf16.msra.mxu0 %v4257_v8  ;;  %4058 = vmatpush3.bf16.msra.mxu1 %v4437_v7  ;;  %v3323_v22 = vld [vmem:[%s4501_s27] sm:$0xff]   ;;  %v3474_v28 = vld [vmem:[%s4501_s27 + $0x48] sm:$0xff]   ;;  %v3475_v56 = vld [vmem:[%s4501_s27 + $0x50] sm:$0xff]   ;;  %s3080_s16 = sshll.u32 %s5615_s24, 1 }
  0x12   : > { %3502 = vmatprep.subr.bf16.mxu0 %v4258_v9  ;;  %4051 = vmatprep.subr.bf16.mxu1 %v4450_v10  ;;  %v3324_v25 = vunpack.c.l.bf16 %v3323_v22  ;;  %v3325_v26 = vunpack.c.h.bf16 %v3323_v22  ;;  %v3473_v27 = vld [vmem:[%s4501_s27 + $0x40] sm:$0xff]   ;;  %v3360_v34 = vunpack.c.l.bf16 %v3474_v28  ;;  %v3361_v35 = vunpack.c.h.bf16 %v3474_v28  ;;  %v3466_v50 = vld [vmem:[%s4501_s27 + $0x8] sm:$0xff]   ;;  %v3476_v57 = vld [vmem:[%s4501_s27 + $0x58] sm:$0xff]   ;;  %s465_s20 = scalar_lea.vmem %s5582_s7, %s3080_s16 }
  0x13   : > { %v3356_v32 = vunpack.c.l.bf16 %v3473_v27  ;;  %v3357_v33 = vunpack.c.h.bf16 %v3473_v27  ;;  %v3328_v55 = vunpack.c.l.bf16 %v3466_v50  ;;  %v3329_v61 = vunpack.c.h.bf16 %v3466_v50  ;;  %v4275_v50 = vld [vmem:[%s5578_s3 + $0x48] sm:$0xff]  }
  0x14   : > { %v539_v37 = vmul.f32 %v3324_v25, %v4514_v23  ;;  %v540_v38 = vmul.f32 %v3325_v26, %v4514_v23  ;;  %v557_v42 = vmul.f32 %v3360_v34, %v4514_v23  ;;  %v558_v45 = vmul.f32 %v3361_v35, %v4514_v23 }
  0x15   : > { %3503 = vmatpush3.bf16.msra.mxu0 %v4260_v11  ;;  %4059 = vmatpush3.bf16.msra.mxu1 %v4450_v10  ;;  %v555_v39 = vmul.f32 %v3356_v32, %v4514_v23  ;;  %v556_v40 = vmul.f32 %v3357_v33, %v4514_v23  ;;  %v541_v0 = vmul.f32 %v3328_v55, %v4514_v23  ;;  %v3364_v2 = vunpack.c.l.bf16 %v3475_v56  ;;  %v3477_v55 = vld [vmem:[%s4501_s27 + $0x60] sm:$0xff]   ;;  %v4315_v33 = vld [vmem:[%s5578_s3 + $0x210] sm:$0xff]  }
  0x16   : > { %3504 = vmatprep.subr.bf16.mxu0 %v4261_v12  ;;  %4052 = vmatprep.subr.bf16.mxu1 %v4464_v13  ;;  %v578_v43 = vadd.f32 %v4528_v31, %v539_v37  ;;  %v579_v44 = vadd.f32 %v4528_v31, %v540_v38  ;;  %v596_v49 = vadd.f32 %v4528_v31, %v557_v42  ;;  %v3365_v6 = vunpack.c.h.bf16 %v3475_v56 }
  0x17   : > { %v594_v47 = vadd.f32 %v4528_v31, %v555_v39  ;;  %v595_v48 = vadd.f32 %v4528_v31, %v556_v40  ;;  %v597_v54 = vadd.f32 %v4528_v31, %v558_v45  ;;  %v542_v5 = vmul.f32 %v3329_v61, %v4514_v23 }
  0x18   : > { %v610_v52 = vmax.f32 %v578_v43, 0.0  ;;  %v611_v53 = vmax.f32 %v579_v44, 0.0  ;;  %v628_v60 = vmax.f32 %v596_v49, 0.0  ;;  %v3368_v8 = vunpack.c.l.bf16 %v3476_v57  ;;  %v3467_v43 = vld [vmem:[%s4501_s27 + $0x10] sm:$0xff]  }
  0x19   : > { %3505 = vmatpush3.bf16.msra.mxu0 %v4263_v14  ;;  %4060 = vmatpush3.bf16.msra.mxu1 %v4464_v13  ;;  %v626_v58 = vmax.f32 %v594_v47, 0.0  ;;  %v627_v59 = vmax.f32 %v595_v48, 0.0  ;;  %v629_v63 = vmax.f32 %v597_v54, 0.0  ;;  %v580_v14 = vadd.f32 %v4528_v31, %v541_v0 }
  0x1a   : > { %3506 = vmatprep.subr.bf16.mxu0 %v4264_v15  ;;  %4053 = vmatprep.subr.bf16.mxu1 %v4480_v16  ;;  %v4564_v62 = vpack.c.bf16 %v611_v53, %v610_v52  ;;  %v560_v30 = vmul.f32 %v3365_v6, %v4514_v23  ;;  %v561_v37 = vmul.f32 %v3368_v8, %v4514_v23  ;;  %v3333_v0 = vunpack.c.h.bf16 %v3467_v43  ;;  %v3478_v8 = vld [vmem:[%s4501_s27 + $0x68] sm:$0xff]  }
  0x1b   : > { %v4568_v3 = vpack.c.bf16 %v627_v59, %v626_v58  ;;  %v4574_v12 = vpack.c.bf16 %v629_v63, %v628_v60  ;;  %v612_v26 = vmax.f32 %v580_v14, 0.0  ;;  %v3332_v59 = vunpack.c.l.bf16 %v3467_v43  ;;  %v4276_v60 = vld [vmem:[%s5578_s3 + $0x8] sm:$0xff]  }
  0x1c   : > { %1271 = vmatprep.mubr.bf16.mxu0 %v4564_v62  ;;  %v5584_v9 = vshrl.u32 %v4564_v62, 16  ;;  %v5589_v11 = vshll.u32 %v4564_v62, 16  ;;  %v599_v40 = vadd.f32 %v4528_v31, %v560_v30  ;;  %v600_v48 = vadd.f32 %v4528_v31, %v561_v37 }
  0x1d   : > { %3507 = vmatpush3.bf16.msra.mxu0 %v4266_v17  ;;  %4061 = vmatpush3.bf16.msra.mxu1 %v4480_v16  ;;  %v835_v15 = vshrl.u32 %v4568_v3, 16  ;;  %v838_v17 = vshll.u32 %v4568_v3, 16  ;;  %v842_v22 = vshrl.u32 %v4574_v12, 16  ;;  %v845_v25 = vshll.u32 %v4574_v12, 16 }
  0x1e   : > { %3508 = vmatprep.subr.bf16.mxu0 %v4267_v18  ;;  %4054 = vmatprep.subr.bf16.mxu1 %v4494_v19  ;;  %v581_v18 = vadd.f32 %v4528_v31, %v542_v5  ;;  %v631_v52 = vmax.f32 %v599_v40, 0.0  ;;  %v632_v58 = vmax.f32 %v600_v48, 0.0  ;;  %v3372_v5 = vunpack.c.l.bf16 %v3477_v55 }
  0x1f   : > { %v936_v27 = vrot.slane %v838_v17, 1  ;;  %v938_v35 = vrot.slane %v845_v25, 1  ;;  %v3373_v6 = vunpack.c.h.bf16 %v3477_v55 }
  0x20   : > { %v613_v28 = vmax.f32 %v581_v18, 0.0  ;;  %v563_v30 = vmul.f32 %v3372_v5, %v4514_v23 }
  0x21   : > { %3509 = vmatpush3.bf16.msra.mxu0 %v4269_v20  ;;  %4062 = vmatpush3.bf16.msra.mxu1 %v4494_v19  ;;  %v559_v20 = vmul.f32 %v3364_v2, %v4514_v23  ;;  %v937_v38 = vor.u32 %v936_v27, %v835_v15  ;;  %v939_v45 = vor.u32 %v938_v35, %v842_v22 }
  0x22   : > { %3510 = vmatprep.subr.bf16.mxu0 %v4270_v21  ;;  %4055 = vmatprep.subr.bf16.mxu1 %v4520_v24  ;;  %v781_v21 = vrot.slane %v5584_v9, 7  ;;  %v4602_v39 = vpack.c.bf16 %v613_v28, %v612_v26  ;;  %v543_v2 = vmul.f32 %v3332_v59, %v4514_v23  ;;  %v544_v26 = vmul.f32 %v3333_v0, %v4514_v23 }
  0x23   : > { %v598_v32 = vadd.f32 %v4528_v31, %v559_v20  ;;  %v4619_v49 = vsel %vm4591_vm5, %v937_v38, 0  ;;  %v4631_v56 = vsel %vm4591_vm5, %v939_v45, 0  ;;  %v3376_v38 = vunpack.c.l.bf16 %v3478_v8 }
  0x24   : > { %v784_v34 = vor.u32 %v5589_v11, %v781_v21  ;;  %v5587_v53 = vshrl.u32 %v4602_v39, 16  ;;  %v789_v54 = vshll.u32 %v4602_v39, 16  ;;  %3936 = vmatprep.mubr.bf16.mxu1 %v4619_v49  ;;  %v4277_v21 = vld [vmem:[%s5578_s3 + $0x50] sm:$0xff]   ;;  %v582_v28 = vadd.f32 %v4528_v31, %v543_v2 }
  0x25   : > { %3511 = vmatpush3.bf16.msra.mxu0 %v4272_v36  ;;  %4063 = vmatpush3.bf16.msra.mxu1 %v4520_v24  ;;  %v3369_v36 = vunpack.c.h.bf16 %v3476_v57  ;;  %v630_v42 = vmax.f32 %v598_v32, 0.0  ;;  %v564_v32 = vmul.f32 %v3373_v6, %v4514_v23  ;;  %v583_v37 = vadd.f32 %v4528_v31, %v544_v26  ;;  %v4281_v6 = vld [vmem:[%s5578_s3 + $0x60] sm:$0xff]  }
  0x26   : > { %3904 = vmatprep.subr.bf16.mxu0 %v4412_v1  ;;  %3632 = vmatprep.subr.bf16.mxu1 %v4273_v46  ;;  %v4608_v44 = vsel %vm4540_vm3, 0, %v784_v34  ;;  %v4274_v46 = vld [vmem:[%s5578_s3] sm:$0xff]   ;;  %v788_v63 = vrot.slane %v5587_v53, 7  ;;  %v3468_v34 = vld [vmem:[%s4501_s27 + $0x18] sm:$0xff]   ;;  %v614_v43 = vmax.f32 %v582_v28, 0.0  ;;  %v602_v45 = vadd.f32 %v4528_v31, %v563_v30 }
  0x27   : > { %v562_v47 = vmul.f32 %v3369_v36, %v4514_v23  ;;  %v4640_v61 = vpack.c.bf16 %v631_v52, %v630_v42  ;;  %v615_v48 = vmax.f32 %v583_v37, 0.0  ;;  %v3377_v52 = vunpack.c.h.bf16 %v3478_v8 }
  0x28   : > { %1272 = vmatmul.mubr.bf16.vlgmr.msra.gmra.mrb[0].mxu0 %v4608_v44  ;;  %3937 = vmatmul.mubr.bf16.vlgmr.msra.gmra.mrb[0].mxu1 %v4631_v56  ;;  %v791_v20 = vor.u32 %v789_v54, %v788_v63  ;;  %v565_v59 = vmul.f32 %v3376_v38, %v4514_v23  ;;  %v3337_v8 = vunpack.c.h.bf16 %v3468_v34  ;;  %v4282_v38 = vld [vmem:[%s5578_s3 + $0x20] sm:$0xff]  }
  0x29   : > { %3905 = vmatpush3.bf16.msra.mxu0 %v4412_v1  ;;  %v601_v57 = vadd.f32 %v4528_v31, %v562_v47  ;;  %1279 = vmatprep.mubr.bf16.mxu0 %v4602_v39  ;;  %v849_v14 = vshrl.u32 %v4640_v61, 16  ;;  %v852_v18 = vshll.u32 %v4640_v61, 16  ;;  %v4279_v47 = vld [vmem:[%s5578_s3 + $0x58] sm:$0xff]   ;;  %v4694_v0 = vpack.c.bf16 %v615_v48, %v614_v43 }
  0x2a   : > { %3633 = vmatpush3.bf16.msra.mxu1 %v4274_v46  ;;  %3906 = vmatprep.subr.bf16.mxu0 %v4425_v4  ;;  %v4666_v36 = vsel %vm4540_vm3, 0, %v791_v20  ;;  %v566_v2 = vmul.f32 %v3377_v52, %v4514_v23 }
  0x2b   : > { %v633_v1 = vmax.f32 %v601_v57, 0.0  ;;  %3634 = vmatprep.subr.bf16.mxu1 %v4275_v50  ;;  %v940_v35 = vrot.slane %v852_v18, 1  ;;  %v603_v50 = vadd.f32 %v4528_v31, %v564_v32  ;;  %v4280_v57 = vld [vmem:[%s5578_s3 + $0x18] sm:$0xff]   ;;  %v5583_v26 = vshrl.u32 %v4694_v0, 16  ;;  %v3479_v32 = vld [vmem:[%s4501_s27 + $0x70] sm:$0xff]  }
  0x2c   : > { %v5586_v28 = vshll.u32 %v4694_v0, 16  ;;  %v605_v30 = vadd.f32 %v4528_v31, %v566_v2 }
  0x2d   : > { %v4655_v27 = vpack.c.bf16 %v633_v1, %v632_v58  ;;  %3907 = vmatpush3.bf16.msra.mxu0 %v4425_v4  ;;  %v4278_v4 = vld [vmem:[%s5578_s3 + $0x10] sm:$0xff]   ;;  %v941_v46 = vor.u32 %v940_v35, %v849_v14  ;;  %v634_v58 = vmax.f32 %v602_v45, 0.0  ;;  %v635_v1 = vmax.f32 %v603_v50, 0.0  ;;  %v3480_v35 = vld [vmem:[%s4501_s27 + $0x78] sm:$0xff]   ;;  %v4283_v50 = vld [vmem:[%s5578_s3 + $0x68] sm:$0xff]  }
  0x2e   : > { %3908 = vmatprep.subr.bf16.mxu0 %v4437_v7  ;;  %3635 = vmatpush3.bf16.msra.mxu1 %v4276_v60  ;;  %v3336_v60 = vunpack.c.l.bf16 %v3468_v34  ;;  %v637_v48 = vmax.f32 %v605_v30, 0.0  ;;  %v3384_v2 = vunpack.c.l.bf16 %v3480_v35  ;;  %v3385_v30 = vunpack.c.h.bf16 %v3480_v35 }
  0x2f   : > { %v856_v40 = vshrl.u32 %v4655_v27, 16  ;;  %v859_v42 = vshll.u32 %v4655_v27, 16  ;;  %3636 = vmatprep.subr.bf16.mxu1 %v4277_v21  ;;  %v4692_v63 = vsel %vm4591_vm5, %v941_v46, 0  ;;  %v4707_v21 = vpack.c.bf16 %v635_v1, %v634_v58 }
  0x30   : > { %1280 = vmatmul.mubr.bf16.gmra.mrb[4].mxu0 %v4666_v36  ;;  %3940 = vmatprep.mubr.bf16.mxu1 %v4692_v63  ;;  %v545_v20 = vmul.f32 %v3336_v60, %v4514_v23  ;;  %v3381_v58 = vunpack.c.h.bf16 %v3479_v32 }
  0x31   : > { %v942_v55 = vrot.slane %v859_v42, 1  ;;  %3909 = vmatpush3.bf16.msra.mxu0 %v4437_v7  ;;  %v604_v7 = vadd.f32 %v4528_v31, %v565_v59  ;;  %1287 = vmatprep.mubr.bf16.mxu0 %v4694_v0  ;;  %v863_v45 = vshrl.u32 %v4707_v21, 16  ;;  %v866_v46 = vshll.u32 %v4707_v21, 16 }
  0x32   : > { %3910 = vmatprep.subr.bf16.mxu0 %v4450_v10  ;;  %3637 = vmatpush3.bf16.msra.mxu1 %v4278_v4  ;;  %v546_v4 = vmul.f32 %v3337_v8, %v4514_v23  ;;  %v584_v43 = vadd.f32 %v4528_v31, %v545_v20  ;;  %v568_v20 = vmul.f32 %v3381_v58, %v4514_v23 }
  0x33   : > { %v943_v5 = vor.u32 %v942_v55, %v856_v40  ;;  %3638 = vmatprep.subr.bf16.mxu1 %v4279_v47  ;;  %v636_v34 = vmax.f32 %v604_v7, 0.0  ;;  %v795_v47 = vrot.slane %v5583_v26, 7  ;;  %v3380_v55 = vunpack.c.l.bf16 %v3479_v32  ;;  %v4287_v26 = vld [vmem:[%s5578_s3 + $0x78] sm:$0xff]  }
  0x34   : > { %v616_v52 = vmax.f32 %v584_v43, 0.0  ;;  %v944_v59 = vrot.slane %v866_v46, 1  ;;  %v4285_v43 = vld [vmem:[%s5578_s3 + $0x70] sm:$0xff]  }
  0x35   : > { %v4716_v37 = vsel %vm4591_vm5, %v943_v5, 0  ;;  %3911 = vmatpush3.bf16.msra.mxu0 %v4450_v10  ;;  %v585_v10 = vadd.f32 %v4528_v31, %v546_v4  ;;  %v798_v60 = vor.u32 %v5586_v28, %v795_v47  ;;  %v4738_v1 = vpack.c.bf16 %v637_v48, %v636_v34  ;;  %v4284_v5 = vld [vmem:[%s5578_s3 + $0x28] sm:$0xff]   ;;  %v3472_v28 = vld [vmem:[%s4501_s27 + $0x38] sm:$0xff]  }
  0x36   : > { %3941 = vmatmul.mubr.bf16.gmra.mrb[4].mxu1 %v4716_v37  ;;  %3912 = vmatprep.subr.bf16.mxu0 %v4464_v13  ;;  %v567_v8 = vmul.f32 %v3380_v55, %v4514_v23  ;;  %v945_v32 = vor.u32 %v944_v59, %v863_v45  ;;  %v607_v47 = vadd.f32 %v4528_v31, %v568_v20  ;;  %v4286_v20 = vld [vmem:[%s5578_s3 + $0x30] sm:$0xff]  }
  0x37   : > { %3639 = vmatpush3.bf16.msra.mxu1 %v4280_v57  ;;  %v3469_v57 = vld [vmem:[%s4501_s27 + $0x20] sm:$0xff]   ;;  %v617_v7 = vmax.f32 %v585_v10, 0.0  ;;  %v870_v34 = vshrl.u32 %v4738_v1, 16  ;;  %v5591_v4 = vshll.u32 %v4738_v1, 16  ;;  %v3470_v10 = vld [vmem:[%s4501_s27 + $0x28] sm:$0xff]   ;;  %v569_v59 = vmul.f32 %v3384_v2, %v4514_v23 }
  0x38   : > { %3640 = vmatprep.subr.bf16.mxu1 %v4281_v6  ;;  %v4751_v6 = vsel %vm4540_vm3, 0, %v798_v60  ;;  %v606_v35 = vadd.f32 %v4528_v31, %v567_v8  ;;  %v3340_v48 = vunpack.c.l.bf16 %v3469_v57  ;;  %v4767_v55 = vsel %vm4591_vm5, %v945_v32, 0 }
  0x39   : > { %3913 = vmatpush3.bf16.msra.mxu0 %v4464_v13  ;;  %v4760_v13 = vpack.c.bf16 %v617_v7, %v616_v52  ;;  %v946_v58 = vrot.slane %v5591_v4, 1  ;;  %3944 = vmatprep.mubr.bf16.mxu1 %v4767_v55  ;;  %v639_v60 = vmax.f32 %v607_v47, 0.0  ;;  %v608_v2 = vadd.f32 %v4528_v31, %v569_v59 }
  0x3a   : > { %3914 = vmatprep.subr.bf16.mxu0 %v4480_v16  ;;  %1288 = vmatmul.mubr.bf16.gmra.mrb[8].mxu0 %v4751_v6  ;;  %v638_v52 = vmax.f32 %v606_v35, 0.0  ;;  %v3341_v32 = vunpack.c.h.bf16 %v3469_v57  ;;  %v3344_v9 = vunpack.c.l.bf16 %v3470_v10 }
  0x3b   : > { %3641 = vmatpush3.bf16.msra.mxu1 %v4282_v38  ;;  %v570_v38 = vmul.f32 %v3385_v30, %v4514_v23  ;;  %1295 = vmatprep.mubr.bf16.mxu0 %v4760_v13  ;;  %v5585_v7 = vshrl.u32 %v4760_v13, 16  ;;  %v5588_v8 = vshll.u32 %v4760_v13, 16 }
  0x3c   : > { %3642 = vmatprep.subr.bf16.mxu1 %v4283_v50  ;;  %v947_v50 = vor.u32 %v946_v58, %v870_v34  ;;  %v4785_v35 = vpack.c.bf16 %v639_v60, %v638_v52  ;;  %v547_v58 = vmul.f32 %v3340_v48, %v4514_v23  ;;  %v548_v59 = vmul.f32 %v3341_v32, %v4514_v23 }
  0x3d   : > { %v609_v30 = vadd.f32 %v4528_v31, %v570_v38  ;;  %3915 = vmatpush3.bf16.msra.mxu0 %v4480_v16  ;;  %v802_v47 = vrot.slane %v5585_v7, 7  ;;  %v640_v16 = vmax.f32 %v608_v2, 0.0  ;;  %v3471_v38 = vld [vmem:[%s4501_s27 + $0x30] sm:$0xff]   ;;  %v3345_v32 = vunpack.c.h.bf16 %v3470_v10  ;;  %v4296_v10 = vld [vmem:[%s5578_s3 + $0x1c0] sm:$0xff]  }
  0x3e   : > { %3916 = vmatprep.subr.bf16.mxu0 %v4494_v19  ;;  %v4796_v57 = vsel %vm4591_vm5, %v947_v50, 0  ;;  %v877_v52 = vshrl.u32 %v4785_v35, 16  ;;  %v5590_v48 = vshll.u32 %v4785_v35, 16  ;;  %v4288_v50 = vld [vmem:[%s5578_s3 + $0x38] sm:$0xff]   ;;  %v586_v2 = vadd.f32 %v4528_v31, %v547_v58 }
  0x3f   : > { %3643 = vmatpush3.bf16.msra.mxu1 %v4284_v5  ;;  %v641_v5 = vmax.f32 %v609_v30, 0.0  ;;  %v805_v60 = vor.u32 %v5588_v8, %v802_v47  ;;  %v549_v7 = vmul.f32 %v3344_v9, %v4514_v23  ;;  %v3348_v58 = vunpack.c.l.bf16 %v3471_v38 }
  0x40   : > { %3644 = vmatprep.subr.bf16.mxu1 %v4285_v43  ;;  %3945 = vmatmul.mubr.bf16.gmra.mrb[8].mxu1 %v4796_v57  ;;  %v587_v43 = vadd.f32 %v4528_v31, %v548_v59  ;;  %v948_v53 = vrot.slane %v5590_v48, 1  ;;  %v618_v8 = vmax.f32 %v586_v2, 0.0  ;;  %v4834_v59 = vld [vmem:[%s5578_s3 + $0x80] sm:$0xff]   ;;  %v3349_v2 = vunpack.c.h.bf16 %v3471_v38 }
  0x41   : > { %v4809_v30 = vpack.c.bf16 %v641_v5, %v640_v16  ;;  %3917 = vmatpush3.bf16.msra.mxu0 %v4494_v19  ;;  %v4819_v47 = vsel %vm4540_vm3, 0, %v805_v60  ;;  %v550_v5 = vmul.f32 %v3345_v32, %v4514_v23  ;;  %v588_v60 = vadd.f32 %v4528_v31, %v549_v7 }
  0x42   : > { %3918 = vmatprep.subr.bf16.mxu0 %v4520_v24  ;;  %1296 = vmatmul.mubr.bf16.gmra.mrb[12].mxu0 %v4819_v47  ;;  %v619_v16 = vmax.f32 %v587_v43, 0.0  ;;  %v551_v11 = vmul.f32 %v3348_v58, %v4514_v23  ;;  %v3352_v32 = vunpack.c.l.bf16 %v3472_v28  ;;  %v552_v7 = vmul.f32 %v3349_v2, %v4514_v23 }
  0x43   : > { %3645 = vmatpush3.bf16.msra.mxu1 %v4286_v20  ;;  %v1034_v19 = vshrl.u32 %v4809_v30, 16  ;;  %v1037_v9 = vshll.u32 %v4809_v30, 16  ;;  %v949_v20 = vor.u32 %v948_v53, %v877_v52  ;;  %v589_v43 = vadd.f32 %v4528_v31, %v550_v5 }
  0x44   : > { %3646 = vmatprep.subr.bf16.mxu1 %v4287_v26  ;;  %v4840_v26 = vpack.c.bf16 %v619_v16, %v618_v8  ;;  %v620_v4 = vmax.f32 %v588_v60, 0.0  ;;  %v590_v38 = vadd.f32 %v4528_v31, %v551_v11  ;;  %v553_v11 = vmul.f32 %v3352_v32, %v4514_v23 }
  0x45   : > { %v1042_v48 = vrot.slane %v1037_v9, 1  ;;  %3919 = vmatpush3.bf16.msra.mxu0 %v4520_v24  ;;  %v4846_v53 = vsel %vm4591_vm5, %v949_v20, 0  ;;  %v621_v16 = vmax.f32 %v589_v43, 0.0  ;;  %v3353_v20 = vunpack.c.h.bf16 %v3472_v28 }
  0x46   : > { %3768 = vmatprep.subr.bf16.mxu0 %v4296_v10  ;;  %3948 = vmatprep.mubr.bf16.mxu1 %v4846_v53  ;;  %v807_v24 = vshrl.u32 %v4840_v26, 16  ;;  %v810_v58 = vshll.u32 %v4840_v26, 16  ;;  %v622_v5 = vmax.f32 %v590_v38, 0.0  ;;  %v837_v2 = vrot.slane %v835_v15, 7 }
  0x47   : > { %3647 = vmatpush3.bf16.msra.mxu1 %v4288_v50  ;;  %v1043_v8 = vor.u32 %v1042_v48, %v1034_v19  ;;  %1303 = vmatprep.mubr.bf16.mxu0 %v4840_v26  ;;  %v591_v50 = vadd.f32 %v4528_v31, %v552_v7  ;;  %v4865_v60 = vpack.c.bf16 %v621_v16, %v620_v4  ;;  %v844_v32 = vrot.slane %v842_v22, 7 }
  0x48   : > { %3952 = vmatprep.subr.bf16.mxu1 %v4834_v59  ;;  %v809_v48 = vrot.slane %v807_v24, 7  ;;  %v554_v7 = vmul.f32 %v3353_v20, %v4514_v23  ;;  %v592_v28 = vadd.f32 %v4528_v31, %v553_v11  ;;  %v840_v15 = vor.u32 %v838_v17, %v837_v2 }
  0x49   : > { %v4861_v10 = vsel %vm4591_vm5, %v1043_v8, 0  ;;  %v623_v43 = vmax.f32 %v591_v50, 0.0  ;;  %v814_v4 = vshrl.u32 %v4865_v60, 16  ;;  %v817_v8 = vshll.u32 %v4865_v60, 16 }
  0x4a   : > { %3949 = vmatmul.mubr.bf16.gmra.mrb[12].mxu1 %v4861_v10  ;;  %v812_v38 = vor.u32 %v810_v58, %v809_v48  ;;  %v593_v23 = vadd.f32 %v4528_v31, %v554_v7  ;;  %v624_v50 = vmax.f32 %v592_v28, 0.0  ;;  %v847_v22 = vor.u32 %v845_v25, %v844_v32 }
  0x4b   : > { %1737 = vmatprep.mubr.bf16.mxu1 %v5592_v29  ;;  %v4881_v16 = vpack.c.bf16 %v623_v43, %v622_v5  ;;  %v816_v11 = vrot.slane %v814_v4, 7  ;;  %v4894_v48 = vsel %vm4540_vm3, 0, %v840_v15  ;;  %v851_v17 = vrot.slane %v849_v14, 7 }
  0x4c   : > { %v4888_v20 = vsel %vm4540_vm3, 0, %v812_v38  ;;  %v625_v5 = vmax.f32 %v593_v23, 0.0  ;;  %v4903_v2 = vsel %vm4540_vm3, 0, %v847_v22  ;;  %v858_v14 = vrot.slane %v856_v40, 7  ;;  %v4290_v38 = vld [vmem:[%s5578_s3 + $0x88] sm:$0xff]  }
  0x4d   : > { %1304 = vmatmul.mubr.bf16.gmra.mrb[16].mxu0 %v4888_v20  ;;  %v5594_v31 = vshrl.u32 %v4881_v16, 16  ;;  %v824_v25 = vshll.u32 %v4881_v16, 16  ;;  %v819_v43 = vor.u32 %v817_v8, %v816_v11  ;;  %v854_v7 = vor.u32 %v852_v18, %v851_v17 }
  0x4e   : > { %1311 = vmatprep.mubr.bf16.mxu0 %v4865_v60  ;;  %v865_v28 = vrot.slane %v863_v45, 7  ;;  %v4917_v15 = vpack.c.bf16 %v625_v5, %v624_v50  ;;  %v872_v23 = vrot.slane %v870_v34, 7  ;;  %v879_v18 = vrot.slane %v877_v52, 7 }
  0x4f   : > { %v823_v32 = vrot.slane %v5594_v31, 7  ;;  %v922_v40 = vrot.slane %v789_v54, 1  ;;  %v4927_v45 = vsel %vm4540_vm3, 0, %v854_v7  ;;  %v861_v22 = vor.u32 %v859_v42, %v858_v14  ;;  %v4291_v7 = vld [vmem:[%s5578_s3 + $0x90] sm:$0xff]  }
  0x50   : > { %v868_v50 = vor.u32 %v866_v46, %v865_v28  ;;  %v4936_v34 = vsel %vm4540_vm3, 0, %v819_v43  ;;  %v5599_v52 = vshll.u32 %v4738_v1, 16  ;;  %v5600_v46 = vshll.u32 %v4785_v35, 16 }
  0x51   : > { %v4944_v54 = vsel %vm4540_vm3, 0, %v861_v22  ;;  %v1036_v5 = vrot.slane %v1034_v19, 7  ;;  %v826_v43 = vor.u32 %v824_v25, %v823_v32  ;;  %v5601_v28 = vshll.u32 %v4564_v62, 16 }
  0x52   : > { %1738 = vmatmul.mubr.bf16.vlgmr.msra.gmra.mrb[16].mxu1 %v4558_v51  ;;  %v875_v11 = vor.u32 %v5599_v52, %v872_v23  ;;  %v4948_v42 = vsel %vm4540_vm3, 0, %v868_v50  ;;  %v882_v17 = vor.u32 %v5600_v46, %v879_v18  ;;  %v5602_v32 = vshrl.u32 %v4602_v39, 16 }
  0x53   : > { %3953 = vmatpush3.bf16.msra.mxu1 %v4834_v59  ;;  %1745 = vmatprep.mubr.bf16.mxu1 %v4564_v62  ;;  %v828_v59 = vshrl.u32 %v4917_v15, 16  ;;  %v920_v23 = vrot.slane %v5601_v28, 1  ;;  %v1039_v19 = vor.u32 %v1037_v9, %v1036_v5  ;;  %v5603_v50 = vshll.u32 %v4694_v0, 16 }
  0x54   : > { %3954 = vmatprep.subr.bf16.mxu1 %v4290_v38  ;;  %v4960_v14 = vsel %vm4540_vm3, 0, %v875_v11  ;;  %v4966_v18 = vsel %vm4540_vm3, 0, %v882_v17  ;;  %v923_v22 = vor.u32 %v922_v40, %v5602_v32  ;;  %v831_v11 = vshll.u32 %v4917_v15, 16 }
  0x55   : > { %v924_v52 = vrot.slane %v5603_v50, 1  ;;  %1312 = vmatmul.mubr.bf16.gmra.mrb[20].mxu0 %v4936_v34  ;;  %v5604_v46 = vshrl.u32 %v4564_v62, 16  ;;  %v5605_v29 = vshll.u32 %v4760_v13, 16  ;;  %v928_v31 = vrot.slane %v810_v58, 1 }
  0x56   : > { %1319 = vmatprep.mubr.bf16.mxu0 %v4881_v16  ;;  %v4985_v9 = vsel %vm4540_vm3, 0, %v1039_v19  ;;  %v4989_v40 = vsel %vm4591_vm5, %v923_v22, 0  ;;  %v5606_v62 = vshrl.u32 %v4694_v0, 16  ;;  %v932_v50 = vrot.slane %v824_v25, 1 }
  0x57   : > { %v921_v28 = vor.u32 %v920_v23, %v5604_v46  ;;  %v926_v17 = vrot.slane %v5605_v29, 1  ;;  %3955 = vmatpush3.bf16.msra.mxu1 %v4290_v38  ;;  %v930_v23 = vrot.slane %v817_v8, 1  ;;  %v4292_v29 = vld [vmem:[%s5578_s3 + $0x98] sm:$0xff]   ;;  %v5607_v38 = vshrl.u32 %v4760_v13, 16 }
  0x58   : > { %v925_v5 = vor.u32 %v924_v52, %v5606_v62  ;;  %3956 = vmatprep.subr.bf16.mxu1 %v4291_v7  ;;  %v929_v32 = vor.u32 %v928_v31, %v807_v24  ;;  %v934_v52 = vrot.slane %v831_v11, 1  ;;  %v5013_v46 = vsel %vm4540_vm3, 0, %v826_v43 }
  0x59   : > { %v4998_v58 = vsel %vm4591_vm5, %v921_v28, 0  ;;  %v927_v19 = vor.u32 %v926_v17, %v5607_v38  ;;  %v931_v8 = vor.u32 %v930_v23, %v814_v4  ;;  %v830_v31 = vrot.slane %v828_v59, 7  ;;  %v4293_v17 = vld [vmem:[%s5578_s3 + $0xa0] sm:$0xff]  }
  0x5a   : > { %v5006_v22 = vsel %vm4591_vm5, %v925_v5, 0  ;;  %1746 = vmatmul.mubr.bf16.gmra.mrb[20].mxu1 %v4608_v44  ;;  %v5021_v24 = vsel %vm4591_vm5, %v929_v32, 0  ;;  %v5608_v44 = vshrl.u32 %v4881_v16, 16  ;;  %v935_v43 = vor.u32 %v934_v52, %v828_v59  ;;  %v4294_v59 = vld [vmem:[%s5578_s3 + $0xa8] sm:$0xff]   ;;  %v4297_v38 = vld [vmem:[%s5578_s3 + $0x180] sm:$0xff]   ;;  %v4302_v52 = vld [vmem:[%s5578_s3 + $0x1d8] sm:$0xff]  }
  0x5b   : > { %v5017_v28 = vsel %vm4591_vm5, %v927_v19, 0  ;;  %1753 = vmatprep.mubr.bf16.mxu1 %v4602_v39  ;;  %3957 = vmatpush3.bf16.msra.mxu1 %v4291_v7  ;;  %v5026_v4 = vsel %vm4591_vm5, %v931_v8, 0  ;;  %v833_v5 = vor.u32 %v831_v11, %v830_v31  ;;  %v4295_v11 = vld [vmem:[%s5578_s3 + $0xb0] sm:$0xff]   ;;  %v4298_v19 = vld [vmem:[%s5578_s3 + $0x1c8] sm:$0xff]   ;;  %v4303_v31 = vld [vmem:[%s5578_s3 + $0x198] sm:$0xff]  }
  0x5c   : > { %v933_v25 = vor.u32 %v932_v50, %v5608_v44  ;;  %3958 = vmatprep.subr.bf16.mxu1 %v4292_v29  ;;  %v5039_v7 = vsel %vm4591_vm5, %v935_v43, 0  ;;  %v4299_v32 = vld [vmem:[%s5578_s3 + $0x188] sm:$0xff]   ;;  %v4300_v8 = vld [vmem:[%s5578_s3 + $0x1d0] sm:$0xff]   ;;  %v4305_v44 = vld [vmem:[%s5578_s3 + $0x1e0] sm:$0xff]  }
  0x5d   : > { %1320 = vmatmul.mubr.bf16.gmra.mrb[24].mxu0 %v5013_v46  ;;  %v5050_v23 = vsel %vm4540_vm3, 0, %v833_v5  ;;  %v4301_v50 = vld [vmem:[%s5578_s3 + $0x190] sm:$0xff]   ;;  %v4307_v43 = vld [vmem:[%s5578_s3 + $0x1e8] sm:$0xff]  }
  0x5e   : > { %v5035_v62 = vsel %vm4591_vm5, %v933_v25, 0  ;;  %1327 = vmatprep.mubr.bf16.mxu0 %v4917_v15  ;;  %v4306_v25 = vld [vmem:[%s5578_s3 + $0x1a0] sm:$0xff]   ;;  %v4309_v5 = vld [vmem:[%s5578_s3 + $0x1f0] sm:$0xff]  }
  0x5f   : > { %3959 = vmatpush3.bf16.msra.mxu1 %v4292_v29  ;;  %v4304_v29 = vld [vmem:[%s5578_s3 + $0xb8] sm:$0xff]  }
  0x60   : > { %3960 = vmatprep.subr.bf16.mxu1 %v4293_v17 }
  0x62   : > { %1754 = vmatmul.mubr.bf16.gmra.mrb[24].mxu1 %v4666_v36 }
  0x63   : > { %1761 = vmatprep.mubr.bf16.mxu1 %v4694_v0  ;;  %3961 = vmatpush3.bf16.msra.mxu1 %v4293_v17  ;;  %v4308_v17 = vld [vmem:[%s5578_s3 + $0x1a8] sm:$0xff]  }
  0x64   : > { %3962 = vmatprep.subr.bf16.mxu1 %v4294_v59 }
  0x65   : > { %1328 = vmatmul.mubr.bf16.gmra.mrb[28].mxu0 %v5050_v23 }
  0x66   : > { %1335 = vmatprep.mubr.bf16.mxu0 %v4568_v3 }
  0x67   : > { %3963 = vmatpush3.bf16.msra.mxu1 %v4294_v59  ;;  %v4310_v59 = vld [vmem:[%s5578_s3 + $0x1b0] sm:$0xff]  }
  0x68   : > { %3964 = vmatprep.subr.bf16.mxu1 %v4295_v11 }
  0x6a   : > { %1762 = vmatmul.mubr.bf16.gmra.mrb[28].mxu1 %v4751_v6 }
  0x6b   : > { %1769 = vmatprep.mubr.bf16.mxu1 %v4760_v13  ;;  %3965 = vmatpush3.bf16.msra.mxu1 %v4295_v11  ;;  %v4311_v11 = vld [vmem:[%s5578_s3 + $0x1f8] sm:$0xff]  }
  0x6c   : > { %3966 = vmatprep.subr.bf16.mxu1 %v4304_v29 }
  0x6d   : > { %1336 = vmatmul.mubr.bf16.gmra.mrb[32].mxu0 %v4894_v48 }
  0x6e   : > { %1343 = vmatprep.mubr.bf16.mxu0 %v4574_v12 }
  0x6f   : > { %3967 = vmatpush3.bf16.msra.mxu1 %v4304_v29  ;;  %v5609_v29 = vmov 0  }
  0x70   : > { %4000 = vmatprep.subr.bf16.mxu1 %v5065_v41 }
  0x72   : > { %1770 = vmatmul.mubr.bf16.gmra.mrb[32].mxu1 %v4819_v47 }
  0x73   : > { %1777 = vmatprep.mubr.bf16.mxu1 %v4840_v26 }
  0x75   : > { %1344 = vmatmul.mubr.bf16.gmra.mrb[36].mxu0 %v4903_v2 }
  0x76   : > { %1351 = vmatprep.mubr.bf16.mxu0 %v4640_v61 }
  0x7a   : > { %1778 = vmatmul.mubr.bf16.gmra.mrb[36].mxu1 %v4888_v20 }
  0x7b   : > { %1785 = vmatprep.mubr.bf16.mxu1 %v4865_v60 }
  0x7d   : > { %1352 = vmatmul.mubr.bf16.gmra.mrb[40].mxu0 %v4927_v45 }
  0x7e   : > { %1359 = vmatprep.mubr.bf16.mxu0 %v4655_v27 }
  0x82   : > { %1786 = vmatmul.mubr.bf16.gmra.mrb[40].mxu1 %v4936_v34 }
  0x83   : > { %1793 = vmatprep.mubr.bf16.mxu1 %v4881_v16 }
  0x85   : > { %1360 = vmatmul.mubr.bf16.gmra.mrb[44].mxu0 %v4944_v54 }
  0x86   : > { %1367 = vmatprep.mubr.bf16.mxu0 %v4707_v21 }
  0x8a   : > { %1794 = vmatmul.mubr.bf16.gmra.mrb[44].mxu1 %v5013_v46 }
  0x8b   : > { %1801 = vmatprep.mubr.bf16.mxu1 %v4917_v15 }
  0x8d   : > { %1368 = vmatmul.mubr.bf16.gmra.mrb[48].mxu0 %v4948_v42 }
  0x8e   : > { %1375 = vmatprep.mubr.bf16.mxu0 %v4738_v1 }
  0x92   : > { %1802 = vmatmul.mubr.bf16.gmra.mrb[48].mxu1 %v5050_v23 }
  0x93   : > { %1809 = vmatprep.mubr.bf16.mxu1 %v4568_v3 }
  0x95   : > { %1376 = vmatmul.mubr.bf16.gmra.mrb[52].mxu0 %v4960_v14 }
  0x96   : > { %1383 = vmatprep.mubr.bf16.mxu0 %v4785_v35 }
  0x9a   : > { %1810 = vmatmul.mubr.bf16.gmra.mrb[52].mxu1 %v4894_v48 }
  0x9b   : > { %1817 = vmatprep.mubr.bf16.mxu1 %v4574_v12 }
  0x9d   : > { %1384 = vmatmul.mubr.bf16.gmra.mrb[56].mxu0 %v4966_v18 }
  0x9e   : > { %1391 = vmatprep.mubr.bf16.mxu0 %v4809_v30 }
  0xa2   : > { %1818 = vmatmul.mubr.bf16.gmra.mrb[56].mxu1 %v4903_v2 }
  0xa3   : > { %1825 = vmatprep.mubr.bf16.mxu1 %v4640_v61 }
  0xa5   : > { %1392 = vmatmul.mubr.bf16.gmra.mrb[60].mxu0 %v4985_v9 }
  0xa6   : > { %3920 = vmatprep.mubr.bf16.mxu0 %v4998_v58 }
  0xaa   : > { %1826 = vmatmul.mubr.bf16.gmra.mrb[60].mxu1 %v4927_v45 }
  0xab   : > { %1833 = vmatprep.mubr.bf16.mxu1 %v4655_v27 }
  0xad   : > { %3921 = vmatmul.mubr.bf16.vlgmr.msra.gmra.mrb[64].mxu0 %v4989_v40 }
  0xae   : > { %3769 = vmatpush3.bf16.msra.mxu0 %v4297_v38  ;;  %3924 = vmatprep.mubr.bf16.mxu0 %v5006_v22  ;;  %v918_v38 = vrot.slane %v5609_v29, 1 }
  0xaf   : > { %3770 = vmatprep.subr.bf16.mxu0 %v4298_v19  ;;  %v4312_v19 = vld [vmem:[%s5578_s3 + $0x1b8] sm:$0xff]  }
  0xb2   : > { %1834 = vmatmul.mubr.bf16.gmra.mrb[64].mxu1 %v4944_v54  ;;  %3771 = vmatpush3.bf16.msra.mxu0 %v4299_v32  ;;  %v5162_v32 = vsel %vm4591_vm5, %v918_v38, 0 }
  0xb3   : > { %1841 = vmatprep.mubr.bf16.mxu1 %v4707_v21  ;;  %3772 = vmatprep.subr.bf16.mxu0 %v4300_v8  ;;  %v4314_v8 = vld [vmem:[%s5578_s3 + $0x208] sm:$0xff]  }
  0xb5   : > { %3925 = vmatmul.mubr.bf16.gmra.mrb[68].mxu0 %v5017_v28 }
  0xb6   : > { %3773 = vmatpush3.bf16.msra.mxu0 %v4301_v50  ;;  %3928 = vmatprep.mubr.bf16.mxu0 %v5021_v24 }
  0xb7   : > { %3774 = vmatprep.subr.bf16.mxu0 %v4302_v52 }
  0xba   : > { %1842 = vmatmul.mubr.bf16.gmra.mrb[68].mxu1 %v4948_v42  ;;  %3775 = vmatpush3.bf16.msra.mxu0 %v4303_v31 }
  0xbb   : > { %1849 = vmatprep.mubr.bf16.mxu1 %v4738_v1  ;;  %3776 = vmatprep.subr.bf16.mxu0 %v4305_v44 }
  0xbd   : > { %3929 = vmatmul.mubr.bf16.gmra.mrb[72].mxu0 %v5026_v4 }
  0xbe   : > { %3777 = vmatpush3.bf16.msra.mxu0 %v4306_v25  ;;  %3932 = vmatprep.mubr.bf16.mxu0 %v5035_v62 }
  0xbf   : > { %3778 = vmatprep.subr.bf16.mxu0 %v4307_v43 }
  0xc2   : > { %1850 = vmatmul.mubr.bf16.gmra.mrb[72].mxu1 %v4960_v14  ;;  %3779 = vmatpush3.bf16.msra.mxu0 %v4308_v17 }
  0xc3   : > { %1857 = vmatprep.mubr.bf16.mxu1 %v4785_v35  ;;  %3780 = vmatprep.subr.bf16.mxu0 %v4309_v5 }
  0xc5   : > { %3933 = vmatmul.mubr.bf16.gmra.mrb[76].mxu0 %v5039_v7 }
  0xc6   : > { %3781 = vmatpush3.bf16.msra.mxu0 %v4310_v59  ;;  %2265 = vmatprep.mubr.bf16.mxu0 %v4602_v39  ;;  %v4316_v39 = vld [vmem:[%s5578_s3 + $0x218] sm:$0xff]  }
  0xc7   : > { %3782 = vmatprep.subr.bf16.mxu0 %v4311_v11 }
  0xca   : > { %1858 = vmatmul.mubr.bf16.gmra.mrb[76].mxu1 %v4966_v18  ;;  %3783 = vmatpush3.bf16.msra.mxu0 %v4312_v19 }
  0xcb   : > { %3968 = vmatprep.mubr.bf16.mxu1 %v5162_v32 }
  0xcd   : > { %2266 = vmatmul.mubr.bf16.vlgmr.msra.gmra.mrb[80].mxu0 %v4666_v36  ;;  %v4317_v36 = vld [vmem:[%s5578_s3 + $0x220] sm:$0xff]  }
  0xce   : > { %2273 = vmatprep.mubr.bf16.mxu0 %v4694_v0  ;;  %v4318_v0 = vld [vmem:[%s5578_s3 + $0x228] sm:$0xff]  }
  0xd2   : > { %3969 = vmatmul.mubr.bf16.vlgmr.msra.gmra.mrb[80].mxu1 %v4998_v58 }
  0xd3   : > { %4001 = vmatpush3.bf16.msra.mxu1 %v5065_v41  ;;  %3972 = vmatprep.mubr.bf16.mxu1 %v4989_v40 }
  0xd4   : > { %4002 = vmatprep.subr.bf16.mxu1 %v4314_v8 }
  0xd5   : > { %2274 = vmatmul.mubr.bf16.gmra.mrb[84].mxu0 %v4751_v6  ;;  %v4319_v6 = vld [vmem:[%s5578_s3 + $0x230] sm:$0xff]  }
  0xd6   : > { %2281 = vmatprep.mubr.bf16.mxu0 %v4760_v13  ;;  %v4320_v13 = vld [vmem:[%s5578_s3 + $0x238] sm:$0xff]  }
  0xd7   : > { %4003 = vmatpush3.bf16.msra.mxu1 %v4314_v8 }
  0xd8   : > { %4004 = vmatprep.subr.bf16.mxu1 %v4315_v33 }
  0xda   : > { %3973 = vmatmul.mubr.bf16.gmra.mrb[84].mxu1 %v5006_v22 }
  0xdb   : > { %3976 = vmatprep.mubr.bf16.mxu1 %v5017_v28  ;;  %4005 = vmatpush3.bf16.msra.mxu1 %v4315_v33 }
  0xdc   : > { %4006 = vmatprep.subr.bf16.mxu1 %v4316_v39 }
  0xdd   : > { %2282 = vmatmul.mubr.bf16.gmra.mrb[88].mxu0 %v4819_v47 }
  0xde   : > { %2289 = vmatprep.mubr.bf16.mxu0 %v4840_v26 }
  0xdf   : > { %4007 = vmatpush3.bf16.msra.mxu1 %v4316_v39 }
  0xe0   : > { %4008 = vmatprep.subr.bf16.mxu1 %v4317_v36 }
  0xe2   : > { %3977 = vmatmul.mubr.bf16.gmra.mrb[88].mxu1 %v5021_v24 }
  0xe3   : > { %3980 = vmatprep.mubr.bf16.mxu1 %v5026_v4  ;;  %4009 = vmatpush3.bf16.msra.mxu1 %v4317_v36 }
  0xe4   : > { %4010 = vmatprep.subr.bf16.mxu1 %v4318_v0 }
  0xe5   : > { %2290 = vmatmul.mubr.bf16.gmra.mrb[92].mxu0 %v4888_v20 }
  0xe6   : > { %2297 = vmatprep.mubr.bf16.mxu0 %v4865_v60 }
  0xe7   : > { %4011 = vmatpush3.bf16.msra.mxu1 %v4318_v0 }
  0xe8   : > { %4012 = vmatprep.subr.bf16.mxu1 %v4319_v6 }
  0xea   : > { %3981 = vmatmul.mubr.bf16.gmra.mrb[92].mxu1 %v5035_v62 }
  0xeb   : > { %3984 = vmatprep.mubr.bf16.mxu1 %v5039_v7  ;;  %4013 = vmatpush3.bf16.msra.mxu1 %v4319_v6 }
  0xec   : > { %4014 = vmatprep.subr.bf16.mxu1 %v4320_v13 }
  0xed   : > { %2298 = vmatmul.mubr.bf16.gmra.mrb[96].mxu0 %v4936_v34 }
  0xee   : > { %2305 = vmatprep.mubr.bf16.mxu0 %v4881_v16 }
  0xef   : > { %4015 = vmatpush3.bf16.msra.mxu1 %v4320_v13 }
  0xf2   : > { %3985 = vmatmul.mubr.bf16.gmra.mrb[0].mxu1 %v4619_v49 }
  0xf3   : > { %3988 = vmatprep.mubr.bf16.mxu1 %v4631_v56 }
  0xf5   : > { %2306 = vmatmul.mubr.bf16.gmra.mrb[100].mxu0 %v5013_v46 }
  0xf6   : > { %2313 = vmatprep.mubr.bf16.mxu0 %v4917_v15 }
  0xfa   : > { %3989 = vmatmul.mubr.bf16.gmra.mrb[4].mxu1 %v4692_v63 }
  0xfb   : > { %v3512_v47 = vpop.f32.mrb[0].mxu0  ;;  %3992 = vmatprep.mubr.bf16.mxu1 %v4716_v37 }
  0xfc   : > { %v3513_v26 = vpop.f32.mrb[1].mxu0 }
  0xfd   : > { %v5212_v60 = vadd.f32 %v3513_v26, %v3512_v47  ;;  %v3515_v20 = vpop.f32.mrb[2].mxu0  ;;  %2314 = vmatmul.mubr.bf16.gmra.mrb[104].mxu0 %v5050_v23 }
  0xfe   : > { %v3516_v34 = vpop.f32.mrb[3].mxu0  ;;  %2321 = vmatprep.mubr.bf16.mxu0 %v4568_v3 }
  0xff   : > { %v5215_v16 = vadd.f32 %v3516_v34, %v3515_v20 }
 0x102   : > { %3993 = vmatmul.mubr.bf16.gmra.mrb[8].mxu1 %v4767_v55 }
 0x103   : > { %v3518_v58 = vpop.f32.mrb[4].mxu0  ;;  %3996 = vmatprep.mubr.bf16.mxu1 %v4796_v57 }
 0x104   : > { %v3519_v15 = vpop.f32.mrb[5].mxu0 }
 0x105   : > { %v5220_v46 = vadd.f32 %v3519_v15, %v3518_v58  ;;  %v3521_v41 = vpop.f32.mrb[6].mxu0  ;;  %2322 = vmatmul.mubr.bf16.gmra.mrb[108].mxu0 %v4894_v48 }
 0x106   : > { %v3522_v50 = vpop.f32.mrb[7].mxu0  ;;  %2329 = vmatprep.mubr.bf16.mxu0 %v4574_v12 }
 0x107   : > { %v5223_v52 = vadd.f32 %v3522_v50, %v3521_v41 }
 0x10a   : > { %3997 = vmatmul.mubr.bf16.gmra.mrb[12].mxu1 %v4846_v53 }
 0x10b   : > { %4016 = vmatprep.mubr.bf16.mxu1 %v4989_v40 }
 0x10d   : > { %v3524_v3 = vpop.f32.mrb[8].mxu0  ;;  %2330 = vmatmul.mubr.bf16.gmra.mrb[112].mxu0 %v4903_v2 }
 0x10e   : > { %v3525_v23 = vpop.f32.mrb[9].mxu0  ;;  %2337 = vmatprep.mubr.bf16.mxu0 %v4640_v61 }
 0x10f   : > { %v5229_v31 = vadd.f32 %v3525_v23, %v3524_v3  ;;  %v3527_v44 = vpop.f32.mrb[10].mxu0 }
 0x110   : > { %v3528_v25 = vpop.f32.mrb[11].mxu0 }
 0x111   : > { %v5232_v43 = vadd.f32 %v3528_v25, %v3527_v44 }
 0x112   : > { %4017 = vmatmul.mubr.bf16.vlgmr.msra.gmra.mrb[80].mxu1 %v5006_v22 }
 0x113   : > { %4020 = vmatprep.mubr.bf16.mxu1 %v5017_v28 }
 0x115   : > { %2338 = vmatmul.mubr.bf16.gmra.mrb[116].mxu0 %v4927_v45  ;;  %v3530_v12 = vpop.f32.mrb[12].mxu0 }
 0x116   : > { %v3531_v48 = vpop.f32.mrb[13].mxu0  ;;  %2345 = vmatprep.mubr.bf16.mxu0 %v4655_v27 }
 0x117   : > { %v5238_v2 = vadd.f32 %v3531_v48, %v3530_v12  ;;  %v3533_v40 = vpop.f32.mrb[14].mxu0 }
 0x118   : > { %v3534_v17 = vpop.f32.mrb[15].mxu0 }
 0x119   : > { %v5241_v61 = vadd.f32 %v3534_v17, %v3533_v40 }
 0x11a   : > { %4021 = vmatmul.mubr.bf16.gmra.mrb[84].mxu1 %v5021_v24 }
 0x11b   : > { %4024 = vmatprep.mubr.bf16.mxu1 %v5026_v4 }
 0x11d   : > { %2346 = vmatmul.mubr.bf16.gmra.mrb[120].mxu0 %v4944_v54 }
 0x11e   : > { %2353 = vmatprep.mubr.bf16.mxu0 %v4707_v21 }
 0x120   : > { %v3536_v22 = vpop.f32.mrb[16].mxu0 }
 0x121   : > { %v3537_v45 = vpop.f32.mrb[17].mxu0 }
 0x122   : > { %4025 = vmatmul.mubr.bf16.gmra.mrb[88].mxu1 %v5035_v62  ;;  %v5247_v28 = vadd.f32 %v3537_v45, %v3536_v22  ;;  %v3539_v27 = vpop.f32.mrb[18].mxu0 }
 0x123   : > { %4028 = vmatprep.mubr.bf16.mxu1 %v5039_v7  ;;  %v3540_v5 = vpop.f32.mrb[19].mxu0 }
 0x124   : > { %v5250_v24 = vadd.f32 %v3540_v5, %v3539_v27 }
 0x125   : > { %v3648_v59 = vpop.f32.mrb[16].mxu1  ;;  %2354 = vmatmul.mubr.bf16.gmra.mrb[124].mxu0 %v4948_v42 }
 0x126   : > { %v3649_v11 = vpop.f32.mrb[17].mxu1  ;;  %2361 = vmatprep.mubr.bf16.mxu0 %v4738_v1 }
 0x127   : > { %v5253_v4 = vadd.f32 %v3649_v11, %v3648_v59  ;;  %v3651_v54 = vpop.f32.mrb[18].mxu1 }
 0x128   : > { %v3652_v21 = vpop.f32.mrb[19].mxu1  ;;  %v3542_v38 = vpop.f32.mrb[20].mxu0 }
 0x129   : > { %v5256_v62 = vadd.f32 %v3652_v21, %v3651_v54  ;;  %v3543_v19 = vpop.f32.mrb[21].mxu0 }
 0x12a   : > { %4029 = vmatmul.mubr.bf16.gmra.mrb[92].mxu1 %v4619_v49  ;;  %v5259_v7 = vadd.f32 %v3543_v19, %v3542_v38  ;;  %v3545_v8 = vpop.f32.mrb[22].mxu0 }
 0x12b   : > { %4032 = vmatprep.mubr.bf16.mxu1 %v4631_v56  ;;  %v3546_v33 = vpop.f32.mrb[23].mxu0 }
 0x12c   : > { %v5262_v42 = vadd.f32 %v3546_v33, %v3545_v8 }
 0x12d   : > { %v3654_v39 = vpop.f32.mrb[20].mxu1  ;;  %2362 = vmatmul.mubr.bf16.gmra.mrb[128].mxu0 %v4960_v14 }
 0x12e   : > { %v3655_v36 = vpop.f32.mrb[21].mxu1  ;;  %2369 = vmatprep.mubr.bf16.mxu0 %v4785_v35 }
 0x12f   : > { %v5265_v1 = vadd.f32 %v3655_v36, %v3654_v39  ;;  %v3657_v0 = vpop.f32.mrb[22].mxu1 }
 0x130   : > { %v3658_v6 = vpop.f32.mrb[23].mxu1  ;;  %v3548_v13 = vpop.f32.mrb[24].mxu0 }
 0x131   : > { %v5268_v49 = vadd.f32 %v3658_v6, %v3657_v0  ;;  %v3549_v47 = vpop.f32.mrb[25].mxu0 }
 0x132   : > { %4033 = vmatmul.mubr.bf16.gmra.mrb[0].mxu1 %v4692_v63  ;;  %v5271_v56 = vadd.f32 %v3549_v47, %v3548_v13  ;;  %v3551_v26 = vpop.f32.mrb[26].mxu0 }
 0x133   : > { %4036 = vmatprep.mubr.bf16.mxu1 %v4716_v37  ;;  %v3552_v20 = vpop.f32.mrb[27].mxu0 }
 0x134   : > { %v5274_v14 = vadd.f32 %v3552_v20, %v3551_v26 }
 0x135   : > { %v3660_v34 = vpop.f32.mrb[24].mxu1  ;;  %2370 = vmatmul.mubr.bf16.gmra.mrb[132].mxu0 %v4966_v18 }
 0x136   : > { %v3661_v58 = vpop.f32.mrb[25].mxu1  ;;  %2377 = vmatprep.mubr.bf16.mxu0 %v4809_v30 }
 0x137   : > { %v5277_v35 = vadd.f32 %v3661_v58, %v3660_v34  ;;  %v3663_v15 = vpop.f32.mrb[26].mxu1 }
 0x138   : > { %v3664_v41 = vpop.f32.mrb[27].mxu1  ;;  %v3554_v50 = vpop.f32.mrb[28].mxu0 }
 0x139   : > { %v5280_v63 = vadd.f32 %v3664_v41, %v3663_v15  ;;  %v3555_v3 = vpop.f32.mrb[29].mxu0 }
 0x13a   : > { %4037 = vmatmul.mubr.bf16.gmra.mrb[4].mxu1 %v4767_v55  ;;  %v5283_v37 = vadd.f32 %v3555_v3, %v3554_v50  ;;  %v3557_v23 = vpop.f32.mrb[30].mxu0 }
 0x13b   : > { %4040 = vmatprep.mubr.bf16.mxu1 %v4796_v57  ;;  %v3558_v44 = vpop.f32.mrb[31].mxu0 }
 0x13c   : > { %v5286_v18 = vadd.f32 %v3558_v44, %v3557_v23 }
 0x13d   : > { %v3666_v25 = vpop.f32.mrb[28].mxu1  ;;  %2378 = vmatmul.mubr.bf16.gmra.mrb[136].mxu0 %v4985_v9 }
 0x13e   : > { %v3667_v12 = vpop.f32.mrb[29].mxu1  ;;  %2385 = vmatprep.mubr.bf16.mxu0 %v5609_v29 }
 0x13f   : > { %v5289_v30 = vadd.f32 %v3667_v12, %v3666_v25  ;;  %v3669_v48 = vpop.f32.mrb[30].mxu1 }
 0x140   : > { %v3670_v40 = vpop.f32.mrb[31].mxu1  ;;  %v3560_v17 = vpop.f32.mrb[32].mxu0 }
 0x141   : > { %v5292_v55 = vadd.f32 %v3670_v40, %v3669_v48  ;;  %v3561_v22 = vpop.f32.mrb[33].mxu0 }
 0x142   : > { %4041 = vmatmul.mubr.bf16.gmra.mrb[8].mxu1 %v4846_v53  ;;  %v3562_v57 = vadd.f32 %v3561_v22, %v3560_v17  ;;  %v3563_v45 = vpop.f32.mrb[34].mxu0 }
 0x143   : > { %4044 = vmatprep.mubr.bf16.mxu1 %v4861_v10  ;;  %v3564_v27 = vpop.f32.mrb[35].mxu0 }
 0x144   : > { %v3565_v59 = vadd.f32 %v3564_v27, %v3563_v45 }
 0x145   : > { %v3672_v5 = vpop.f32.mrb[32].mxu1  ;;  %2386 = vmatmul.mubr.bf16.gmra.mrb[140].mxu0 %v4558_v51 }
 0x146   : > { %v3673_v9 = vpop.f32.mrb[33].mxu1 }
 0x147   : > { %v5297_v11 = vadd.f32 %v3673_v9, %v3672_v5  ;;  %v3675_v29 = vpop.f32.mrb[34].mxu1 }
 0x148   : > { %v3676_v54 = vpop.f32.mrb[35].mxu1  ;;  %v3566_v38 = vpop.f32.mrb[36].mxu0 }
 0x149   : > { %v5299_v21 = vadd.f32 %v3676_v54, %v3675_v29  ;;  %v3567_v53 = vpop.f32.mrb[37].mxu0 }
 0x14a   : > { %4045 = vmatmul.mubr.bf16.gmra.mrb[12].mxu1 %v5162_v32  ;;  %v3568_v19 = vadd.f32 %v3567_v53, %v3566_v38  ;;  %v3569_v8 = vpop.f32.mrb[38].mxu0 }
 0x14b   : > { %v3570_v33 = vpop.f32.mrb[39].mxu0 }
 0x14c   : > { %v3571_v39 = vadd.f32 %v3570_v33, %v3569_v8 }
 0x14d   : > { %v3678_v10 = vpop.f32.mrb[36].mxu1 }
 0x14e   : > { %v3679_v36 = vpop.f32.mrb[37].mxu1 }
 0x14f   : > { %v5302_v0 = vadd.f32 %v3679_v36, %v3678_v10  ;;  %v3681_v6 = vpop.f32.mrb[38].mxu1 }
 0x150   : > { %v3682_v51 = vpop.f32.mrb[39].mxu1  ;;  %v3572_v47 = vpop.f32.mrb[40].mxu0 }
 0x151   : > { %v5304_v13 = vadd.f32 %v3682_v51, %v3681_v6  ;;  %v3573_v26 = vpop.f32.mrb[41].mxu0 }
 0x152   : > { %v3574_v20 = vadd.f32 %v3573_v26, %v3572_v47  ;;  %v3575_v34 = vpop.f32.mrb[42].mxu0 }
 0x153   : > { %v3576_v58 = vpop.f32.mrb[43].mxu0 }
 0x154   : > { %v3577_v32 = vadd.f32 %v3576_v58, %v3575_v34 }
 0x155   : > { %v3684_v15 = vpop.f32.mrb[40].mxu1 }
 0x156   : > { %v3685_v41 = vpop.f32.mrb[41].mxu1 }
 0x157   : > { %v5306_v50 = vadd.f32 %v3685_v41, %v3684_v15  ;;  %v3687_v3 = vpop.f32.mrb[42].mxu1 }
 0x158   : > { %v3688_v23 = vpop.f32.mrb[43].mxu1  ;;  %v3578_v25 = vpop.f32.mrb[44].mxu0 }
 0x159   : > { %v5308_v44 = vadd.f32 %v3688_v23, %v3687_v3  ;;  %v3579_v12 = vpop.f32.mrb[45].mxu0 }
 0x15a   : > { %v5310_v48 = vadd.f32 %v3579_v12, %v3578_v25  ;;  %v3581_v40 = vpop.f32.mrb[46].mxu0 }
 0x15b   : > { %v3582_v17 = vpop.f32.mrb[47].mxu0 }
 0x15c   : > { %v5312_v45 = vadd.f32 %v3582_v17, %v3581_v40 }
 0x15d   : > { %v3690_v22 = vpop.f32.mrb[44].mxu1 }
 0x15e   : > { %v3691_v27 = vpop.f32.mrb[45].mxu1 }
 0x15f   : > { %v5314_v5 = vadd.f32 %v3691_v27, %v3690_v22  ;;  %v3693_v9 = vpop.f32.mrb[46].mxu1 }
 0x160   : > { %v3694_v29 = vpop.f32.mrb[47].mxu1  ;;  %v3584_v38 = vpop.f32.mrb[48].mxu0 }
 0x161   : > { %v5316_v54 = vadd.f32 %v3694_v29, %v3693_v9  ;;  %v3585_v53 = vpop.f32.mrb[49].mxu0 }
 0x162   : > { %v5318_v8 = vadd.f32 %v3585_v53, %v3584_v38  ;;  %v3587_v33 = vpop.f32.mrb[50].mxu0 }
 0x163   : > { %v3588_v10 = vpop.f32.mrb[51].mxu0 }
 0x164   : > { %v5320_v6 = vadd.f32 %v3588_v10, %v3587_v33 }
 0x165   : > { %v3696_v36 = vpop.f32.mrb[48].mxu1 }
 0x166   : > { %v3697_v51 = vpop.f32.mrb[49].mxu1 }
 0x167   : > { %v3698_v47 = vadd.f32 %v3697_v51, %v3696_v36  ;;  %v3699_v26 = vpop.f32.mrb[50].mxu1 }
 0x168   : > { %v3700_v34 = vpop.f32.mrb[51].mxu1  ;;  %v3590_v41 = vpop.f32.mrb[52].mxu0 }
 0x169   : > { %v5322_v58 = vadd.f32 %v3698_v47, %v3562_v57  ;;  %v3701_v15 = vadd.f32 %v3700_v34, %v3699_v26  ;;  %v3591_v3 = vpop.f32.mrb[53].mxu0 }
 0x16a   : > { %v5326_v25 = vadd.f32 %v3591_v3, %v3590_v41  ;;  %v3593_v12 = vpop.f32.mrb[54].mxu0 }
 0x16b   : > { %v5324_v23 = vadd.f32 %v3701_v15, %v3565_v59  ;;  %v3594_v40 = vpop.f32.mrb[55].mxu0 }
 0x16c   : > { %v5328_v22 = vadd.f32 %v3594_v40, %v3593_v12 }
 0x16d   : > { %v3702_v17 = vpop.f32.mrb[52].mxu1 }
 0x16e   : > { %v3703_v27 = vpop.f32.mrb[53].mxu1 }
 0x16f   : > { %v3704_v9 = vadd.f32 %v3703_v27, %v3702_v17  ;;  %v3705_v29 = vpop.f32.mrb[54].mxu1 }
 0x170   : > { %v3706_v38 = vpop.f32.mrb[55].mxu1  ;;  %v3596_v33 = vpop.f32.mrb[56].mxu0 }
 0x171   : > { %v5330_v53 = vadd.f32 %v3704_v9, %v3568_v19  ;;  %v3707_v57 = vadd.f32 %v3706_v38, %v3705_v29  ;;  %v3597_v10 = vpop.f32.mrb[57].mxu0 }
 0x172   : > { %v5334_v59 = vadd.f32 %v3597_v10, %v3596_v33  ;;  %v3599_v51 = vpop.f32.mrb[58].mxu0 }
 0x173   : > { %v5332_v36 = vadd.f32 %v3707_v57, %v3571_v39  ;;  %v3600_v47 = vpop.f32.mrb[59].mxu0 }
 0x174   : > { %v5336_v34 = vadd.f32 %v3600_v47, %v3599_v51 }
 0x175   : > { %v3708_v26 = vpop.f32.mrb[56].mxu1 }
 0x176   : > { %v3709_v15 = vpop.f32.mrb[57].mxu1 }
 0x177   : > { %v3710_v41 = vadd.f32 %v3709_v15, %v3708_v26  ;;  %v3711_v3 = vpop.f32.mrb[58].mxu1 }
 0x178   : > { %v3712_v12 = vpop.f32.mrb[59].mxu1  ;;  %v3602_v17 = vpop.f32.mrb[60].mxu0 }
 0x179   : > { %v5338_v40 = vadd.f32 %v3710_v41, %v3574_v20  ;;  %v3713_v19 = vadd.f32 %v3712_v12, %v3711_v3  ;;  %v3603_v27 = vpop.f32.mrb[61].mxu0 }
 0x17a   : > { %v5342_v39 = vadd.f32 %v3603_v27, %v3602_v17  ;;  %v3605_v29 = vpop.f32.mrb[62].mxu0 }
 0x17b   : > { %v5340_v9 = vadd.f32 %v3713_v19, %v3577_v32  ;;  %v3606_v38 = vpop.f32.mrb[63].mxu0 }
 0x17c   : > { %v5344_v33 = vadd.f32 %v3606_v38, %v3605_v29 }
 0x17d   : > { %v3714_v57 = vpop.f32.mrb[60].mxu1 }
 0x17e   : > { %v3715_v10 = vpop.f32.mrb[61].mxu1 }
 0x17f   : > { %v3716_v51 = vadd.f32 %v3715_v10, %v3714_v57  ;;  %v3717_v47 = vpop.f32.mrb[62].mxu1 }
 0x180   : > { %v3718_v26 = vpop.f32.mrb[63].mxu1  ;;  %v3922_v41 = vpop.f32.mrb[64].mxu0 }
 0x181   : > { %v5347_v15 = vadd.f32 %v3716_v51, %v5310_v48  ;;  %v3719_v20 = vadd.f32 %v3718_v26, %v3717_v47  ;;  %v1443_v3 = vadd.f32 %v3922_v41, %v5220_v46  ;;  %v1434_v32 = vpop.f32.mrb[65].mxu0 }
 0x182   : > { %v1435_v19 = vadd.f32 %v5212_v60, %v1434_v32  ;;  %v3923_v17 = vpop.f32.mrb[66].mxu0 }
 0x183   : > { %v5351_v12 = vadd.f32 %v3719_v20, %v5312_v45  ;;  %v5355_v27 = vadd.f32 %v5265_v1, %v1443_v3  ;;  %v1446_v29 = vadd.f32 %v3923_v17, %v5223_v52  ;;  %v1437_v38 = vpop.f32.mrb[67].mxu0 }
 0x184   : > { %v5359_v48 = vadd.f32 %v5253_v4, %v1435_v19  ;;  %v1438_v10 = vadd.f32 %v5215_v16, %v1437_v38 }
 0x185   : > { %v3720_v57 = vpop.f32.mrb[64].mxu1  ;;  %v5363_v51 = vadd.f32 %v5268_v49, %v1446_v29 }
 0x186   : > { %v3721_v46 = vpop.f32.mrb[65].mxu1  ;;  %v5366_v60 = vadd.f32 %v5256_v62, %v1438_v10 }
 0x187   : > { %v3722_v45 = vadd.f32 %v3721_v46, %v3720_v57  ;;  %v3723_v47 = vpop.f32.mrb[66].mxu1 }
 0x188   : > { %v3724_v1 = vpop.f32.mrb[67].mxu1  ;;  %v3926_v20 = vpop.f32.mrb[68].mxu0 }
 0x189   : > { %v5369_v26 = vadd.f32 %v3722_v45, %v5318_v8  ;;  %v3725_v52 = vadd.f32 %v3724_v1, %v3723_v47  ;;  %v1459_v4 = vadd.f32 %v3926_v20, %v5238_v2  ;;  %v1450_v41 = vpop.f32.mrb[69].mxu0 }
 0x18a   : > { %v1451_v49 = vadd.f32 %v5229_v31, %v1450_v41  ;;  %v3927_v3 = vpop.f32.mrb[70].mxu0 }
 0x18b   : > { %v5373_v16 = vadd.f32 %v3725_v52, %v5320_v6  ;;  %v5377_v32 = vadd.f32 %v5289_v30, %v1459_v4  ;;  %v1462_v62 = vadd.f32 %v3927_v3, %v5241_v61  ;;  %v1453_v19 = vpop.f32.mrb[71].mxu0 }
 0x18c   : > { %v5381_v8 = vadd.f32 %v5277_v35, %v1451_v49  ;;  %v1454_v29 = vadd.f32 %v5232_v43, %v1453_v19 }
 0x18d   : > { %v3726_v17 = vpop.f32.mrb[68].mxu1  ;;  %v5385_v38 = vadd.f32 %v5292_v55, %v1462_v62 }
 0x18e   : > { %v3727_v2 = vpop.f32.mrb[69].mxu1  ;;  %v5388_v31 = vadd.f32 %v5280_v63, %v1454_v29 }
 0x18f   : > { %v3728_v6 = vadd.f32 %v3727_v2, %v3726_v17  ;;  %v3729_v57 = vpop.f32.mrb[70].mxu1 }
 0x190   : > { %v3730_v30 = vpop.f32.mrb[71].mxu1  ;;  %v3930_v46 = vpop.f32.mrb[72].mxu0 }
 0x191   : > { %v5391_v10 = vadd.f32 %v3728_v6, %v5326_v25  ;;  %v3731_v61 = vadd.f32 %v3730_v30, %v3729_v57  ;;  %v1475_v35 = vadd.f32 %v3930_v46, %v5259_v7  ;;  %v1466_v45 = vpop.f32.mrb[73].mxu0 }
 0x192   : > { %v1467_v55 = vadd.f32 %v5247_v28, %v1466_v45  ;;  %v3931_v47 = vpop.f32.mrb[74].mxu0 }
 0x193   : > { %v5395_v43 = vadd.f32 %v3731_v61, %v5328_v22  ;;  %v5399_v1 = vadd.f32 %v5302_v0, %v1475_v35  ;;  %v1478_v63 = vadd.f32 %v3931_v47, %v5262_v42  ;;  %v1469_v52 = vpop.f32.mrb[75].mxu0 }
 0x194   : > { %v5403_v25 = vadd.f32 %v5297_v11, %v1467_v55  ;;  %v1470_v4 = vadd.f32 %v5250_v24, %v1469_v52 }
 0x195   : > { %v3732_v20 = vpop.f32.mrb[72].mxu1  ;;  %v5407_v41 = vadd.f32 %v5304_v13, %v1478_v63 }
 0x196   : > { %v3733_v7 = vpop.f32.mrb[73].mxu1  ;;  %v5410_v28 = vadd.f32 %v5299_v21, %v1470_v4 }
 0x197   : > { %v3734_v22 = vadd.f32 %v3733_v7, %v3732_v20  ;;  %v3735_v49 = vpop.f32.mrb[74].mxu1 }
 0x198   : > { %v3736_v0 = vpop.f32.mrb[75].mxu1  ;;  %v3934_v62 = vpop.f32.mrb[76].mxu0 }
 0x199   : > { %v5413_v3 = vadd.f32 %v3734_v22, %v5334_v59  ;;  %v3737_v42 = vadd.f32 %v3736_v0, %v3735_v49  ;;  %v1491_v11 = vadd.f32 %v3934_v62, %v5283_v37  ;;  %v1482_v19 = vpop.f32.mrb[77].mxu0 }
 0x19a   : > { %v1483_v13 = vadd.f32 %v5271_v56, %v1482_v19  ;;  %v3935_v17 = vpop.f32.mrb[78].mxu0 }
 0x19b   : > { %v5417_v24 = vadd.f32 %v3737_v42, %v5336_v34  ;;  %v5421_v29 = vadd.f32 %v5314_v5, %v1491_v11  ;;  %v1494_v21 = vadd.f32 %v3935_v17, %v5286_v18  ;;  %v1485_v2 = vpop.f32.mrb[79].mxu0 }
 0x19c   : > { %v5425_v59 = vadd.f32 %v5306_v50, %v1483_v13  ;;  %v1486_v57 = vadd.f32 %v5274_v14, %v1485_v2 }
 0x19d   : > { %v3738_v6 = vpop.f32.mrb[76].mxu1  ;;  %v5429_v30 = vadd.f32 %v5316_v54, %v1494_v21 }
 0x19e   : > { %v3739_v37 = vpop.f32.mrb[77].mxu1  ;;  %v1791_v56 = vadd.f32 %v5308_v44, %v1486_v57 }
 0x19f   : > { %v3740_v34 = vadd.f32 %v3739_v37, %v3738_v6  ;;  %v3741_v61 = vpop.f32.mrb[78].mxu1 }
 0x1a0   : > { %v3742_v46 = vpop.f32.mrb[79].mxu1  ;;  %v3784_v35 = vpop.f32.mrb[80].mxu0 }
 0x1a1   : > { %v5433_v5 = vadd.f32 %v3740_v34, %v5342_v39  ;;  %v3743_v18 = vadd.f32 %v3742_v46, %v3741_v61  ;;  %v3785_v45 = vpop.f32.mrb[81].mxu0 }
 0x1a2   : > { %v3786_v55 = vadd.f32 %v3785_v45, %v3784_v35  ;;  %v3787_v14 = vpop.f32.mrb[82].mxu0 }
 0x1a3   : > { %v5436_v50 = vadd.f32 %v3743_v18, %v5344_v33  ;;  %v3788_v47 = vpop.f32.mrb[83].mxu0 }
 0x1a4   : > { %v3789_v63 = vadd.f32 %v3788_v47, %v3787_v14  ;;  %v5439_v54 = vadd.f32 %v3786_v55, %v5359_v48 }
 0x1a6   : > { %v5442_v52 = vadd.f32 %v3789_v63, %v5366_v60 }
 0x1a8   : > { %v3790_v44 = vpop.f32.mrb[84].mxu0 }
 0x1a9   : > { %v3791_v20 = vpop.f32.mrb[85].mxu0 }
 0x1aa   : > { %v3792_v39 = vadd.f32 %v3791_v20, %v3790_v44  ;;  %v3793_v4 = vpop.f32.mrb[86].mxu0 }
 0x1ab   : > { %v3794_v7 = vpop.f32.mrb[87].mxu0 }
 0x1ac   : > { %v3795_v22 = vadd.f32 %v3794_v7, %v3793_v4  ;;  %v4066_v49 = vadd.f32 %v3792_v39, %v5355_v27 }
 0x1ae   : > { %v4074_v33 = vadd.f32 %v3795_v22, %v5363_v51 }
 0x1b0   : > { %v3796_v0 = vpop.f32.mrb[88].mxu0 }
 0x1b1   : > { %v3797_v42 = vpop.f32.mrb[89].mxu0 }
 0x1b2   : > { %v3798_v62 = vadd.f32 %v3797_v42, %v3796_v0  ;;  %v3799_v11 = vpop.f32.mrb[90].mxu0 }
 0x1b3   : > { %v3800_v19 = vpop.f32.mrb[91].mxu0 }
 0x1b4   : > { %v3801_v48 = vadd.f32 %v3800_v19, %v3799_v11  ;;  %v5447_v13 = vadd.f32 %v3798_v62, %v5381_v8 }
 0x1b6   : > { %v5450_v60 = vadd.f32 %v3801_v48, %v5388_v31 }
 0x1b8   : > { %v3802_v17 = vpop.f32.mrb[92].mxu0 }
 0x1b9   : > { %v3803_v21 = vpop.f32.mrb[93].mxu0 }
 0x1ba   : > { %v3804_v2 = vadd.f32 %v3803_v21, %v3802_v17  ;;  %v3805_v6 = vpop.f32.mrb[94].mxu0 }
 0x1bb   : > { %v3806_v57 = vpop.f32.mrb[95].mxu0 }
 0x1bc   : > { %v3807_v27 = vadd.f32 %v3806_v57, %v3805_v6  ;;  %v5453_v51 = vadd.f32 %v3804_v2, %v5377_v32 }
 0x1be   : > { %v5456_v37 = vadd.f32 %v3807_v27, %v5385_v38 }
 0x1c0   : > { %v3808_v34 = vpop.f32.mrb[96].mxu0 }
 0x1c1   : > { %v3809_v61 = vpop.f32.mrb[97].mxu0 }
 0x1c2   : > { %v3810_v46 = vadd.f32 %v3809_v61, %v3808_v34  ;;  %v3811_v8 = vpop.f32.mrb[98].mxu0 }
 0x1c3   : > { %v3812_v18 = vpop.f32.mrb[99].mxu0 }
 0x1c4   : > { %v3813_v35 = vadd.f32 %v3812_v18, %v3811_v8  ;;  %v5459_v31 = vadd.f32 %v3810_v46, %v5403_v25 }
 0x1c6   : > { %v5462_v45 = vadd.f32 %v3813_v35, %v5410_v28 }
 0x1c8   : > { %v3814_v55 = vpop.f32.mrb[100].mxu0 }
 0x1c9   : > { %v3815_v14 = vpop.f32.mrb[101].mxu0 }
 0x1ca   : > { %v3816_v47 = vadd.f32 %v3815_v14, %v3814_v55  ;;  %v3817_v32 = vpop.f32.mrb[102].mxu0 }
 0x1cb   : > { %v3818_v63 = vpop.f32.mrb[103].mxu0 }
 0x1cc   : > { %v3819_v44 = vadd.f32 %v3818_v63, %v3817_v32  ;;  %v5465_v38 = vadd.f32 %v3816_v47, %v5399_v1 }
 0x1ce   : > { %v5468_v20 = vadd.f32 %v3819_v44, %v5407_v41 }
 0x1d0   : > { %v3820_v39 = vpop.f32.mrb[104].mxu0 }
 0x1d1   : > { %v3821_v4 = vpop.f32.mrb[105].mxu0 }
 0x1d2   : > { %v3822_v7 = vadd.f32 %v3821_v4, %v3820_v39  ;;  %v3823_v25 = vpop.f32.mrb[106].mxu0 }
 0x1d3   : > { %v3824_v22 = vpop.f32.mrb[107].mxu0 }
 0x1d4   : > { %v3825_v0 = vadd.f32 %v3824_v22, %v3823_v25  ;;  %v5471_v28 = vadd.f32 %v3822_v7, %v5425_v59 }
 0x1d6   : > { %v5473_v42 = vadd.f32 %v3825_v0, %v1791_v56 }
 0x1d8   : > { %v3826_v62 = vpop.f32.mrb[108].mxu0 }
 0x1d9   : > { %v3827_v11 = vpop.f32.mrb[109].mxu0 }
 0x1da   : > { %v3828_v19 = vadd.f32 %v3827_v11, %v3826_v62  ;;  %v3829_v48 = vpop.f32.mrb[110].mxu0 }
 0x1db   : > { %v3830_v1 = vpop.f32.mrb[111].mxu0 }
 0x1dc   : > { %v3831_v17 = vadd.f32 %v3830_v1, %v3829_v48  ;;  %v5476_v41 = vadd.f32 %v3828_v19, %v5421_v29 }
 0x1de   : > { %v5479_v21 = vadd.f32 %v3831_v17, %v5429_v30 }
 0x1e0   : > { %v3832_v2 = vpop.f32.mrb[112].mxu0 }
 0x1e1   : > { %v3833_v6 = vpop.f32.mrb[113].mxu0 }
 0x1e2   : > { %v3834_v57 = vadd.f32 %v3833_v6, %v3832_v2  ;;  %v3835_v59 = vpop.f32.mrb[114].mxu0 }
 0x1e3   : > { %v3836_v27 = vpop.f32.mrb[115].mxu0 }
 0x1e4   : > { %v3837_v34 = vadd.f32 %v3836_v27, %v3835_v59  ;;  %v5482_v61 = vadd.f32 %v5322_v58, %v3834_v57 }
 0x1e5   : > { %v4018_v56 = vpop.f32.mrb[80].mxu1 }
 0x1e6   : > { %v4067_v46 = vadd.f32 %v4066_v49, %v4018_v56  ;;  %v2428_v8 = vpop.f32.mrb[81].mxu1  ;;  %v5486_v35 = vadd.f32 %v5324_v23, %v3837_v34 }
 0x1e7   : > { %v4071_v18 = vadd.f32 %v5439_v54, %v2428_v8  ;;  %v4019_v29 = vpop.f32.mrb[82].mxu1 }
 0x1e8   : > { %v4075_v30 = vadd.f32 %v4074_v33, %v4019_v29  ;;  %v2431_v55 = vpop.f32.mrb[83].mxu1  ;;  %v3838_v49 = vpop.f32.mrb[116].mxu0  ;;  %v2818_v39 = vmul.f32 %v4067_v46, %v4067_v46 }
 0x1e9   : > { %v4079_v58 = vadd.f32 %v5442_v52, %v2431_v55  ;;  %v2816_v14 = vmul.f32 %v4071_v18, %v4071_v18  ;;  %v3839_v54 = vpop.f32.mrb[117].mxu0 }
 0x1ea   : > { %v3394_v47 = vpack.c.bf16 %v4075_v30, %v4067_v46  ;;  %v3840_v44 = vadd.f32 %v3839_v54, %v3838_v49  ;;  %v3841_v33 = vpop.f32.mrb[118].mxu0  ;;  %v2819_v52 = vmul.f32 %v4075_v30, %v4075_v30 }
 0x1eb   : > { %v3389_v32 = vpack.c.bf16 %v4079_v58, %v4071_v18  ;;  %v2779_v63 = vadd.f32 %v4079_v58, %v4071_v18  ;;  %v2817_v23 = vmul.f32 %v4079_v58, %v4079_v58  ;;  %v3842_v4 = vpop.f32.mrb[119].mxu0 }
 0x1ec   : > { %3481 = vst [vmem:[%s5493_s17 + $0x8] sm:$0xff] %v3394_v47   ;;  %v3843_v0 = vadd.f32 %v3842_v4, %v3841_v33  ;;  %v5499_v62 = vadd.f32 %v5330_v53, %v3840_v44 }
 0x1ed   : > { %3390 = vst [vmem:[%s5493_s17] sm:$0xff] %v3389_v32   ;;  %v2780_v7 = vadd.f32 %v4067_v46, %v2779_v63  ;;  %v2848_v25 = vadd.f32 %v2817_v23, %v2816_v14  ;;  %v4022_v22 = vpop.f32.mrb[84].mxu1 }
 0x1ee   : > { %v4083_v11 = vadd.f32 %v5453_v51, %v4022_v22  ;;  %v2444_v19 = vpop.f32.mrb[85].mxu1  ;;  %v5504_v6 = vadd.f32 %v5332_v36, %v3843_v0 }
 0x1ef   : > { %v2849_v48 = vadd.f32 %v2848_v25, %v2818_v39  ;;  %v4087_v1 = vadd.f32 %v5447_v13, %v2444_v19  ;;  %v2781_v17 = vadd.f32 %v4075_v30, %v2780_v7  ;;  %v4023_v2 = vpop.f32.mrb[86].mxu1 }
 0x1f0   : > { %v4091_v57 = vadd.f32 %v5456_v37, %v4023_v2  ;;  %v2447_v59 = vpop.f32.mrb[87].mxu1  ;;  %v3844_v51 = vpop.f32.mrb[120].mxu0  ;;  %v2822_v49 = vmul.f32 %v4083_v11, %v4083_v11 }
 0x1f1   : > { %v2782_v27 = vadd.f32 %v4087_v1, %v2781_v17  ;;  %v2820_v53 = vmul.f32 %v4087_v1, %v4087_v1  ;;  %v2850_v56 = vadd.f32 %v2849_v48, %v2819_v52  ;;  %v4095_v34 = vadd.f32 %v5450_v60, %v2447_v59  ;;  %v3845_v8 = vpop.f32.mrb[121].mxu0 }
 0x1f2   : > { %v3404_v46 = vpack.c.bf16 %v4091_v57, %v4083_v11  ;;  %v3847_v55 = vpop.f32.mrb[122].mxu0  ;;  %v3846_v36 = vadd.f32 %v3845_v8, %v3844_v51  ;;  %v2823_v32 = vmul.f32 %v4091_v57, %v4091_v57 }
 0x1f3   : > { %v2851_v18 = vadd.f32 %v2850_v56, %v2820_v53  ;;  %v3399_v13 = vpack.c.bf16 %v4095_v34, %v4087_v1  ;;  %v2783_v29 = vadd.f32 %v4095_v34, %v2782_v27  ;;  %v2821_v30 = vmul.f32 %v4095_v34, %v4095_v34  ;;  %v3848_v58 = vpop.f32.mrb[123].mxu0 }
 0x1f4   : > { %3483 = vst [vmem:[%s5493_s17 + $0x18] sm:$0xff] %v3404_v46   ;;  %v3849_v54 = vadd.f32 %v3848_v58, %v3847_v55  ;;  %v5512_v23 = vadd.f32 %v5338_v40, %v3846_v36 }
 0x1f5   : > { %3482 = vst [vmem:[%s5493_s17 + $0x10] sm:$0xff] %v3399_v13   ;;  %v2784_v37 = vadd.f32 %v4083_v11, %v2783_v29  ;;  %v2852_v14 = vadd.f32 %v2851_v18, %v2821_v30  ;;  %v4026_v47 = vpop.f32.mrb[88].mxu1 }
 0x1f6   : > { %v4099_v60 = vadd.f32 %v5465_v38, %v4026_v47  ;;  %v2460_v63 = vpop.f32.mrb[89].mxu1  ;;  %v5516_v7 = vadd.f32 %v5340_v9, %v3849_v54 }
 0x1f7   : > { %v2853_v44 = vadd.f32 %v2852_v14, %v2822_v49  ;;  %v4103_v33 = vadd.f32 %v5459_v31, %v2460_v63  ;;  %v2785_v39 = vadd.f32 %v4091_v57, %v2784_v37  ;;  %v4027_v4 = vpop.f32.mrb[90].mxu1 }
 0x1f8   : > { %v4107_v25 = vadd.f32 %v5468_v20, %v4027_v4  ;;  %v2463_v22 = vpop.f32.mrb[91].mxu1  ;;  %v3850_v40 = vpop.f32.mrb[124].mxu0  ;;  %v2826_v27 = vmul.f32 %v4099_v60, %v4099_v60 }
 0x1f9   : > { %v2786_v0 = vadd.f32 %v4103_v33, %v2785_v39  ;;  %v2824_v52 = vmul.f32 %v4103_v33, %v4103_v33  ;;  %v2854_v38 = vadd.f32 %v2853_v44, %v2823_v32  ;;  %v4111_v11 = vadd.f32 %v5462_v45, %v2463_v22  ;;  %v3851_v48 = vpop.f32.mrb[125].mxu0 }
 0x1fa   : > { %v3414_v19 = vpack.c.bf16 %v4107_v25, %v4099_v60  ;;  %v3853_v57 = vpop.f32.mrb[126].mxu0  ;;  %v3852_v9 = vadd.f32 %v3851_v48, %v3850_v40  ;;  %v2827_v51 = vmul.f32 %v4107_v25, %v4107_v25 }
 0x1fb   : > { %v2855_v1 = vadd.f32 %v2854_v38, %v2824_v52  ;;  %v3409_v31 = vpack.c.bf16 %v4111_v11, %v4103_v33  ;;  %v2787_v17 = vadd.f32 %v4111_v11, %v2786_v0  ;;  %v2825_v2 = vmul.f32 %v4111_v11, %v4111_v11  ;;  %v3854_v59 = vpop.f32.mrb[127].mxu0 }
 0x1fc   : > { %3485 = vst [vmem:[%s5493_s17 + $0x28] sm:$0xff] %v3414_v19   ;;  %v3855_v34 = vadd.f32 %v3854_v59, %v3853_v57  ;;  %v4141_v8 = vadd.f32 %v5347_v15, %v3852_v9 }
 0x1fd   : > { %3484 = vst [vmem:[%s5493_s17 + $0x20] sm:$0xff] %v3409_v31   ;;  %v2788_v20 = vadd.f32 %v4099_v60, %v2787_v17  ;;  %v2856_v53 = vadd.f32 %v2855_v1, %v2825_v2  ;;  %v4030_v56 = vpop.f32.mrb[92].mxu1 }
 0x1fe   : > { %v4115_v45 = vadd.f32 %v5476_v41, %v4030_v56  ;;  %v2476_v46 = vpop.f32.mrb[93].mxu1  ;;  %v5526_v55 = vadd.f32 %v5351_v12, %v3855_v34 }
 0x1ff   : > { %v2857_v18 = vadd.f32 %v2856_v53, %v2826_v27  ;;  %v4119_v13 = vadd.f32 %v5471_v28, %v2476_v46  ;;  %v2789_v29 = vadd.f32 %v4107_v25, %v2788_v20  ;;  %v4031_v30 = vpop.f32.mrb[94].mxu1 }
 0x200   : > { %v4123_v36 = vadd.f32 %v5479_v21, %v4031_v30  ;;  %v2479_v58 = vpop.f32.mrb[95].mxu1  ;;  %v3856_v47 = vpop.f32.mrb[128].mxu0  ;;  %v2830_v39 = vmul.f32 %v4115_v45, %v4115_v45 }
 0x201   : > { %v2790_v49 = vadd.f32 %v4119_v13, %v2789_v29  ;;  %v2828_v37 = vmul.f32 %v4119_v13, %v4119_v13  ;;  %v2858_v14 = vadd.f32 %v2857_v18, %v2827_v51  ;;  %v4127_v41 = vadd.f32 %v5473_v42, %v2479_v58  ;;  %v3857_v54 = vpop.f32.mrb[129].mxu0 }
 0x202   : > { %v3424_v15 = vpack.c.bf16 %v4123_v36, %v4115_v45  ;;  %v3859_v44 = vpop.f32.mrb[130].mxu0  ;;  %v3858_v12 = vadd.f32 %v3857_v54, %v3856_v47  ;;  %v2831_v0 = vmul.f32 %v4123_v36, %v4123_v36 }
 0x203   : > { %v2859_v32 = vadd.f32 %v2858_v14, %v2828_v37  ;;  %v3419_v28 = vpack.c.bf16 %v4127_v41, %v4119_v13  ;;  %v2791_v60 = vadd.f32 %v4127_v41, %v2790_v49  ;;  %v2829_v63 = vmul.f32 %v4127_v41, %v4127_v41  ;;  %v3860_v33 = vpop.f32.mrb[131].mxu0 }
 0x204   : > { %3487 = vst [vmem:[%s5493_s17 + $0x38] sm:$0xff] %v3424_v15   ;;  %v3861_v22 = vadd.f32 %v3860_v33, %v3859_v44  ;;  %v5534_v38 = vadd.f32 %v5369_v26, %v3858_v12 }
 0x205   : > { %3486 = vst [vmem:[%s5493_s17 + $0x30] sm:$0xff] %v3419_v28   ;;  %v2792_v21 = vadd.f32 %v4115_v45, %v2791_v60  ;;  %v2860_v4 = vadd.f32 %v2859_v32, %v2829_v63  ;;  %v4034_v25 = vpop.f32.mrb[0].mxu1 }
 0x206   : > { %v4130_v42 = vadd.f32 %v5499_v62, %v4034_v25  ;;  %v2492_v52 = vpop.f32.mrb[1].mxu1  ;;  %v5538_v1 = vadd.f32 %v5373_v16, %v3861_v22 }
 0x207   : > { %v2861_v11 = vadd.f32 %v2860_v4, %v2830_v39  ;;  %v4133_v40 = vadd.f32 %v5482_v61, %v2492_v52  ;;  %v2793_v19 = vadd.f32 %v4123_v36, %v2792_v21  ;;  %v4035_v48 = vpop.f32.mrb[2].mxu1 }
 0x208   : > { %v4136_v31 = vadd.f32 %v5504_v6, %v4035_v48  ;;  %v2495_v17 = vpop.f32.mrb[3].mxu1  ;;  %v3862_v26 = vpop.f32.mrb[132].mxu0  ;;  %v2834_v45 = vmul.f32 %v4130_v42, %v4130_v42 }
 0x209   : > { %v2794_v2 = vadd.f32 %v4133_v40, %v2793_v19  ;;  %v2832_v57 = vmul.f32 %v4133_v40, %v4133_v40  ;;  %v2862_v62 = vadd.f32 %v2861_v11, %v2831_v0  ;;  %v4139_v9 = vadd.f32 %v5486_v35, %v2495_v17  ;;  %v3863_v27 = vpop.f32.mrb[133].mxu0 }
 0x20a   : > { %v3434_v59 = vpack.c.bf16 %v4136_v31, %v4130_v42  ;;  %v3865_v34 = vpop.f32.mrb[134].mxu0  ;;  %v3864_v16 = vadd.f32 %v3863_v27, %v3862_v26  ;;  %v2835_v29 = vmul.f32 %v4136_v31, %v4136_v31 }
 0x20b   : > { %v2863_v20 = vadd.f32 %v2862_v62, %v2832_v57  ;;  %v3429_v61 = vpack.c.bf16 %v4139_v9, %v4133_v40  ;;  %v2795_v53 = vadd.f32 %v4139_v9, %v2794_v2  ;;  %v2833_v56 = vmul.f32 %v4139_v9, %v4139_v9  ;;  %v3866_v51 = vpop.f32.mrb[135].mxu0 }
 0x20c   : > { %3489 = vst [vmem:[%s5493_s17 + $0x48] sm:$0xff] %v3434_v59   ;;  %v3867_v13 = vadd.f32 %v3866_v51, %v3865_v34  ;;  %v4153_v36 = vadd.f32 %v5391_v10, %v3864_v16 }
 0x20d   : > { %3488 = vst [vmem:[%s5493_s17 + $0x40] sm:$0xff] %v3429_v61   ;;  %v2796_v6 = vadd.f32 %v4130_v42, %v2795_v53  ;;  %v2864_v46 = vadd.f32 %v2863_v20, %v2833_v56  ;;  %v4038_v18 = vpop.f32.mrb[4].mxu1 }
 0x20e   : > { %v4142_v30 = vadd.f32 %v4141_v8, %v4038_v18  ;;  %v2508_v35 = vpop.f32.mrb[5].mxu1  ;;  %v4159_v41 = vadd.f32 %v5395_v43, %v3867_v13 }
 0x20f   : > { %v2865_v58 = vadd.f32 %v2864_v46, %v2834_v45  ;;  %v4145_v49 = vadd.f32 %v5512_v23, %v2508_v35  ;;  %v2797_v37 = vadd.f32 %v4136_v31, %v2796_v6  ;;  %v4039_v14 = vpop.f32.mrb[6].mxu1 }
 0x210   : > { %v4148_v47 = vadd.f32 %v5526_v55, %v4039_v14  ;;  %v2511_v15 = vpop.f32.mrb[7].mxu1  ;;  %v3868_v60 = vpop.f32.mrb[136].mxu0  ;;  %v2838_v4 = vmul.f32 %v4142_v30, %v4142_v30 }
 0x211   : > { %v2798_v54 = vadd.f32 %v4145_v49, %v2797_v37  ;;  %v2836_v32 = vmul.f32 %v4145_v49, %v4145_v49  ;;  %v2866_v28 = vadd.f32 %v2865_v58, %v2835_v29  ;;  %v4151_v8 = vadd.f32 %v5516_v7, %v2511_v15  ;;  %v3869_v10 = vpop.f32.mrb[137].mxu0 }
 0x212   : > { %v3444_v63 = vpack.c.bf16 %v4148_v47, %v4142_v30  ;;  %v3871_v39 = vpop.f32.mrb[138].mxu0  ;;  %v3870_v21 = vadd.f32 %v3869_v10, %v3868_v60  ;;  %v2839_v42 = vmul.f32 %v4148_v47, %v4148_v47 }
 0x213   : > { %v2867_v44 = vadd.f32 %v2866_v28, %v2836_v32  ;;  %v3439_v12 = vpack.c.bf16 %v4151_v8, %v4145_v49  ;;  %v2799_v23 = vadd.f32 %v4151_v8, %v2798_v54  ;;  %v2837_v33 = vmul.f32 %v4151_v8, %v4151_v8  ;;  %v3872_v43 = vpop.f32.mrb[139].mxu0 }
 0x214   : > { %3491 = vst [vmem:[%s5493_s17 + $0x58] sm:$0xff] %v3444_v63   ;;  %v3873_v0 = vadd.f32 %v3872_v43, %v3871_v39  ;;  %v4168_v11 = vadd.f32 %v5413_v3, %v3870_v21 }
 0x215   : > { %3490 = vst [vmem:[%s5493_s17 + $0x50] sm:$0xff] %v3439_v12   ;;  %v2800_v55 = vadd.f32 %v4142_v30, %v2799_v23  ;;  %v2868_v25 = vadd.f32 %v2867_v44, %v2837_v33  ;;  %v4042_v22 = vpop.f32.mrb[8].mxu1 }
 0x216   : > { %v4154_v52 = vadd.f32 %v4153_v36, %v4042_v22  ;;  %v2524_v7 = vpop.f32.mrb[9].mxu1  ;;  %v4174_v17 = vadd.f32 %v5417_v24, %v3873_v0 }
 0x217   : > { %v2869_v40 = vadd.f32 %v2868_v25, %v2838_v4  ;;  %v4157_v19 = vadd.f32 %v5534_v38, %v2524_v7  ;;  %v2801_v48 = vadd.f32 %v4148_v47, %v2800_v55  ;;  %v4043_v31 = vpop.f32.mrb[10].mxu1 }
 0x218   : > { %v4160_v2 = vadd.f32 %v4159_v41, %v4043_v31  ;;  %v2527_v57 = vpop.f32.mrb[11].mxu1  ;;  %v3874_v27 = vpop.f32.mrb[140].mxu0  ;;  %v2842_v24 = vmul.f32 %v4154_v52, %v4154_v52 }
 0x219   : > { %v2802_v62 = vadd.f32 %v4157_v19, %v2801_v48  ;;  %v2840_v9 = vmul.f32 %v4157_v19, %v4157_v19  ;;  %v2870_v26 = vadd.f32 %v2869_v40, %v2839_v42  ;;  %v4163_v59 = vadd.f32 %v5538_v1, %v2527_v57  ;;  %v3875_v61 = vpop.f32.mrb[141].mxu0 }
 0x21a   : > { %v3454_v20 = vpack.c.bf16 %v4160_v2, %v4154_v52  ;;  %v3877_v34 = vpop.f32.mrb[142].mxu0  ;;  %v3876_v16 = vadd.f32 %v3875_v61, %v3874_v27  ;;  %v2843_v13 = vmul.f32 %v4160_v2, %v4160_v2 }
 0x21b   : > { %v2871_v3 = vadd.f32 %v2870_v26, %v2840_v9  ;;  %v3449_v53 = vpack.c.bf16 %v4163_v59, %v4157_v19  ;;  %v2803_v56 = vadd.f32 %v4163_v59, %v2802_v62  ;;  %v2841_v38 = vmul.f32 %v4163_v59, %v4163_v59  ;;  %v3878_v51 = vpop.f32.mrb[143].mxu0 }
 0x21c   : > { %3493 = vst [vmem:[%s5493_s17 + $0x68] sm:$0xff] %v3454_v20   ;;  %v3879_v18 = vadd.f32 %v3878_v51, %v3877_v34  ;;  %v4165_v1 = vadd.f32 %v5433_v5, %v3876_v16 }
 0x21d   : > { %3492 = vst [vmem:[%s5493_s17 + $0x60] sm:$0xff] %v3449_v53   ;;  %v2804_v45 = vadd.f32 %v4154_v52, %v2803_v56  ;;  %v2872_v6 = vadd.f32 %v2871_v3, %v2841_v38  ;;  %v4046_v46 = vpop.f32.mrb[12].mxu1 }
 0x21e   : > { %v2540_v29 = vpop.f32.mrb[13].mxu1  ;;  %v4171_v49 = vadd.f32 %v5436_v50, %v3879_v18  ;;  %v4166_v37 = vadd.f32 %v4165_v1, %v4046_v46 }
 0x21f   : > { %v2873_v30 = vadd.f32 %v2872_v6, %v2842_v24  ;;  %v4169_v35 = vadd.f32 %v4168_v11, %v2540_v29  ;;  %v2805_v36 = vadd.f32 %v4160_v2, %v2804_v45  ;;  %v4047_v58 = vpop.f32.mrb[14].mxu1 }
 0x220   : > { %v2543_v14 = vpop.f32.mrb[15].mxu1  ;;  %v4172_v54 = vadd.f32 %v4171_v49, %v4047_v58  ;;  %v2846_v60 = vmul.f32 %v4166_v37, %v4166_v37 }
 0x221   : > { %v2806_v41 = vadd.f32 %v4169_v35, %v2805_v36  ;;  %v2844_v47 = vmul.f32 %v4169_v35, %v4169_v35  ;;  %v2874_v15 = vadd.f32 %v2873_v30, %v2843_v13  ;;  %v4175_v32 = vadd.f32 %v4174_v17, %v2543_v14 }
 0x222   : > { %v3464_v8 = vpack.c.bf16 %v4172_v54, %v4166_v37  ;;  %v2847_v44 = vmul.f32 %v4172_v54, %v4172_v54 }
 0x223   : > { %v2875_v28 = vadd.f32 %v2874_v15, %v2844_v47  ;;  %v3459_v5 = vpack.c.bf16 %v4175_v32, %v4169_v35  ;;  %v2807_v63 = vadd.f32 %v4175_v32, %v2806_v41  ;;  %v2845_v10 = vmul.f32 %v4175_v32, %v4175_v32 }
 0x224   : > { %3495 = vst [vmem:[%s5493_s17 + $0x78] sm:$0xff] %v3464_v8  }
 0x225   : > { %3494 = vst [vmem:[%s5493_s17 + $0x70] sm:$0xff] %v3459_v5   ;;  %v2808_v12 = vadd.f32 %v4166_v37, %v2807_v63  ;;  %v2876_v50 = vadd.f32 %v2875_v28, %v2845_v10 }
 0x227   : > { %v2809_v23 = vadd.f32 %v4172_v54, %v2808_v12  ;;  %v2877_v33 = vadd.f32 %v2876_v50, %v2846_v60 }
 0x229   : > { %v2810_v39 = vrot.slane %v2809_v23, 4  ;;  %v2878_v21 = vadd.f32 %v2877_v33, %v2847_v44 }
 0x22b   : > { %v2811_v43 = vadd.f32 %v2810_v39, %v2809_v23  ;;  %v2879_v4 = vrot.slane %v2878_v21, 4 }
 0x22d   : > { %v2812_v55 = vrot.slane %v2811_v43, 2  ;;  %v2880_v25 = vadd.f32 %v2879_v4, %v2878_v21 }
 0x22f   : > { %v2813_v22 = vadd.f32 %v2812_v55, %v2811_v43  ;;  %v2881_v0 = vrot.slane %v2880_v25, 2 }
 0x231   : > { %v2814_v42 = vrot.slane %v2813_v22, 1  ;;  %v2882_v52 = vadd.f32 %v2881_v0, %v2880_v25 }
 0x233   : > { %v2883_v7 = vrot.slane %v2882_v52, 1  ;;  %v2815_v11 = vadd.f32 %v2814_v42, %v2813_v22 }
 0x235   : > { %v2884_v40 = vadd.f32 %v2883_v7, %v2882_v52 }
 0x237   : > { %v2886_v19 = vsel %vm899_vm0, %v2815_v11, %v2884_v40 }
 0x238   : > { %2887 = vst [vmem:[%s465_s20] sm:$0x3] %v2886_v19 }
 0x239 PF: > { %s18_s2 = sadd.s32 1, %s4343_s2   ;;  %s5610_s24 = smov %s4339_s1 }
 0x23a   : > { %p15_p5 = scmp.ge.s32.totalorder %s18_s2, 4   ;;  %s5611_s1 = smov %s5613_s25 }
 0x23c   :  { %17 = sbr.rel (!%p15_p5) target bundleno = 2 (0x2), region = 94 }

// kernel: double_conv.3
= control target key start
LH: loop header
LB: loop body
LE: loop exit
PB: predicated region body
PF: predicated region fallthrough
CT: control target
= control target key end

     0   :  { %s4227_s18 = smov 0   ;;  %s4229_s19 = smov 0   ;;  %s5324_s0 = inlined_call_operand.vmem [shape: bf16[2,16,16,128], index: 0, kind: input, shape index: {}, may-alias: {0,1,2}]   ;;  %s5325_s1 = inlined_call_operand.vmem [shape: bf16[2,16,16,128], index: 1, kind: input, shape index: {}, may-alias: {0,1,2}]   ;;  %s5326_s2 = inlined_call_operand.vmem [shape: bf16[2,16,16,128], index: 2, kind: input, shape index: {}, may-alias: {0,1,2}]   ;;  %s5327_s3 = inlined_call_operand.vmem [shape: bf16[3,384,128], index: 3, kind: input, shape index: {}]   ;;  %s5328_s4 = inlined_call_operand.vmem [shape: bf16[2,16,16,128], index: 4, kind: output, shape index: {0}]   ;;  %s5329_s5 = inlined_call_operand.vmem [shape: f32[2,1,2,128], index: 5, kind: output, shape index: {1}]  }
   0x1   :  { %s4231_s20 = smov 0  }
   0x2 LB: > { %s28_s1 = sadd.s32 1, %s4190_s19  ;;  %p2967_p0 = scmp.ge.s32.totalorder %s4194_s20, 1  ;;  %s4194_s20 = sphi %s4231_s20, %s16_s20   ;;  %s4190_s19 = sphi %s4229_s19, %s5349_s19   ;;  %s4186_s18 = sphi %s4227_s18, %s5348_s18  }
   0x3   : > { %p30_p1 = scmp.ge.s32.totalorder %s28_s1, 2  ;;  %p278_p2 = scmp.lt.s32.totalorder %s4194_s20, 3 }
   0x5   : > { %s5351_s1 = smov (%p30_p1, %s28_s1), 0  ;;  %p279_p3 = pnand %p2967_p0, %p278_p2 }
   0x7   : > { %282 = sbr.rel (%p279_p3) target bundleno = 570 (0x23a), region = 36 }
   0xe   : > { %v4082_v0 = vld [vmem:[%s5327_s3 + $0x100] sm:$0xff]   ;;  %v4085_v3 = vld [vmem:[%s5327_s3 + $0x108] sm:$0xff]   ;;  %v4088_v6 = vld [vmem:[%s5327_s3 + $0x110] sm:$0xff]   ;;  %p350_p4 = scmp.lt.s32.totalorder %s4186_s18, 1  ;;  %vm834_vm0 = vcmask 1047552   ;;  %vm767_vm1 = vcmask 1040384  }
   0xf   : > { %v4253_v1 = vld [vmem:[%s5327_s3 + $0x140] sm:$0xff]   ;;  %3329 = vmatprep.subr.bf16.mxu0 %v4082_v0  ;;  %v4266_v4 = vld [vmem:[%s5327_s3 + $0x148] sm:$0xff]   ;;  %v4278_v7 = vld [vmem:[%s5327_s3 + $0x150] sm:$0xff]   ;;  %vm835_vm2 = vsmask.f32 7424 }
  0x10   : > { %v4084_v2 = vld [vmem:[%s5327_s3 + $0xc0] sm:$0xff]   ;;  %3881 = vmatprep.subr.bf16.mxu1 %v4253_v1  ;;  %v4087_v5 = vld [vmem:[%s5327_s3 + $0xc8] sm:$0xff]   ;;  %v4090_v8 = vld [vmem:[%s5327_s3 + $0xd0] sm:$0xff]   ;;  %s5353_s18 = smov (!%p350_p4, %s4186_s18), 1  ;;  %vm768_vm3 = vsmask.f32 256 }
  0x11   : > { %3330 = vmatpush3.bf16.msra.mxu0 %v4084_v2  ;;  %3889 = vmatpush3.bf16.msra.mxu1 %v4253_v1  ;;  %v4091_v9 = vld [vmem:[%s5327_s3 + $0x118] sm:$0xff]   ;;  %v4094_v12 = vld [vmem:[%s5327_s3 + $0x120] sm:$0xff]   ;;  %v4097_v15 = vld [vmem:[%s5327_s3 + $0x128] sm:$0xff]   ;;  %s3197_s6 = sshll.u32 %s5353_s18, 7 }
  0x12   : > { %3331 = vmatprep.subr.bf16.mxu0 %v4085_v3  ;;  %3882 = vmatprep.subr.bf16.mxu1 %v4266_v4  ;;  %v4291_v10 = vld [vmem:[%s5327_s3 + $0x158] sm:$0xff]   ;;  %v4305_v13 = vld [vmem:[%s5327_s3 + $0x160] sm:$0xff]   ;;  %v4321_v16 = vld [vmem:[%s5327_s3 + $0x168] sm:$0xff]   ;;  %s4342_s15 = scalar_lea.vmem %s5324_s0, %s3197_s6  ;;  %s5248_s16 = scalar_lea.vmem %s5328_s4, %s3197_s6 }
  0x13   : > { %v4093_v11 = vld [vmem:[%s5327_s3 + $0xd8] sm:$0xff]   ;;  %v4096_v14 = vld [vmem:[%s5327_s3 + $0xe0] sm:$0xff]   ;;  %v4099_v17 = vld [vmem:[%s5327_s3 + $0xe8] sm:$0xff]   ;;  %s2976_s6 = sshll.u32 %s5353_s18, 1 }
  0x14   : > { %v4100_v18 = vld [vmem:[%s5327_s3 + $0x130] sm:$0xff]   ;;  %v4103_v21 = vld [vmem:[%s5327_s3 + $0x138] sm:$0xff]   ;;  %v4357_v23 = vld [vmem:[%s4342_s15] sm:$0xff]   ;;  %s411_s21 = scalar_lea.vmem %s5329_s5, %s2976_s6 }
  0x15   : > { %3332 = vmatpush3.bf16.msra.mxu0 %v4087_v5  ;;  %3890 = vmatpush3.bf16.msra.mxu1 %v4266_v4  ;;  %v4335_v19 = vld [vmem:[%s5327_s3 + $0x170] sm:$0xff]   ;;  %v4353_v22 = vld [vmem:[%s5327_s3 + $0x178] sm:$0xff]   ;;  %v4361_v24 = vld [vmem:[%s4342_s15 + $0x40] sm:$0xff]   ;;  %v647_v26 = vshrl.u32 %v4357_v23, 16  ;;  %v650_v27 = vshll.u32 %v4357_v23, 16  ;;  %v4196_v5 = vmov 0  }
  0x16   : > { %3333 = vmatprep.subr.bf16.mxu0 %v4088_v6  ;;  %3883 = vmatprep.subr.bf16.mxu1 %v4278_v7  ;;  %v4102_v20 = vld [vmem:[%s5327_s3 + $0xf0] sm:$0xff]   ;;  %v4105_v25 = vld [vmem:[%s5327_s3 + $0xf8] sm:$0xff]   ;;  %v703_v28 = vshrl.u32 %v4361_v24, 16  ;;  %v706_v29 = vshll.u32 %v4361_v24, 16  ;;  %vm4375_vm4 = vmand %vm767_vm1, %vm768_vm3  ;;  %v4470_v6 = vcombine.low %v4196_v5, %v4196_v5 }
  0x17   : > { %1161 = vmatprep.mubr.bf16.mxu0 %v4357_v23  ;;  %v649_v30 = vrot.slane %v647_v26, 7  ;;  %v4380_v32 = vld [vmem:[%s4342_s15 + $0x48] sm:$0xff]   ;;  %v4109_v34 = vld [vmem:[%s5327_s3 + $0x40] sm:$0xff]   ;;  %vm4390_vm5 = vmand %vm834_vm0, %vm835_vm2 }
  0x18   : > { %v804_v33 = vrot.slane %v706_v29, 1  ;;  %v710_v37 = vshrl.u32 %v4380_v32, 16  ;;  %v713_v38 = vshll.u32 %v4380_v32, 16  ;;  %v4110_v42 = vld [vmem:[%s5327_s3] sm:$0xff]   ;;  %v4411_v43 = vld [vmem:[%s4342_s15 + $0x8] sm:$0xff]   ;;  %v4422_v46 = vld [vmem:[%s4342_s15 + $0x50] sm:$0xff]  }
  0x19   : > { %3334 = vmatpush3.bf16.msra.mxu0 %v4090_v8  ;;  %3891 = vmatpush3.bf16.msra.mxu1 %v4278_v7  ;;  %v652_v36 = vor.u32 %v650_v27, %v649_v30  ;;  %v4111_v45 = vld [vmem:[%s5327_s3 + $0x48] sm:$0xff]   ;;  %v654_v48 = vshrl.u32 %v4411_v43, 16  ;;  %v657_v49 = vshll.u32 %v4411_v43, 16  ;;  %v717_v50 = vshrl.u32 %v4422_v46, 16  ;;  %v4439_v55 = vld [vmem:[%s4342_s15 + $0x58] sm:$0xff]   ;;  %v4116_v61 = vld [vmem:[%s5327_s3 + $0x50] sm:$0xff]  }
  0x1a   : > { %3335 = vmatprep.subr.bf16.mxu0 %v4091_v9  ;;  %3884 = vmatprep.subr.bf16.mxu1 %v4291_v10  ;;  %v805_v39 = vor.u32 %v804_v33, %v703_v28  ;;  %v806_v41 = vrot.slane %v713_v38, 1  ;;  %v720_v51 = vshll.u32 %v4422_v46, 16  ;;  %v4112_v57 = vld [vmem:[%s5327_s3 + $0x8] sm:$0xff]   ;;  %v724_v59 = vshrl.u32 %v4439_v55, 16  ;;  %v4117_v2 = vld [vmem:[%s5327_s3 + $0x10] sm:$0xff]   ;;  %v4118_v9 = vld [vmem:[%s5327_s3 + $0x58] sm:$0xff]  }
  0x1b   : > { %v4403_v40 = vsel %vm4375_vm4, 0, %v652_v36  ;;  %v656_v53 = vrot.slane %v654_v48, 7  ;;  %v790_v54 = vrot.slane %v657_v49, 1  ;;  %v727_v60 = vshll.u32 %v4439_v55, 16  ;;  %v4467_v3 = vld [vmem:[%s4342_s15 + $0x10] sm:$0xff]   ;;  %v4119_v30 = vld [vmem:[%s5327_s3 + $0x18] sm:$0xff]  }
  0x1c   : > { %v4415_v44 = vsel %vm4390_vm5, %v805_v39, 0  ;;  %v807_v47 = vor.u32 %v806_v41, %v710_v37  ;;  %v808_v56 = vrot.slane %v720_v51, 1  ;;  %v4123_v41 = vld [vmem:[%s5327_s3 + $0x60] sm:$0xff]   ;;  %v4560_v5 = vld [vmem:[%s4342_s15 + $0x78] sm:$0xff]   ;;  %v4163_v35 = vld [vmem:[%s5327_s3 + $0x208] sm:$0xff]  }
  0x1d   : > { %3336 = vmatpush3.bf16.msra.mxu0 %v4093_v11  ;;  %3892 = vmatpush3.bf16.msra.mxu1 %v4291_v10  ;;  %v659_v58 = vor.u32 %v657_v49, %v656_v53  ;;  %v4453_v62 = vor.u32 %v790_v54, %v654_v48  ;;  %v4480_v11 = vld [vmem:[%s4342_s15 + $0x60] sm:$0xff]   ;;  %v4530_v49 = vld [vmem:[%s4342_s15 + $0x18] sm:$0xff]   ;;  %v4125_v54 = vld [vmem:[%s5327_s3 + $0x68] sm:$0xff]  }
  0x1e   : > { %3337 = vmatprep.subr.bf16.mxu0 %v4094_v12  ;;  %3885 = vmatprep.subr.bf16.mxu1 %v4305_v13  ;;  %v4434_v52 = vsel %vm4390_vm5, %v807_v47, 0  ;;  %v809_v63 = vor.u32 %v808_v56, %v717_v50  ;;  %v5335_v12 = vshrl.u32 %v4467_v3, 16  ;;  %v4124_v48 = vld [vmem:[%s5327_s3 + $0x20] sm:$0xff]   ;;  %v4541_v56 = vld [vmem:[%s4342_s15 + $0x70] sm:$0xff]  }
  0x1f   : > { %3769 = vmatprep.mubr.bf16.mxu1 %v4415_v44  ;;  %v4459_v0 = vsel %vm4375_vm4, 0, %v659_v58  ;;  %v671_v58 = vshll.u32 %v4530_v49, 16  ;;  %v4829_v31 = vld [vmem:[%s5327_s3 + $0x200] sm:$0xff]  }
  0x20   : > { %v4474_v8 = vsel %vm4390_vm5, %v809_v63, 0  ;;  %v748_v63 = vshll.u32 %v4541_v56, 16 }
  0x21   : > { %3338 = vmatpush3.bf16.msra.mxu0 %v4096_v14  ;;  %3893 = vmatpush3.bf16.msra.mxu1 %v4305_v13  ;;  %v664_v14 = vshll.u32 %v4467_v3, 16 }
  0x22   : > { %3339 = vmatprep.subr.bf16.mxu0 %v4097_v15  ;;  %3886 = vmatprep.subr.bf16.mxu1 %v4321_v16  ;;  %v731_v15 = vshrl.u32 %v4480_v11, 16 }
  0x25   : > { %3340 = vmatpush3.bf16.msra.mxu0 %v4099_v17  ;;  %3894 = vmatpush3.bf16.msra.mxu1 %v4321_v16  ;;  %v734_v17 = vshll.u32 %v4480_v11, 16 }
  0x26   : > { %3341 = vmatprep.subr.bf16.mxu0 %v4100_v18  ;;  %3887 = vmatprep.subr.bf16.mxu1 %v4335_v19 }
  0x27   : > { %v812_v33 = vrot.slane %v734_v17, 1 }
  0x29   : > { %3342 = vmatpush3.bf16.msra.mxu0 %v4102_v20  ;;  %3895 = vmatpush3.bf16.msra.mxu1 %v4335_v19  ;;  %v663_v20 = vrot.slane %v5335_v12, 7  ;;  %v813_v39 = vor.u32 %v812_v33, %v731_v15  ;;  %v923_v33 = vshrl.u32 %v4560_v5, 16 }
  0x2a   : > { %3343 = vmatprep.subr.bf16.mxu0 %v4103_v21  ;;  %3888 = vmatprep.subr.bf16.mxu1 %v4353_v22  ;;  %v4499_v21 = vld [vmem:[%s4342_s15 + $0x68] sm:$0xff]  }
  0x2b   : > { %v738_v36 = vshrl.u32 %v4499_v21, 16  ;;  %v4535_v53 = vsel %vm4390_vm5, %v813_v39, 0  ;;  %v4130_v39 = vld [vmem:[%s5327_s3 + $0x70] sm:$0xff]  }
  0x2d   : > { %3344 = vmatpush3.bf16.msra.mxu0 %v4105_v25  ;;  %3896 = vmatpush3.bf16.msra.mxu1 %v4353_v22  ;;  %v5330_v25 = vshrl.u32 %v4470_v6, 16 }
  0x2e   : > { %3737 = vmatprep.subr.bf16.mxu0 %v4253_v1  ;;  %3465 = vmatprep.subr.bf16.mxu1 %v4109_v34  ;;  %v666_v34 = vor.u32 %v664_v14, %v663_v20  ;;  %v816_v20 = vrot.slane %v748_v63, 1 }
  0x30   : > { %1162 = vmatmul.mubr.bf16.vlgmr.msra.gmra.mrb[0].mxu0 %v4403_v40  ;;  %3770 = vmatmul.mubr.bf16.vlgmr.msra.gmra.mrb[0].mxu1 %v4434_v52 }
  0x31   : > { %3738 = vmatpush3.bf16.msra.mxu0 %v4253_v1  ;;  %1169 = vmatprep.mubr.bf16.mxu0 %v4411_v43  ;;  %v810_v1 = vrot.slane %v727_v60, 1 }
  0x32   : > { %3739 = vmatprep.subr.bf16.mxu0 %v4266_v4  ;;  %3466 = vmatpush3.bf16.msra.mxu1 %v4110_v42  ;;  %v5332_v42 = vshll.u32 %v4470_v6, 16 }
  0x33   : > { %3467 = vmatprep.subr.bf16.mxu1 %v4111_v45  ;;  %3773 = vmatprep.mubr.bf16.mxu1 %v4474_v8  ;;  %v4522_v45 = vsel %vm4375_vm4, 0, %v666_v34 }
  0x35   : > { %3740 = vmatpush3.bf16.msra.mxu0 %v4266_v4  ;;  %v811_v4 = vor.u32 %v810_v1, %v724_v59 }
  0x36   : > { %3741 = vmatprep.subr.bf16.mxu0 %v4278_v7  ;;  %3468 = vmatpush3.bf16.msra.mxu1 %v4112_v57 }
  0x37   : > { %3469 = vmatprep.subr.bf16.mxu1 %v4116_v61  ;;  %v4493_v18 = vsel %vm4390_vm5, %v811_v4, 0  ;;  %v745_v61 = vshrl.u32 %v4541_v56, 16  ;;  %v4126_v4 = vld [vmem:[%s5327_s3 + $0x28] sm:$0xff]  }
  0x38   : > { %1170 = vmatmul.mubr.bf16.gmra.mrb[4].mxu0 %v4459_v0  ;;  %3774 = vmatmul.mubr.bf16.gmra.mrb[4].mxu1 %v4493_v18 }
  0x39   : > { %1177 = vmatprep.mubr.bf16.mxu0 %v4467_v3  ;;  %3742 = vmatpush3.bf16.msra.mxu0 %v4278_v7  ;;  %v741_v7 = vshll.u32 %v4499_v21, 16  ;;  %v817_v34 = vor.u32 %v816_v20, %v745_v61 }
  0x3a   : > { %3743 = vmatprep.subr.bf16.mxu0 %v4291_v10  ;;  %3470 = vmatpush3.bf16.msra.mxu1 %v4117_v2 }
  0x3b   : > { %3471 = vmatprep.subr.bf16.mxu1 %v4118_v9  ;;  %v814_v47 = vrot.slane %v741_v7, 1  ;;  %3777 = vmatprep.mubr.bf16.mxu1 %v4535_v53  ;;  %v642_v9 = vrot.slane %v5330_v25, 7  ;;  %v4613_v25 = vld [vmem:[%s4342_s15 + $0x28] sm:$0xff]  }
  0x3d   : > { %3744 = vmatpush3.bf16.msra.mxu0 %v4291_v10  ;;  %v815_v57 = vor.u32 %v814_v47, %v738_v36  ;;  %v5333_v10 = vshrl.u32 %v4530_v49, 16 }
  0x3e   : > { %3745 = vmatprep.subr.bf16.mxu0 %v4305_v13  ;;  %3472 = vmatpush3.bf16.msra.mxu1 %v4119_v30 }
  0x3f   : > { %3473 = vmatprep.subr.bf16.mxu1 %v4123_v41  ;;  %v4554_v1 = vsel %vm4390_vm5, %v815_v57, 0  ;;  %v670_v2 = vrot.slane %v5333_v10, 7  ;;  %v705_v41 = vrot.slane %v703_v28, 7  ;;  %v4593_v57 = vld [vmem:[%s4342_s15 + $0x20] sm:$0xff]   ;;  %v4132_v28 = vld [vmem:[%s5327_s3 + $0x78] sm:$0xff]  }
  0x40   : > { %1178 = vmatmul.mubr.bf16.gmra.mrb[8].mxu0 %v4522_v45  ;;  %3778 = vmatmul.mubr.bf16.gmra.mrb[8].mxu1 %v4554_v1 }
  0x41   : > { %1185 = vmatprep.mubr.bf16.mxu0 %v4530_v49  ;;  %3746 = vmatpush3.bf16.msra.mxu0 %v4305_v13  ;;  %v673_v30 = vor.u32 %v671_v58, %v670_v2  ;;  %v926_v13 = vshll.u32 %v4560_v5, 16  ;;  %v4598_v2 = vsel %vm4390_vm5, %v817_v34, 0  ;;  %v708_v20 = vor.u32 %v706_v29, %v705_v41 }
  0x42   : > { %3747 = vmatprep.subr.bf16.mxu0 %v4321_v16  ;;  %3474 = vmatpush3.bf16.msra.mxu1 %v4124_v48  ;;  %v678_v34 = vshll.u32 %v4593_v57, 16 }
  0x43   : > { %3475 = vmatprep.subr.bf16.mxu1 %v4125_v54  ;;  %v4585_v47 = vsel %vm4375_vm4, 0, %v673_v30  ;;  %v931_v48 = vrot.slane %v926_v13, 1  ;;  %v4131_v54 = vld [vmem:[%s5327_s3 + $0x30] sm:$0xff]   ;;  %3781 = vmatprep.mubr.bf16.mxu1 %v4598_v2  ;;  %v5331_v30 = vshrl.u32 %v4593_v57, 16  ;;  %v4617_v29 = vsel %vm4375_vm4, 0, %v708_v20 }
  0x44   : > { %v5334_v20 = vshrl.u32 %v4613_v25, 16 }
  0x45   : > { %3748 = vmatpush3.bf16.msra.mxu0 %v4321_v16  ;;  %v932_v16 = vor.u32 %v931_v48, %v923_v33  ;;  %v677_v41 = vrot.slane %v5331_v30, 7  ;;  %v645_v48 = vor.u32 %v5332_v42, %v642_v9  ;;  %v4135_v30 = vld [vmem:[%s5327_s3 + $0x80] sm:$0xff]   ;;  %v685_v42 = vshll.u32 %v4613_v25, 16 }
  0x46   : > { %3749 = vmatprep.subr.bf16.mxu0 %v4335_v19  ;;  %3476 = vmatpush3.bf16.msra.mxu1 %v4126_v4  ;;  %v684_v9 = vrot.slane %v5334_v20, 7 }
  0x47   : > { %3477 = vmatprep.subr.bf16.mxu1 %v4130_v39  ;;  %v4621_v4 = vsel %vm4390_vm5, %v932_v16, 0  ;;  %v4133_v39 = vld [vmem:[%s5327_s3 + $0x38] sm:$0xff]   ;;  %v4635_v16 = vld [vmem:[%s4342_s15 + $0x30] sm:$0xff]  }
  0x48   : > { %1186 = vmatmul.mubr.bf16.gmra.mrb[12].mxu0 %v4585_v47  ;;  %3782 = vmatmul.mubr.bf16.gmra.mrb[12].mxu1 %v4621_v4  ;;  %v689_v20 = vshrl.u32 %v4635_v16, 16 }
  0x49   : > { %1193 = vmatprep.mubr.bf16.mxu0 %v4593_v57  ;;  %3750 = vmatpush3.bf16.msra.mxu0 %v4335_v19  ;;  %v680_v19 = vor.u32 %v678_v34, %v677_v41  ;;  %v719_v41 = vrot.slane %v717_v50, 7  ;;  %v687_v50 = vor.u32 %v685_v42, %v684_v9 }
  0x4a   : > { %3751 = vmatprep.subr.bf16.mxu0 %v4353_v22  ;;  %3478 = vmatpush3.bf16.msra.mxu1 %v4131_v54  ;;  %v712_v54 = vrot.slane %v710_v37, 7  ;;  %v726_v37 = vrot.slane %v724_v59, 7 }
  0x4b   : > { %1627 = vmatprep.mubr.bf16.mxu1 %v4470_v6  ;;  %3479 = vmatprep.subr.bf16.mxu1 %v4132_v28  ;;  %v4649_v10 = vsel %vm4375_vm4, 0, %v680_v19  ;;  %v4658_v28 = vsel %vm4375_vm4, 0, %v645_v48  ;;  %v722_v19 = vor.u32 %v720_v51, %v719_v41  ;;  %v692_v48 = vshll.u32 %v4635_v16, 16 }
  0x4c   : > { %v715_v12 = vor.u32 %v713_v38, %v712_v54  ;;  %v4138_v38 = vld [vmem:[%s5327_s3 + $0x88] sm:$0xff]   ;;  %v740_v51 = vrot.slane %v738_v36, 7  ;;  %v691_v36 = vrot.slane %v689_v20, 7  ;;  %v4693_v54 = vld [vmem:[%s4342_s15 + $0x38] sm:$0xff]  }
  0x4d   : > { %3752 = vmatpush3.bf16.msra.mxu0 %v4353_v22  ;;  %v733_v22 = vrot.slane %v731_v15, 7  ;;  %v4683_v15 = vsel %vm4375_vm4, 0, %v722_v19 }
  0x4e   : > { %3480 = vmatpush3.bf16.msra.mxu1 %v4133_v39  ;;  %v4679_v59 = vsel %vm4375_vm4, 0, %v715_v12  ;;  %v729_v39 = vor.u32 %v727_v60, %v726_v37  ;;  %v4140_v12 = vld [vmem:[%s5327_s3 + $0x90] sm:$0xff]   ;;  %v743_v41 = vor.u32 %v741_v7, %v740_v51  ;;  %v747_v60 = vrot.slane %v745_v61, 7 }
  0x4f   : > { %3785 = vmatprep.subr.bf16.mxu1 %v4135_v30  ;;  %v736_v9 = vor.u32 %v734_v17, %v733_v22  ;;  %v925_v37 = vrot.slane %v923_v33, 7  ;;  %v788_v7 = vrot.slane %v650_v27, 1  ;;  %v4717_v61 = vsel %vm4375_vm4, 0, %v687_v50  ;;  %v4145_v27 = vld [vmem:[%s5327_s3 + $0x1c0] sm:$0xff]  }
  0x50   : > { %1194 = vmatmul.mubr.bf16.gmra.mrb[16].mxu0 %v4649_v10  ;;  %v4705_v17 = vsel %vm4375_vm4, 0, %v729_v39  ;;  %v750_v22 = vor.u32 %v748_v63, %v747_v60  ;;  %v4728_v51 = vsel %vm4390_vm5, %v4453_v62, 0  ;;  %3601 = vmatprep.subr.bf16.mxu0 %v4145_v27  ;;  %v696_v63 = vshrl.u32 %v4693_v54, 16  ;;  %v4141_v62 = vld [vmem:[%s5327_s3 + $0x98] sm:$0xff]  }
  0x51   : > { %1201 = vmatprep.mubr.bf16.mxu0 %v4613_v25  ;;  %1628 = vmatmul.mubr.bf16.vlgmr.msra.gmra.mrb[16].mxu1 %v4658_v28  ;;  %v4709_v19 = vsel %vm4375_vm4, 0, %v736_v9  ;;  %v928_v33 = vor.u32 %v926_v13, %v925_v37  ;;  %v789_v50 = vor.u32 %v788_v7, %v647_v26  ;;  %v792_v26 = vrot.slane %v664_v14, 1 }
  0x52   : > { %3786 = vmatpush3.bf16.msra.mxu1 %v4135_v30  ;;  %1635 = vmatprep.mubr.bf16.mxu1 %v4357_v23  ;;  %v4721_v30 = vsel %vm4375_vm4, 0, %v743_v41  ;;  %v4739_v39 = vsel %vm4375_vm4, 0, %v750_v22  ;;  %v794_v13 = vrot.slane %v671_v58, 1  ;;  %v796_v41 = vrot.slane %v678_v34, 1 }
  0x53   : > { %3787 = vmatprep.subr.bf16.mxu1 %v4138_v38  ;;  %v4747_v9 = vsel %vm4375_vm4, 0, %v928_v33  ;;  %v4751_v23 = vsel %vm4390_vm5, %v789_v50, 0  ;;  %v5340_v60 = vshrl.u32 %v4467_v3, 16  ;;  %v5341_v7 = vshrl.u32 %v4530_v49, 16 }
  0x54   : > { %v798_v27 = vrot.slane %v685_v42, 1  ;;  %v699_v14 = vshll.u32 %v4693_v54, 16  ;;  %v5342_v58 = vshrl.u32 %v4593_v57, 16  ;;  %v800_v33 = vrot.slane %v692_v48, 1 }
  0x55   : > { %v793_v37 = vor.u32 %v792_v26, %v5340_v60  ;;  %v795_v22 = vor.u32 %v794_v13, %v5341_v7  ;;  %v698_v50 = vrot.slane %v696_v63, 7 }
  0x56   : > { %3788 = vmatpush3.bf16.msra.mxu1 %v4138_v38  ;;  %v694_v38 = vor.u32 %v692_v48, %v691_v36  ;;  %v797_v36 = vor.u32 %v796_v41, %v5342_v58  ;;  %v801_v41 = vor.u32 %v800_v33, %v689_v20  ;;  %v802_v20 = vrot.slane %v699_v14, 1  ;;  %v4150_v33 = vld [vmem:[%s5327_s3 + $0x190] sm:$0xff]  }
  0x57   : > { %3789 = vmatprep.subr.bf16.mxu1 %v4140_v12  ;;  %v4775_v34 = vsel %vm4390_vm5, %v793_v37, 0  ;;  %v4779_v42 = vsel %vm4390_vm5, %v795_v22, 0  ;;  %v701_v7 = vor.u32 %v699_v14, %v698_v50  ;;  %v4144_v22 = vld [vmem:[%s5327_s3 + $0xb0] sm:$0xff]   ;;  %v4148_v14 = vld [vmem:[%s5327_s3 + $0x188] sm:$0xff]   ;;  %v4151_v50 = vld [vmem:[%s5327_s3 + $0x1d8] sm:$0xff]  }
  0x58   : > { %1202 = vmatmul.mubr.bf16.gmra.mrb[20].mxu0 %v4717_v61  ;;  %v4785_v48 = vsel %vm4375_vm4, 0, %v694_v38  ;;  %v4789_v13 = vsel %vm4390_vm5, %v797_v36, 0  ;;  %v4143_v38 = vld [vmem:[%s5327_s3 + $0xa8] sm:$0xff]   ;;  %v4803_v37 = vsel %vm4390_vm5, %v801_v41, 0  ;;  %v4149_v36 = vld [vmem:[%s5327_s3 + $0x1d0] sm:$0xff]  }
  0x59   : > { %1209 = vmatprep.mubr.bf16.mxu0 %v4635_v16  ;;  %1636 = vmatmul.mubr.bf16.gmra.mrb[20].mxu1 %v4403_v40  ;;  %v4142_v40 = vld [vmem:[%s5327_s3 + $0xa0] sm:$0xff]   ;;  %v4156_v41 = vld [vmem:[%s5327_s3 + $0x1e8] sm:$0xff]  }
  0x5a   : > { %1643 = vmatprep.mubr.bf16.mxu1 %v4411_v43  ;;  %3790 = vmatpush3.bf16.msra.mxu1 %v4140_v12  ;;  %v5343_v12 = vshrl.u32 %v4613_v25, 16 }
  0x5b   : > { %3791 = vmatprep.subr.bf16.mxu1 %v4141_v62 }
  0x5c   : > { %v799_v26 = vor.u32 %v798_v27, %v5343_v12  ;;  %v4813_v27 = vsel %vm4375_vm4, 0, %v701_v7  ;;  %v4154_v12 = vld [vmem:[%s5327_s3 + $0x1e0] sm:$0xff]  }
  0x5e   : > { %v4795_v60 = vsel %vm4390_vm5, %v799_v26, 0  ;;  %3792 = vmatpush3.bf16.msra.mxu1 %v4141_v62  ;;  %v803_v62 = vor.u32 %v802_v20, %v696_v63  ;;  %v4153_v63 = vld [vmem:[%s5327_s3 + $0xb8] sm:$0xff]   ;;  %v4155_v26 = vld [vmem:[%s5327_s3 + $0x1a0] sm:$0xff]   ;;  %v4157_v20 = vld [vmem:[%s5327_s3 + $0x1a8] sm:$0xff]  }
  0x5f   : > { %3793 = vmatprep.subr.bf16.mxu1 %v4142_v40 }
  0x60   : > { %1210 = vmatmul.mubr.bf16.gmra.mrb[24].mxu0 %v4785_v48  ;;  %v4817_v58 = vsel %vm4390_vm5, %v803_v62, 0  ;;  %v4158_v62 = vld [vmem:[%s5327_s3 + $0x1f0] sm:$0xff]  }
  0x61   : > { %1217 = vmatprep.mubr.bf16.mxu0 %v4693_v54  ;;  %1644 = vmatmul.mubr.bf16.gmra.mrb[24].mxu1 %v4459_v0 }
  0x62   : > { %1651 = vmatprep.mubr.bf16.mxu1 %v4467_v3  ;;  %3794 = vmatpush3.bf16.msra.mxu1 %v4142_v40  ;;  %v4152_v40 = vld [vmem:[%s5327_s3 + $0x198] sm:$0xff]  }
  0x63   : > { %3795 = vmatprep.subr.bf16.mxu1 %v4143_v38 }
  0x66   : > { %3796 = vmatpush3.bf16.msra.mxu1 %v4143_v38  ;;  %v5344_v38 = vshll.u32 %v4470_v6, 16 }
  0x67   : > { %3797 = vmatprep.subr.bf16.mxu1 %v4144_v22 }
  0x68   : > { %1218 = vmatmul.mubr.bf16.gmra.mrb[28].mxu0 %v4813_v27  ;;  %v786_v7 = vrot.slane %v5344_v38, 1 }
  0x69   : > { %1225 = vmatprep.mubr.bf16.mxu0 %v4361_v24  ;;  %1652 = vmatmul.mubr.bf16.gmra.mrb[28].mxu1 %v4522_v45 }
  0x6a   : > { %1659 = vmatprep.mubr.bf16.mxu1 %v4530_v49  ;;  %3798 = vmatpush3.bf16.msra.mxu1 %v4144_v22  ;;  %v5345_v22 = vshrl.u32 %v4470_v6, 16 }
  0x6b   : > { %3799 = vmatprep.subr.bf16.mxu1 %v4153_v63 }
  0x6e   : > { %3800 = vmatpush3.bf16.msra.mxu1 %v4153_v63  ;;  %v787_v63 = vor.u32 %v786_v7, %v5345_v22 }
  0x6f   : > { %3833 = vmatprep.subr.bf16.mxu1 %v4829_v31 }
  0x70   : > { %1226 = vmatmul.mubr.bf16.gmra.mrb[32].mxu0 %v4617_v29 }
  0x71   : > { %1233 = vmatprep.mubr.bf16.mxu0 %v4380_v32  ;;  %1660 = vmatmul.mubr.bf16.gmra.mrb[32].mxu1 %v4585_v47 }
  0x72   : > { %1667 = vmatprep.mubr.bf16.mxu1 %v4593_v57 }
  0x78   : > { %1234 = vmatmul.mubr.bf16.gmra.mrb[36].mxu0 %v4679_v59 }
  0x79   : > { %1241 = vmatprep.mubr.bf16.mxu0 %v4422_v46  ;;  %1668 = vmatmul.mubr.bf16.gmra.mrb[36].mxu1 %v4649_v10 }
  0x7a   : > { %1675 = vmatprep.mubr.bf16.mxu1 %v4613_v25 }
  0x80   : > { %1242 = vmatmul.mubr.bf16.gmra.mrb[40].mxu0 %v4683_v15 }
  0x81   : > { %1249 = vmatprep.mubr.bf16.mxu0 %v4439_v55  ;;  %1676 = vmatmul.mubr.bf16.gmra.mrb[40].mxu1 %v4717_v61 }
  0x82   : > { %1683 = vmatprep.mubr.bf16.mxu1 %v4635_v16 }
  0x88   : > { %1250 = vmatmul.mubr.bf16.gmra.mrb[44].mxu0 %v4705_v17 }
  0x89   : > { %1257 = vmatprep.mubr.bf16.mxu0 %v4480_v11  ;;  %1684 = vmatmul.mubr.bf16.gmra.mrb[44].mxu1 %v4785_v48 }
  0x8a   : > { %1691 = vmatprep.mubr.bf16.mxu1 %v4693_v54 }
  0x90   : > { %1258 = vmatmul.mubr.bf16.gmra.mrb[48].mxu0 %v4709_v19 }
  0x91   : > { %1265 = vmatprep.mubr.bf16.mxu0 %v4499_v21  ;;  %1692 = vmatmul.mubr.bf16.gmra.mrb[48].mxu1 %v4813_v27 }
  0x92   : > { %1699 = vmatprep.mubr.bf16.mxu1 %v4361_v24  ;;  %v4146_v24 = vld [vmem:[%s5327_s3 + $0x180] sm:$0xff]  }
  0x98   : > { %1266 = vmatmul.mubr.bf16.gmra.mrb[52].mxu0 %v4721_v30 }
  0x99   : > { %1273 = vmatprep.mubr.bf16.mxu0 %v4541_v56  ;;  %1700 = vmatmul.mubr.bf16.gmra.mrb[52].mxu1 %v4617_v29 }
  0x9a   : > { %1707 = vmatprep.mubr.bf16.mxu1 %v4380_v32  ;;  %v4147_v32 = vld [vmem:[%s5327_s3 + $0x1c8] sm:$0xff]  }
  0xa0   : > { %1274 = vmatmul.mubr.bf16.gmra.mrb[56].mxu0 %v4739_v39 }
  0xa1   : > { %1281 = vmatprep.mubr.bf16.mxu0 %v4560_v5  ;;  %1708 = vmatmul.mubr.bf16.gmra.mrb[56].mxu1 %v4679_v59 }
  0xa2   : > { %1715 = vmatprep.mubr.bf16.mxu1 %v4422_v46 }
  0xa8   : > { %1282 = vmatmul.mubr.bf16.gmra.mrb[60].mxu0 %v4747_v9 }
  0xa9   : > { %3753 = vmatprep.mubr.bf16.mxu0 %v4751_v23  ;;  %1716 = vmatmul.mubr.bf16.gmra.mrb[60].mxu1 %v4683_v15 }
  0xaa   : > { %1723 = vmatprep.mubr.bf16.mxu1 %v4439_v55 }
  0xb0   : > { %3754 = vmatmul.mubr.bf16.vlgmr.msra.gmra.mrb[64].mxu0 %v4728_v51 }
  0xb1   : > { %3602 = vmatpush3.bf16.msra.mxu0 %v4146_v24  ;;  %3757 = vmatprep.mubr.bf16.mxu0 %v4775_v34  ;;  %v4159_v24 = vld [vmem:[%s5327_s3 + $0x1b0] sm:$0xff]  }
  0xb2   : > { %1724 = vmatmul.mubr.bf16.gmra.mrb[64].mxu1 %v4705_v17  ;;  %3603 = vmatprep.subr.bf16.mxu0 %v4147_v32  ;;  %v4160_v32 = vld [vmem:[%s5327_s3 + $0x1f8] sm:$0xff]  }
  0xb3   : > { %1731 = vmatprep.mubr.bf16.mxu1 %v4480_v11 }
  0xb5   : > { %3604 = vmatpush3.bf16.msra.mxu0 %v4148_v14  ;;  %v4925_v14 = vsel %vm4390_vm5, %v787_v63, 0 }
  0xb6   : > { %3605 = vmatprep.subr.bf16.mxu0 %v4149_v36  ;;  %v4161_v36 = vld [vmem:[%s5327_s3 + $0x1b8] sm:$0xff]  }
  0xb8   : > { %3758 = vmatmul.mubr.bf16.gmra.mrb[68].mxu0 %v4779_v42 }
  0xb9   : > { %3606 = vmatpush3.bf16.msra.mxu0 %v4150_v33  ;;  %3761 = vmatprep.mubr.bf16.mxu0 %v4789_v13 }
  0xba   : > { %1732 = vmatmul.mubr.bf16.gmra.mrb[68].mxu1 %v4709_v19  ;;  %3607 = vmatprep.subr.bf16.mxu0 %v4151_v50 }
  0xbb   : > { %1739 = vmatprep.mubr.bf16.mxu1 %v4499_v21 }
  0xbd   : > { %3608 = vmatpush3.bf16.msra.mxu0 %v4152_v40 }
  0xbe   : > { %3609 = vmatprep.subr.bf16.mxu0 %v4154_v12 }
  0xc0   : > { %3762 = vmatmul.mubr.bf16.gmra.mrb[72].mxu0 %v4795_v60 }
  0xc1   : > { %3610 = vmatpush3.bf16.msra.mxu0 %v4155_v26  ;;  %3765 = vmatprep.mubr.bf16.mxu0 %v4803_v37 }
  0xc2   : > { %1740 = vmatmul.mubr.bf16.gmra.mrb[72].mxu1 %v4721_v30  ;;  %3611 = vmatprep.subr.bf16.mxu0 %v4156_v41 }
  0xc3   : > { %1747 = vmatprep.mubr.bf16.mxu1 %v4541_v56 }
  0xc5   : > { %3612 = vmatpush3.bf16.msra.mxu0 %v4157_v20 }
  0xc6   : > { %3613 = vmatprep.subr.bf16.mxu0 %v4158_v62 }
  0xc8   : > { %3766 = vmatmul.mubr.bf16.gmra.mrb[76].mxu0 %v4817_v58 }
  0xc9   : > { %3614 = vmatpush3.bf16.msra.mxu0 %v4159_v24  ;;  %2161 = vmatprep.mubr.bf16.mxu0 %v4411_v43  ;;  %v4164_v43 = vld [vmem:[%s5327_s3 + $0x210] sm:$0xff]  }
  0xca   : > { %1748 = vmatmul.mubr.bf16.gmra.mrb[76].mxu1 %v4739_v39  ;;  %3615 = vmatprep.subr.bf16.mxu0 %v4160_v32 }
  0xcb   : > { %3801 = vmatprep.mubr.bf16.mxu1 %v4925_v14 }
  0xcd   : > { %3616 = vmatpush3.bf16.msra.mxu0 %v4161_v36 }
  0xd0   : > { %2162 = vmatmul.mubr.bf16.vlgmr.msra.gmra.mrb[80].mxu0 %v4459_v0  ;;  %v4165_v0 = vld [vmem:[%s5327_s3 + $0x218] sm:$0xff]  }
  0xd1   : > { %2169 = vmatprep.mubr.bf16.mxu0 %v4467_v3  ;;  %v4166_v3 = vld [vmem:[%s5327_s3 + $0x220] sm:$0xff]  }
  0xd2   : > { %3802 = vmatmul.mubr.bf16.vlgmr.msra.gmra.mrb[80].mxu1 %v4751_v23 }
  0xd3   : > { %3834 = vmatpush3.bf16.msra.mxu1 %v4829_v31  ;;  %3805 = vmatprep.mubr.bf16.mxu1 %v4728_v51 }
  0xd4   : > { %3835 = vmatprep.subr.bf16.mxu1 %v4163_v35 }
  0xd7   : > { %3836 = vmatpush3.bf16.msra.mxu1 %v4163_v35 }
  0xd8   : > { %2170 = vmatmul.mubr.bf16.gmra.mrb[84].mxu0 %v4522_v45  ;;  %3837 = vmatprep.subr.bf16.mxu1 %v4164_v43  ;;  %v4167_v45 = vld [vmem:[%s5327_s3 + $0x228] sm:$0xff]  }
  0xd9   : > { %2177 = vmatprep.mubr.bf16.mxu0 %v4530_v49  ;;  %v4168_v49 = vld [vmem:[%s5327_s3 + $0x230] sm:$0xff]  }
  0xda   : > { %3806 = vmatmul.mubr.bf16.gmra.mrb[84].mxu1 %v4775_v34 }
  0xdb   : > { %3809 = vmatprep.mubr.bf16.mxu1 %v4779_v42  ;;  %3838 = vmatpush3.bf16.msra.mxu1 %v4164_v43 }
  0xdc   : > { %3839 = vmatprep.subr.bf16.mxu1 %v4165_v0 }
  0xdf   : > { %3840 = vmatpush3.bf16.msra.mxu1 %v4165_v0 }
  0xe0   : > { %2178 = vmatmul.mubr.bf16.gmra.mrb[88].mxu0 %v4585_v47  ;;  %3841 = vmatprep.subr.bf16.mxu1 %v4166_v3  ;;  %v4169_v47 = vld [vmem:[%s5327_s3 + $0x238] sm:$0xff]  }
  0xe1   : > { %2185 = vmatprep.mubr.bf16.mxu0 %v4593_v57 }
  0xe2   : > { %3810 = vmatmul.mubr.bf16.gmra.mrb[88].mxu1 %v4789_v13 }
  0xe3   : > { %3813 = vmatprep.mubr.bf16.mxu1 %v4795_v60  ;;  %3842 = vmatpush3.bf16.msra.mxu1 %v4166_v3 }
  0xe4   : > { %3843 = vmatprep.subr.bf16.mxu1 %v4167_v45 }
  0xe7   : > { %3844 = vmatpush3.bf16.msra.mxu1 %v4167_v45 }
  0xe8   : > { %2186 = vmatmul.mubr.bf16.gmra.mrb[92].mxu0 %v4649_v10  ;;  %3845 = vmatprep.subr.bf16.mxu1 %v4168_v49 }
  0xe9   : > { %2193 = vmatprep.mubr.bf16.mxu0 %v4613_v25  ;;  %v4170_v25 = vld [vmem:[%s4342_s15 + $0x40] sm:$0xff]  }
  0xea   : > { %3814 = vmatmul.mubr.bf16.gmra.mrb[92].mxu1 %v4803_v37 }
  0xeb   : > { %3817 = vmatprep.mubr.bf16.mxu1 %v4817_v58  ;;  %3846 = vmatpush3.bf16.msra.mxu1 %v4168_v49 }
  0xec   : > { %3847 = vmatprep.subr.bf16.mxu1 %v4169_v47 }
  0xef   : > { %3848 = vmatpush3.bf16.msra.mxu1 %v4169_v47 }
  0xf0   : > { %2194 = vmatmul.mubr.bf16.gmra.mrb[96].mxu0 %v4717_v61 }
  0xf1   : > { %2201 = vmatprep.mubr.bf16.mxu0 %v4635_v16 }
  0xf2   : > { %3818 = vmatmul.mubr.bf16.gmra.mrb[0].mxu1 %v4415_v44 }
  0xf3   : > { %3821 = vmatprep.mubr.bf16.mxu1 %v4434_v52 }
  0xf8   : > { %2202 = vmatmul.mubr.bf16.gmra.mrb[100].mxu0 %v4785_v48 }
  0xf9   : > { %2209 = vmatprep.mubr.bf16.mxu0 %v4693_v54  ;;  %v4171_v54 = vld [vmem:[%s4342_s15 + $0x48] sm:$0xff]  }
  0xfa   : > { %3822 = vmatmul.mubr.bf16.gmra.mrb[4].mxu1 %v4474_v8 }
  0xfb   : > { %3825 = vmatprep.mubr.bf16.mxu1 %v4493_v18 }
 0x100   : > { %2210 = vmatmul.mubr.bf16.gmra.mrb[104].mxu0 %v4813_v27 }
 0x101   : > { %2217 = vmatprep.mubr.bf16.mxu0 %v4170_v25 }
 0x102   : > { %3826 = vmatmul.mubr.bf16.gmra.mrb[8].mxu1 %v4535_v53 }
 0x103   : > { %v3345_v10 = vpop.f32.mrb[0].mxu0  ;;  %3829 = vmatprep.mubr.bf16.mxu1 %v4554_v1 }
 0x104   : > { %v3346_v57 = vpop.f32.mrb[1].mxu0 }
 0x105   : > { %v4983_v16 = vadd.f32 %v3346_v57, %v3345_v10  ;;  %v3348_v61 = vpop.f32.mrb[2].mxu0 }
 0x106   : > { %v3349_v23 = vpop.f32.mrb[3].mxu0 }
 0x107   : > { %v4985_v48 = vadd.f32 %v3349_v23, %v3348_v61 }
 0x108   : > { %2218 = vmatmul.mubr.bf16.gmra.mrb[108].mxu0 %v4617_v29 }
 0x109   : > { %2225 = vmatprep.mubr.bf16.mxu0 %v4171_v54 }
 0x10a   : > { %3830 = vmatmul.mubr.bf16.gmra.mrb[12].mxu1 %v4598_v2 }
 0x10b   : > { %v3351_v27 = vpop.f32.mrb[4].mxu0  ;;  %3849 = vmatprep.mubr.bf16.mxu1 %v4728_v51 }
 0x10c   : > { %v3352_v31 = vpop.f32.mrb[5].mxu0 }
 0x10d   : > { %v4991_v33 = vadd.f32 %v3352_v31, %v3351_v27  ;;  %v3354_v50 = vpop.f32.mrb[6].mxu0 }
 0x10e   : > { %v3355_v40 = vpop.f32.mrb[7].mxu0 }
 0x10f   : > { %v4993_v12 = vadd.f32 %v3355_v40, %v3354_v50 }
 0x110   : > { %2226 = vmatmul.mubr.bf16.gmra.mrb[112].mxu0 %v4679_v59 }
 0x111   : > { %2233 = vmatprep.mubr.bf16.mxu0 %v4422_v46 }
 0x112   : > { %3850 = vmatmul.mubr.bf16.vlgmr.msra.gmra.mrb[80].mxu1 %v4775_v34 }
 0x113   : > { %v3357_v29 = vpop.f32.mrb[8].mxu0  ;;  %3853 = vmatprep.mubr.bf16.mxu1 %v4779_v42 }
 0x114   : > { %v3358_v26 = vpop.f32.mrb[9].mxu0 }
 0x115   : > { %v4999_v41 = vadd.f32 %v3358_v26, %v3357_v29  ;;  %v3360_v51 = vpop.f32.mrb[10].mxu0 }
 0x116   : > { %v3361_v38 = vpop.f32.mrb[11].mxu0 }
 0x117   : > { %v5001_v7 = vadd.f32 %v3361_v38, %v3360_v51 }
 0x118   : > { %2234 = vmatmul.mubr.bf16.gmra.mrb[116].mxu0 %v4683_v15 }
 0x119   : > { %2241 = vmatprep.mubr.bf16.mxu0 %v4439_v55 }
 0x11a   : > { %3854 = vmatmul.mubr.bf16.gmra.mrb[84].mxu1 %v4789_v13 }
 0x11b   : > { %v3363_v59 = vpop.f32.mrb[12].mxu0  ;;  %3857 = vmatprep.mubr.bf16.mxu1 %v4795_v60 }
 0x11c   : > { %v3364_v46 = vpop.f32.mrb[13].mxu0 }
 0x11d   : > { %v5007_v34 = vadd.f32 %v3364_v46, %v3363_v59  ;;  %v3366_v42 = vpop.f32.mrb[14].mxu0 }
 0x11e   : > { %v3367_v20 = vpop.f32.mrb[15].mxu0 }
 0x11f   : > { %v5009_v62 = vadd.f32 %v3367_v20, %v3366_v42 }
 0x120   : > { %2242 = vmatmul.mubr.bf16.gmra.mrb[120].mxu0 %v4705_v17 }
 0x121   : > { %2249 = vmatprep.mubr.bf16.mxu0 %v4480_v11 }
 0x122   : > { %3858 = vmatmul.mubr.bf16.gmra.mrb[88].mxu1 %v4803_v37 }
 0x123   : > { %v3369_v15 = vpop.f32.mrb[16].mxu0  ;;  %3861 = vmatprep.mubr.bf16.mxu1 %v4817_v58 }
 0x124   : > { %v3370_v55 = vpop.f32.mrb[17].mxu0  ;;  %v3481_v13 = vpop.f32.mrb[16].mxu1 }
 0x125   : > { %v5015_v22 = vadd.f32 %v3370_v55, %v3369_v15  ;;  %v3372_v60 = vpop.f32.mrb[18].mxu0  ;;  %v3482_v63 = vpop.f32.mrb[17].mxu1 }
 0x126   : > { %v3373_v24 = vpop.f32.mrb[19].mxu0  ;;  %v5017_v32 = vadd.f32 %v3482_v63, %v3481_v13  ;;  %v3484_v36 = vpop.f32.mrb[18].mxu1 }
 0x127   : > { %v5019_v35 = vadd.f32 %v3373_v24, %v3372_v60  ;;  %v3485_v17 = vpop.f32.mrb[19].mxu1 }
 0x128   : > { %2250 = vmatmul.mubr.bf16.gmra.mrb[124].mxu0 %v4709_v19  ;;  %v5022_v11 = vadd.f32 %v3485_v17, %v3484_v36 }
 0x129   : > { %2257 = vmatprep.mubr.bf16.mxu0 %v4499_v21 }
 0x12a   : > { %3862 = vmatmul.mubr.bf16.gmra.mrb[92].mxu1 %v4415_v44 }
 0x12b   : > { %v3375_v37 = vpop.f32.mrb[20].mxu0  ;;  %3865 = vmatprep.mubr.bf16.mxu1 %v4434_v52 }
 0x12c   : > { %v3376_v58 = vpop.f32.mrb[21].mxu0  ;;  %v3487_v43 = vpop.f32.mrb[20].mxu1 }
 0x12d   : > { %v5027_v0 = vadd.f32 %v3376_v58, %v3375_v37  ;;  %v3378_v3 = vpop.f32.mrb[22].mxu0  ;;  %v3488_v45 = vpop.f32.mrb[21].mxu1 }
 0x12e   : > { %v3379_v49 = vpop.f32.mrb[23].mxu0  ;;  %v5029_v47 = vadd.f32 %v3488_v45, %v3487_v43  ;;  %v3490_v25 = vpop.f32.mrb[22].mxu1 }
 0x12f   : > { %v5031_v19 = vadd.f32 %v3379_v49, %v3378_v3  ;;  %v3491_v10 = vpop.f32.mrb[23].mxu1 }
 0x130   : > { %2258 = vmatmul.mubr.bf16.gmra.mrb[128].mxu0 %v4721_v30  ;;  %v5034_v21 = vadd.f32 %v3491_v10, %v3490_v25 }
 0x131   : > { %2265 = vmatprep.mubr.bf16.mxu0 %v4541_v56 }
 0x132   : > { %3866 = vmatmul.mubr.bf16.gmra.mrb[0].mxu1 %v4474_v8 }
 0x133   : > { %v3381_v44 = vpop.f32.mrb[24].mxu0  ;;  %3869 = vmatprep.mubr.bf16.mxu1 %v4493_v18 }
 0x134   : > { %v3382_v52 = vpop.f32.mrb[25].mxu0  ;;  %v3493_v57 = vpop.f32.mrb[24].mxu1 }
 0x135   : > { %v5039_v61 = vadd.f32 %v3382_v52, %v3381_v44  ;;  %v3384_v23 = vpop.f32.mrb[26].mxu0  ;;  %v3494_v54 = vpop.f32.mrb[25].mxu1 }
 0x136   : > { %v3385_v27 = vpop.f32.mrb[27].mxu0  ;;  %v5041_v31 = vadd.f32 %v3494_v54, %v3493_v57  ;;  %v3496_v50 = vpop.f32.mrb[26].mxu1 }
 0x137   : > { %v5043_v30 = vadd.f32 %v3385_v27, %v3384_v23  ;;  %v3497_v40 = vpop.f32.mrb[27].mxu1 }
 0x138   : > { %2266 = vmatmul.mubr.bf16.gmra.mrb[132].mxu0 %v4739_v39  ;;  %v5046_v56 = vadd.f32 %v3497_v40, %v3496_v50 }
 0x139   : > { %2273 = vmatprep.mubr.bf16.mxu0 %v4560_v5 }
 0x13a   : > { %3870 = vmatmul.mubr.bf16.gmra.mrb[4].mxu1 %v4535_v53 }
 0x13b   : > { %v3387_v8 = vpop.f32.mrb[28].mxu0  ;;  %3873 = vmatprep.mubr.bf16.mxu1 %v4554_v1 }
 0x13c   : > { %v3388_v18 = vpop.f32.mrb[29].mxu0  ;;  %v3499_v29 = vpop.f32.mrb[28].mxu1 }
 0x13d   : > { %v5051_v26 = vadd.f32 %v3388_v18, %v3387_v8  ;;  %v3390_v51 = vpop.f32.mrb[30].mxu0  ;;  %v3500_v38 = vpop.f32.mrb[29].mxu1 }
 0x13e   : > { %v3391_v59 = vpop.f32.mrb[31].mxu0  ;;  %v5053_v46 = vadd.f32 %v3500_v38, %v3499_v29  ;;  %v3502_v42 = vpop.f32.mrb[30].mxu1 }
 0x13f   : > { %v5055_v39 = vadd.f32 %v3391_v59, %v3390_v51  ;;  %v3503_v20 = vpop.f32.mrb[31].mxu1 }
 0x140   : > { %2274 = vmatmul.mubr.bf16.gmra.mrb[136].mxu0 %v4747_v9  ;;  %v5058_v5 = vadd.f32 %v3503_v20, %v3502_v42 }
 0x141   : > { %2281 = vmatprep.mubr.bf16.mxu0 %v4470_v6 }
 0x142   : > { %3874 = vmatmul.mubr.bf16.gmra.mrb[8].mxu1 %v4598_v2 }
 0x143   : > { %v3393_v53 = vpop.f32.mrb[32].mxu0  ;;  %3877 = vmatprep.mubr.bf16.mxu1 %v4621_v4 }
 0x144   : > { %v3394_v1 = vpop.f32.mrb[33].mxu0  ;;  %v3505_v15 = vpop.f32.mrb[32].mxu1 }
 0x145   : > { %v3395_v55 = vadd.f32 %v3394_v1, %v3393_v53  ;;  %v3396_v13 = vpop.f32.mrb[34].mxu0  ;;  %v3506_v60 = vpop.f32.mrb[33].mxu1 }
 0x146   : > { %v3397_v63 = vpop.f32.mrb[35].mxu0  ;;  %v5063_v24 = vadd.f32 %v3506_v60, %v3505_v15  ;;  %v3508_v36 = vpop.f32.mrb[34].mxu1 }
 0x147   : > { %v3398_v17 = vadd.f32 %v3397_v63, %v3396_v13  ;;  %v3509_v9 = vpop.f32.mrb[35].mxu1 }
 0x148   : > { %2282 = vmatmul.mubr.bf16.gmra.mrb[140].mxu0 %v4658_v28  ;;  %v5066_v37 = vadd.f32 %v3509_v9, %v3508_v36 }
 0x14a   : > { %3878 = vmatmul.mubr.bf16.gmra.mrb[12].mxu1 %v4925_v14 }
 0x14b   : > { %v3399_v6 = vpop.f32.mrb[36].mxu0 }
 0x14c   : > { %v3400_v2 = vpop.f32.mrb[37].mxu0  ;;  %v3511_v4 = vpop.f32.mrb[36].mxu1 }
 0x14d   : > { %v3401_v58 = vadd.f32 %v3400_v2, %v3399_v6  ;;  %v3402_v43 = vpop.f32.mrb[38].mxu0  ;;  %v3512_v3 = vpop.f32.mrb[37].mxu1 }
 0x14e   : > { %v3403_v45 = vpop.f32.mrb[39].mxu0  ;;  %v5069_v49 = vadd.f32 %v3512_v3, %v3511_v4  ;;  %v3514_v25 = vpop.f32.mrb[38].mxu1 }
 0x14f   : > { %v3404_v10 = vadd.f32 %v3403_v45, %v3402_v43  ;;  %v3515_v44 = vpop.f32.mrb[39].mxu1 }
 0x150   : > { %v5071_v52 = vadd.f32 %v3515_v44, %v3514_v25 }
 0x153   : > { %v3405_v57 = vpop.f32.mrb[40].mxu0 }
 0x154   : > { %v3406_v28 = vpop.f32.mrb[41].mxu0  ;;  %v3517_v23 = vpop.f32.mrb[40].mxu1 }
 0x155   : > { %v3407_v54 = vadd.f32 %v3406_v28, %v3405_v57  ;;  %v3408_v27 = vpop.f32.mrb[42].mxu0  ;;  %v3518_v14 = vpop.f32.mrb[41].mxu1 }
 0x156   : > { %v3409_v50 = vpop.f32.mrb[43].mxu0  ;;  %v5073_v40 = vadd.f32 %v3518_v14, %v3517_v23  ;;  %v3520_v8 = vpop.f32.mrb[42].mxu1 }
 0x157   : > { %v3410_v18 = vadd.f32 %v3409_v50, %v3408_v27  ;;  %v3521_v29 = vpop.f32.mrb[43].mxu1 }
 0x158   : > { %v5075_v51 = vadd.f32 %v3521_v29, %v3520_v8 }
 0x15b   : > { %v3411_v38 = vpop.f32.mrb[44].mxu0 }
 0x15c   : > { %v3412_v59 = vpop.f32.mrb[45].mxu0  ;;  %v3523_v42 = vpop.f32.mrb[44].mxu1 }
 0x15d   : > { %v3413_v20 = vadd.f32 %v3412_v59, %v3411_v38  ;;  %v3414_v53 = vpop.f32.mrb[46].mxu0  ;;  %v3524_v1 = vpop.f32.mrb[45].mxu1 }
 0x15e   : > { %v3415_v15 = vpop.f32.mrb[47].mxu0  ;;  %v5077_v13 = vadd.f32 %v3524_v1, %v3523_v42  ;;  %v3526_v60 = vpop.f32.mrb[46].mxu1 }
 0x15f   : > { %v3416_v63 = vadd.f32 %v3415_v15, %v3414_v53  ;;  %v3527_v36 = vpop.f32.mrb[47].mxu1 }
 0x160   : > { %v5079_v9 = vadd.f32 %v3527_v36, %v3526_v60 }
 0x163   : > { %v3417_v6 = vpop.f32.mrb[48].mxu0 }
 0x164   : > { %v3418_v2 = vpop.f32.mrb[49].mxu0  ;;  %v3529_v4 = vpop.f32.mrb[48].mxu1 }
 0x165   : > { %v5081_v43 = vadd.f32 %v3418_v2, %v3417_v6  ;;  %v3420_v3 = vpop.f32.mrb[50].mxu0  ;;  %v3530_v45 = vpop.f32.mrb[49].mxu1 }
 0x166   : > { %v3421_v25 = vpop.f32.mrb[51].mxu0  ;;  %v3531_v44 = vadd.f32 %v3530_v45, %v3529_v4  ;;  %v3532_v57 = vpop.f32.mrb[50].mxu1 }
 0x167   : > { %v5083_v28 = vadd.f32 %v3421_v25, %v3420_v3  ;;  %v3533_v23 = vpop.f32.mrb[51].mxu1 }
 0x168   : > { %v5085_v27 = vadd.f32 %v3531_v44, %v3395_v55  ;;  %v3534_v14 = vadd.f32 %v3533_v23, %v3532_v57 }
 0x16a   : > { %v5087_v50 = vadd.f32 %v3534_v14, %v3398_v17 }
 0x16b   : > { %v3423_v8 = vpop.f32.mrb[52].mxu0 }
 0x16c   : > { %v3424_v29 = vpop.f32.mrb[53].mxu0  ;;  %v3535_v38 = vpop.f32.mrb[52].mxu1 }
 0x16d   : > { %v5089_v59 = vadd.f32 %v3424_v29, %v3423_v8  ;;  %v3426_v42 = vpop.f32.mrb[54].mxu0  ;;  %v3536_v53 = vpop.f32.mrb[53].mxu1 }
 0x16e   : > { %v3427_v1 = vpop.f32.mrb[55].mxu0  ;;  %v3537_v15 = vadd.f32 %v3536_v53, %v3535_v38  ;;  %v3538_v60 = vpop.f32.mrb[54].mxu1 }
 0x16f   : > { %v5091_v36 = vadd.f32 %v3427_v1, %v3426_v42  ;;  %v3539_v6 = vpop.f32.mrb[55].mxu1 }
 0x170   : > { %v5093_v2 = vadd.f32 %v3537_v15, %v3401_v58  ;;  %v3540_v55 = vadd.f32 %v3539_v6, %v3538_v60 }
 0x172   : > { %v5095_v4 = vadd.f32 %v3540_v55, %v3404_v10 }
 0x173   : > { %v3429_v17 = vpop.f32.mrb[56].mxu0 }
 0x174   : > { %5346 = vst [vmem:[#allocation2_spill] sm:$0xff] %v5095_v4  ;;  %v3430_v3 = vpop.f32.mrb[57].mxu0  ;;  %v3541_v45 = vpop.f32.mrb[56].mxu1 }
 0x175   : > { %v5097_v25 = vadd.f32 %v3430_v3, %v3429_v17  ;;  %v3432_v44 = vpop.f32.mrb[58].mxu0  ;;  %v3542_v57 = vpop.f32.mrb[57].mxu1 }
 0x176   : > { %v3433_v23 = vpop.f32.mrb[59].mxu0  ;;  %v3543_v14 = vadd.f32 %v3542_v57, %v3541_v45  ;;  %v3544_v8 = vpop.f32.mrb[58].mxu1 }
 0x177   : > { %v5099_v29 = vadd.f32 %v3433_v23, %v3432_v44  ;;  %v3545_v38 = vpop.f32.mrb[59].mxu1 }
 0x178   : > { %v5101_v42 = vadd.f32 %v3543_v14, %v3407_v54  ;;  %v3546_v58 = vadd.f32 %v3545_v38, %v3544_v8 }
 0x17a   : > { %v5103_v53 = vadd.f32 %v3546_v58, %v3410_v18 }
 0x17b   : > { %v3435_v10 = vpop.f32.mrb[60].mxu0 }
 0x17c   : > { %v3436_v1 = vpop.f32.mrb[61].mxu0  ;;  %v3547_v15 = vpop.f32.mrb[60].mxu1 }
 0x17d   : > { %v5105_v60 = vadd.f32 %v3436_v1, %v3435_v10  ;;  %v3438_v6 = vpop.f32.mrb[62].mxu0  ;;  %v3548_v55 = vpop.f32.mrb[61].mxu1 }
 0x17e   : > { %v3439_v17 = vpop.f32.mrb[63].mxu0  ;;  %v3549_v3 = vadd.f32 %v3548_v55, %v3547_v15  ;;  %v3550_v4 = vpop.f32.mrb[62].mxu1 }
 0x17f   : > { %v5107_v45 = vadd.f32 %v3439_v17, %v3438_v6  ;;  %v3551_v44 = vpop.f32.mrb[63].mxu1 }
 0x180   : > { %v5109_v57 = vadd.f32 %v3549_v3, %v3413_v20  ;;  %v3552_v54 = vadd.f32 %v3551_v44, %v3550_v4 }
 0x182   : > { %v5111_v23 = vadd.f32 %v3552_v54, %v3416_v63 }
 0x183   : > { %v3755_v18 = vpop.f32.mrb[64].mxu0 }
 0x184   : > { %v1333_v14 = vadd.f32 %v3755_v18, %v4991_v33  ;;  %v1324_v8 = vpop.f32.mrb[65].mxu0 }
 0x185   : > { %v3553_v38 = vpop.f32.mrb[64].mxu1  ;;  %v1325_v58 = vadd.f32 %v4983_v16, %v1324_v8  ;;  %v3756_v10 = vpop.f32.mrb[66].mxu0 }
 0x186   : > { %v5116_v1 = vadd.f32 %v5029_v47, %v1333_v14  ;;  %v3554_v15 = vpop.f32.mrb[65].mxu1  ;;  %v1336_v6 = vadd.f32 %v3756_v10, %v4993_v12  ;;  %v1327_v55 = vpop.f32.mrb[67].mxu0 }
 0x187   : > { %v5120_v20 = vadd.f32 %v5017_v32, %v1325_v58  ;;  %v3555_v63 = vadd.f32 %v3554_v15, %v3553_v38  ;;  %v3556_v4 = vpop.f32.mrb[66].mxu1  ;;  %v1328_v17 = vadd.f32 %v4985_v48, %v1327_v55 }
 0x188   : > { %v5124_v33 = vadd.f32 %v5034_v21, %v1336_v6  ;;  %v3557_v3 = vpop.f32.mrb[67].mxu1 }
 0x189   : > { %v5127_v16 = vadd.f32 %v3555_v63, %v5081_v43  ;;  %v5130_v47 = vadd.f32 %v5022_v11, %v1328_v17  ;;  %v3558_v44 = vadd.f32 %v3557_v3, %v3556_v4 }
 0x18b   : > { %v5133_v12 = vadd.f32 %v3558_v44, %v5083_v28  ;;  %v3759_v32 = vpop.f32.mrb[68].mxu0 }
 0x18c   : > { %v1349_v54 = vadd.f32 %v3759_v32, %v5007_v34  ;;  %v1340_v18 = vpop.f32.mrb[69].mxu0 }
 0x18d   : > { %v3559_v14 = vpop.f32.mrb[68].mxu1  ;;  %v1341_v48 = vadd.f32 %v4999_v41, %v1340_v18  ;;  %v3760_v21 = vpop.f32.mrb[70].mxu0 }
 0x18e   : > { %v5138_v8 = vadd.f32 %v5053_v46, %v1349_v54  ;;  %v3560_v43 = vpop.f32.mrb[69].mxu1  ;;  %v1352_v38 = vadd.f32 %v3760_v21, %v5009_v62  ;;  %v1343_v11 = vpop.f32.mrb[71].mxu0 }
 0x18f   : > { %v5142_v58 = vadd.f32 %v5041_v31, %v1341_v48  ;;  %v3561_v28 = vadd.f32 %v3560_v43, %v3559_v14  ;;  %v3562_v10 = vpop.f32.mrb[70].mxu1  ;;  %v1344_v15 = vadd.f32 %v5001_v7, %v1343_v11 }
 0x190   : > { %v5146_v34 = vadd.f32 %v5058_v5, %v1352_v38  ;;  %v3563_v6 = vpop.f32.mrb[71].mxu1 }
 0x191   : > { %v5149_v41 = vadd.f32 %v3561_v28, %v5089_v59  ;;  %v5152_v46 = vadd.f32 %v5046_v56, %v1344_v15  ;;  %v3564_v55 = vadd.f32 %v3563_v6, %v3562_v10 }
 0x193   : > { %v5155_v62 = vadd.f32 %v3564_v55, %v5091_v36  ;;  %v3763_v31 = vpop.f32.mrb[72].mxu0 }
 0x194   : > { %v1365_v63 = vadd.f32 %v3763_v31, %v5027_v0  ;;  %v1356_v4 = vpop.f32.mrb[73].mxu0 }
 0x195   : > { %v3565_v17 = vpop.f32.mrb[72].mxu1  ;;  %v1357_v7 = vadd.f32 %v5015_v22, %v1356_v4  ;;  %v3764_v5 = vpop.f32.mrb[74].mxu0 }
 0x196   : > { %v5160_v3 = vadd.f32 %v5069_v49, %v1365_v63  ;;  %v3566_v59 = vpop.f32.mrb[73].mxu1  ;;  %v1368_v44 = vadd.f32 %v3764_v5, %v5031_v19  ;;  %v1359_v56 = vpop.f32.mrb[75].mxu0 }
 0x197   : > { %v5164_v32 = vadd.f32 %v5063_v24, %v1357_v7  ;;  %v3567_v36 = vadd.f32 %v3566_v59, %v3565_v17  ;;  %v3568_v54 = vpop.f32.mrb[74].mxu1  ;;  %v1360_v18 = vadd.f32 %v5019_v35, %v1359_v56 }
 0x198   : > { %v5168_v0 = vadd.f32 %v5071_v52, %v1368_v44  ;;  %v3569_v14 = vpop.f32.mrb[75].mxu1 }
 0x199   : > { %v5171_v22 = vadd.f32 %v3567_v36, %v5097_v25  ;;  %v1665_v49 = vadd.f32 %v5066_v37, %v1360_v18  ;;  %v3570_v48 = vadd.f32 %v3569_v14, %v3568_v54 }
 0x19b   : > { %v5175_v19 = vadd.f32 %v3570_v48, %v5099_v29  ;;  %v3767_v21 = vpop.f32.mrb[76].mxu0 }
 0x19c   : > { %v1381_v24 = vadd.f32 %v3767_v21, %v5051_v26  ;;  %v1372_v43 = vpop.f32.mrb[77].mxu0 }
 0x19d   : > { %v3571_v38 = vpop.f32.mrb[76].mxu1  ;;  %v1373_v35 = vadd.f32 %v5039_v61, %v1372_v43  ;;  %v3768_v11 = vpop.f32.mrb[78].mxu0 }
 0x19e   : > { %v5180_v52 = vadd.f32 %v5077_v13, %v1381_v24  ;;  %v3572_v28 = vpop.f32.mrb[77].mxu1  ;;  %v1384_v25 = vadd.f32 %v3768_v11, %v5055_v39  ;;  %v1375_v10 = vpop.f32.mrb[79].mxu0 }
 0x19f   : > { %v5184_v37 = vadd.f32 %v5073_v40, %v1373_v35  ;;  %v3573_v29 = vadd.f32 %v3572_v28, %v3571_v38  ;;  %v3574_v15 = vpop.f32.mrb[78].mxu1  ;;  %v1376_v6 = vadd.f32 %v5043_v30, %v1375_v10 }
 0x1a0   : > { %v5188_v26 = vadd.f32 %v5079_v9, %v1384_v25  ;;  %v3575_v55 = vpop.f32.mrb[79].mxu1 }
 0x1a1   : > { %v5191_v61 = vadd.f32 %v3573_v29, %v5105_v60  ;;  %v1681_v13 = vadd.f32 %v5075_v51, %v1376_v6  ;;  %v3576_v31 = vadd.f32 %v3575_v55, %v3574_v15 }
 0x1a3   : > { %v5195_v39 = vadd.f32 %v3576_v31, %v5107_v45  ;;  %v3617_v63 = vpop.f32.mrb[80].mxu0 }
 0x1a4   : > { %v3618_v40 = vpop.f32.mrb[81].mxu0 }
 0x1a5   : > { %v3619_v4 = vadd.f32 %v3618_v40, %v3617_v63  ;;  %v3620_v17 = vpop.f32.mrb[82].mxu0 }
 0x1a6   : > { %v3621_v7 = vpop.f32.mrb[83].mxu0 }
 0x1a7   : > { %v3622_v5 = vadd.f32 %v3621_v7, %v3620_v17  ;;  %v5198_v30 = vadd.f32 %v3619_v4, %v5120_v20 }
 0x1a9   : > { %v5201_v9 = vadd.f32 %v3622_v5, %v5130_v47 }
 0x1ab   : > { %v3623_v60 = vpop.f32.mrb[84].mxu0 }
 0x1ac   : > { %v3624_v59 = vpop.f32.mrb[85].mxu0 }
 0x1ad   : > { %v3625_v44 = vadd.f32 %v3624_v59, %v3623_v60  ;;  %v3626_v51 = vpop.f32.mrb[86].mxu0 }
 0x1ae   : > { %v3627_v56 = vpop.f32.mrb[87].mxu0 }
 0x1af   : > { %v3628_v36 = vadd.f32 %v3627_v56, %v3626_v51  ;;  %v3899_v45 = vadd.f32 %v3625_v44, %v5116_v1 }
 0x1b1   : > { %v3907_v54 = vadd.f32 %v3628_v36, %v5124_v33 }
 0x1b3   : > { %v3629_v18 = vpop.f32.mrb[88].mxu0 }
 0x1b4   : > { %v3630_v14 = vpop.f32.mrb[89].mxu0 }
 0x1b5   : > { %v3631_v48 = vadd.f32 %v3630_v14, %v3629_v18  ;;  %v3632_v21 = vpop.f32.mrb[90].mxu0 }
 0x1b6   : > { %v3633_v24 = vpop.f32.mrb[91].mxu0 }
 0x1b7   : > { %v3634_v20 = vadd.f32 %v3633_v24, %v3632_v21  ;;  %v5206_v43 = vadd.f32 %v3631_v48, %v5142_v58 }
 0x1b9   : > { %v5209_v47 = vadd.f32 %v3634_v20, %v5152_v46 }
 0x1bb   : > { %v3635_v38 = vpop.f32.mrb[92].mxu0 }
 0x1bc   : > { %v3636_v35 = vpop.f32.mrb[93].mxu0 }
 0x1bd   : > { %v3637_v11 = vadd.f32 %v3636_v35, %v3635_v38  ;;  %v3638_v28 = vpop.f32.mrb[94].mxu0 }
 0x1be   : > { %v3639_v25 = vpop.f32.mrb[95].mxu0 }
 0x1bf   : > { %v3640_v1 = vadd.f32 %v3639_v25, %v3638_v28  ;;  %v5212_v33 = vadd.f32 %v3637_v11, %v5138_v8 }
 0x1c1   : > { %v5215_v10 = vadd.f32 %v3640_v1, %v5146_v34 }
 0x1c3   : > { %v3641_v29 = vpop.f32.mrb[96].mxu0 }
 0x1c4   : > { %v3642_v15 = vpop.f32.mrb[97].mxu0 }
 0x1c5   : > { %v3643_v6 = vadd.f32 %v3642_v15, %v3641_v29  ;;  %v3644_v58 = vpop.f32.mrb[98].mxu0 }
 0x1c6   : > { %v3645_v55 = vpop.f32.mrb[99].mxu0 }
 0x1c7   : > { %v3646_v31 = vadd.f32 %v3645_v55, %v3644_v58  ;;  %v5218_v46 = vadd.f32 %v3643_v6, %v5164_v32 }
 0x1c9   : > { %v5220_v63 = vadd.f32 %v3646_v31, %v1665_v49 }
 0x1cb   : > { %v3647_v40 = vpop.f32.mrb[100].mxu0 }
 0x1cc   : > { %v3648_v4 = vpop.f32.mrb[101].mxu0 }
 0x1cd   : > { %v3649_v17 = vadd.f32 %v3648_v4, %v3647_v40  ;;  %v3650_v7 = vpop.f32.mrb[102].mxu0 }
 0x1ce   : > { %v3651_v8 = vpop.f32.mrb[103].mxu0 }
 0x1cf   : > { %v3652_v5 = vadd.f32 %v3651_v8, %v3650_v7  ;;  %v5223_v34 = vadd.f32 %v3649_v17, %v5160_v3 }
 0x1d1   : > { %v5226_v60 = vadd.f32 %v3652_v5, %v5168_v0 }
 0x1d3   : > { %v3653_v59 = vpop.f32.mrb[104].mxu0 }
 0x1d4   : > { %v3654_v44 = vpop.f32.mrb[105].mxu0 }
 0x1d5   : > { %v3655_v51 = vadd.f32 %v3654_v44, %v3653_v59  ;;  %v3656_v56 = vpop.f32.mrb[106].mxu0 }
 0x1d6   : > { %v3657_v32 = vpop.f32.mrb[107].mxu0 }
 0x1d7   : > { %v3658_v36 = vadd.f32 %v3657_v32, %v3656_v56  ;;  %v5229_v49 = vadd.f32 %v3655_v51, %v5184_v37 }
 0x1d9   : > { %v5231_v18 = vadd.f32 %v3658_v36, %v1681_v13 }
 0x1db   : > { %v3659_v14 = vpop.f32.mrb[108].mxu0 }
 0x1dc   : > { %v3660_v48 = vpop.f32.mrb[109].mxu0 }
 0x1dd   : > { %v3661_v21 = vadd.f32 %v3660_v48, %v3659_v14  ;;  %v3662_v24 = vpop.f32.mrb[110].mxu0 }
 0x1de   : > { %v3663_v3 = vpop.f32.mrb[111].mxu0 }
 0x1df   : > { %v3664_v20 = vadd.f32 %v3663_v3, %v3662_v24  ;;  %v5234_v0 = vadd.f32 %v3661_v21, %v5180_v52 }
 0x1e1   : > { %v5237_v38 = vadd.f32 %v3664_v20, %v5188_v26 }
 0x1e3   : > { %v3665_v35 = vpop.f32.mrb[112].mxu0 }
 0x1e4   : > { %v3666_v11 = vpop.f32.mrb[113].mxu0 }
 0x1e5   : > { %v3851_v28 = vpop.f32.mrb[80].mxu1  ;;  %v3667_v37 = vadd.f32 %v3666_v11, %v3665_v35  ;;  %v3668_v25 = vpop.f32.mrb[114].mxu0 }
 0x1e6   : > { %v3900_v13 = vadd.f32 %v3899_v45, %v3851_v28  ;;  %v2324_v1 = vpop.f32.mrb[81].mxu1  ;;  %v3669_v29 = vpop.f32.mrb[115].mxu0 }
 0x1e7   : > { %v3904_v15 = vadd.f32 %v5198_v30, %v2324_v1  ;;  %v3852_v6 = vpop.f32.mrb[82].mxu1  ;;  %v3670_v58 = vadd.f32 %v3669_v29, %v3668_v25  ;;  %v5241_v55 = vadd.f32 %v5085_v27, %v3667_v37  ;;  %v5347_v1 = vld [vmem:[#allocation2_spill] sm:$0xff] }
 0x1e8   : > { %v3908_v52 = vadd.f32 %v3907_v54, %v3852_v6  ;;  %v2327_v31 = vpop.f32.mrb[83].mxu1  ;;  %v2714_v8 = vmul.f32 %v3900_v13, %v3900_v13 }
 0x1e9   : > { %v3912_v26 = vadd.f32 %v5201_v9, %v2327_v31  ;;  %v5252_v45 = vadd.f32 %v5087_v50, %v3670_v58  ;;  %v2712_v40 = vmul.f32 %v3904_v15, %v3904_v15 }
 0x1ea   : > { %v3242_v30 = vpack.c.bf16 %v3908_v52, %v3900_v13  ;;  %v2715_v32 = vmul.f32 %v3908_v52, %v3908_v52 }
 0x1eb   : > { %v3237_v4 = vpack.c.bf16 %v3912_v26, %v3904_v15  ;;  %v2675_v27 = vadd.f32 %v3912_v26, %v3904_v15  ;;  %v2713_v17 = vmul.f32 %v3912_v26, %v3912_v26  ;;  %v3671_v54 = vpop.f32.mrb[116].mxu0 }
 0x1ec   : > { %3314 = vst [vmem:[%s5248_s16 + $0x8] sm:$0xff] %v3242_v30   ;;  %v3672_v7 = vpop.f32.mrb[117].mxu0 }
 0x1ed   : > { %3238 = vst [vmem:[%s5248_s16] sm:$0xff] %v3237_v4   ;;  %v2676_v5 = vadd.f32 %v3900_v13, %v2675_v27  ;;  %v2744_v59 = vadd.f32 %v2713_v17, %v2712_v40  ;;  %v3855_v44 = vpop.f32.mrb[84].mxu1  ;;  %v3673_v51 = vadd.f32 %v3672_v7, %v3671_v54  ;;  %v3674_v56 = vpop.f32.mrb[118].mxu0 }
 0x1ee   : > { %v3916_v9 = vadd.f32 %v5212_v33, %v3855_v44  ;;  %v2340_v50 = vpop.f32.mrb[85].mxu1  ;;  %v3675_v36 = vpop.f32.mrb[119].mxu0 }
 0x1ef   : > { %v2745_v14 = vadd.f32 %v2744_v59, %v2714_v8  ;;  %v3920_v48 = vadd.f32 %v5206_v43, %v2340_v50  ;;  %v2677_v21 = vadd.f32 %v3908_v52, %v2676_v5  ;;  %v3856_v24 = vpop.f32.mrb[86].mxu1  ;;  %v3676_v3 = vadd.f32 %v3675_v36, %v3674_v56 }
 0x1f0   : > { %v3924_v20 = vadd.f32 %v5215_v10, %v3856_v24  ;;  %v2343_v35 = vpop.f32.mrb[87].mxu1  ;;  %v5260_v11 = vadd.f32 %v5093_v2, %v3673_v51  ;;  %v2718_v31 = vmul.f32 %v3916_v9, %v3916_v9 }
 0x1f1   : > { %v2678_v28 = vadd.f32 %v3920_v48, %v2677_v21  ;;  %v2716_v37 = vmul.f32 %v3920_v48, %v3920_v48  ;;  %v2746_v25 = vadd.f32 %v2745_v14, %v2715_v32  ;;  %v3928_v33 = vadd.f32 %v5209_v47, %v2343_v35 }
 0x1f2   : > { %v3252_v13 = vpack.c.bf16 %v3924_v20, %v3916_v9  ;;  %v5264_v29 = vadd.f32 %v5347_v1, %v3676_v3  ;;  %v2719_v27 = vmul.f32 %v3924_v20, %v3924_v20 }
 0x1f3   : > { %v2747_v43 = vadd.f32 %v2746_v25, %v2716_v37  ;;  %v3247_v15 = vpack.c.bf16 %v3928_v33, %v3920_v48  ;;  %v2679_v6 = vadd.f32 %v3928_v33, %v2678_v28  ;;  %v2717_v58 = vmul.f32 %v3928_v33, %v3928_v33  ;;  %v3677_v52 = vpop.f32.mrb[120].mxu0 }
 0x1f4   : > { %3316 = vst [vmem:[%s5248_s16 + $0x18] sm:$0xff] %v3252_v13   ;;  %v3678_v10 = vpop.f32.mrb[121].mxu0 }
 0x1f5   : > { %3315 = vst [vmem:[%s5248_s16 + $0x10] sm:$0xff] %v3247_v15   ;;  %v2680_v2 = vadd.f32 %v3916_v9, %v2679_v6  ;;  %v2748_v26 = vadd.f32 %v2747_v43, %v2717_v58  ;;  %v3859_v30 = vpop.f32.mrb[88].mxu1  ;;  %v3679_v40 = vadd.f32 %v3678_v10, %v3677_v52  ;;  %v3680_v4 = vpop.f32.mrb[122].mxu0 }
 0x1f6   : > { %v3932_v47 = vadd.f32 %v5223_v34, %v3859_v30  ;;  %v2356_v17 = vpop.f32.mrb[89].mxu1  ;;  %v3681_v54 = vpop.f32.mrb[123].mxu0 }
 0x1f7   : > { %v2749_v7 = vadd.f32 %v2748_v26, %v2718_v31  ;;  %v3936_v8 = vadd.f32 %v5218_v46, %v2356_v17  ;;  %v2681_v5 = vadd.f32 %v3924_v20, %v2680_v2  ;;  %v3860_v59 = vpop.f32.mrb[90].mxu1  ;;  %v3682_v44 = vadd.f32 %v3681_v54, %v3680_v4 }
 0x1f8   : > { %v3940_v51 = vadd.f32 %v5226_v60, %v3860_v59  ;;  %v2359_v56 = vpop.f32.mrb[91].mxu1  ;;  %v5272_v32 = vadd.f32 %v5101_v42, %v3679_v40  ;;  %v2722_v35 = vmul.f32 %v3932_v47, %v3932_v47 }
 0x1f9   : > { %v2682_v9 = vadd.f32 %v3936_v8, %v2681_v5  ;;  %v2720_v50 = vmul.f32 %v3936_v8, %v3936_v8  ;;  %v2750_v36 = vadd.f32 %v2749_v7, %v2719_v27  ;;  %v3944_v34 = vadd.f32 %v5220_v63, %v2359_v56 }
 0x1fa   : > { %v3262_v14 = vpack.c.bf16 %v3940_v51, %v3932_v47  ;;  %v5276_v48 = vadd.f32 %v5103_v53, %v3682_v44  ;;  %v2723_v13 = vmul.f32 %v3940_v51, %v3940_v51 }
 0x1fb   : > { %v2751_v46 = vadd.f32 %v2750_v36, %v2720_v50  ;;  %v3257_v21 = vpack.c.bf16 %v3944_v34, %v3936_v8  ;;  %v2683_v24 = vadd.f32 %v3944_v34, %v2682_v9  ;;  %v2721_v3 = vmul.f32 %v3944_v34, %v3944_v34  ;;  %v3683_v20 = vpop.f32.mrb[124].mxu0 }
 0x1fc   : > { %3318 = vst [vmem:[%s5248_s16 + $0x28] sm:$0xff] %v3262_v14   ;;  %v3684_v60 = vpop.f32.mrb[125].mxu0 }
 0x1fd   : > { %3317 = vst [vmem:[%s5248_s16 + $0x20] sm:$0xff] %v3257_v21   ;;  %v2684_v42 = vadd.f32 %v3932_v47, %v2683_v24  ;;  %v2752_v28 = vadd.f32 %v2751_v46, %v2721_v3  ;;  %v3863_v37 = vpop.f32.mrb[92].mxu1  ;;  %v3685_v25 = vadd.f32 %v3684_v60, %v3683_v20  ;;  %v3686_v33 = vpop.f32.mrb[126].mxu0 }
 0x1fe   : > { %v3948_v63 = vadd.f32 %v5234_v0, %v3863_v37  ;;  %v2372_v1 = vpop.f32.mrb[93].mxu1  ;;  %v3687_v53 = vpop.f32.mrb[127].mxu0 }
 0x1ff   : > { %v2753_v43 = vadd.f32 %v2752_v28, %v2722_v35  ;;  %v3952_v15 = vadd.f32 %v5229_v49, %v2372_v1  ;;  %v2685_v6 = vadd.f32 %v3940_v51, %v2684_v42  ;;  %v3864_v58 = vpop.f32.mrb[94].mxu1  ;;  %v3688_v52 = vadd.f32 %v3687_v53, %v3686_v33 }
 0x200   : > { %v3956_v10 = vadd.f32 %v5237_v38, %v3864_v58  ;;  %v2375_v31 = vpop.f32.mrb[95].mxu1  ;;  %v3974_v2 = vadd.f32 %v5109_v57, %v3685_v25  ;;  %v2726_v38 = vmul.f32 %v3948_v63, %v3948_v63 }
 0x201   : > { %v2686_v26 = vadd.f32 %v3952_v15, %v2685_v6  ;;  %v2724_v30 = vmul.f32 %v3952_v15, %v3952_v15  ;;  %v2754_v40 = vadd.f32 %v2753_v43, %v2723_v13  ;;  %v3960_v0 = vadd.f32 %v5231_v18, %v2375_v31 }
 0x202   : > { %v3272_v4 = vpack.c.bf16 %v3956_v10, %v3948_v63  ;;  %v3980_v27 = vadd.f32 %v5111_v23, %v3688_v52  ;;  %v2727_v56 = vmul.f32 %v3956_v10, %v3956_v10 }
 0x203   : > { %v2755_v47 = vadd.f32 %v2754_v40, %v2724_v30  ;;  %v3267_v49 = vpack.c.bf16 %v3960_v0, %v3952_v15  ;;  %v2687_v17 = vadd.f32 %v3960_v0, %v2686_v26  ;;  %v2725_v54 = vmul.f32 %v3960_v0, %v3960_v0  ;;  %v3689_v7 = vpop.f32.mrb[128].mxu0 }
 0x204   : > { %3320 = vst [vmem:[%s5248_s16 + $0x38] sm:$0xff] %v3272_v4   ;;  %v3690_v8 = vpop.f32.mrb[129].mxu0 }
 0x205   : > { %3319 = vst [vmem:[%s5248_s16 + $0x30] sm:$0xff] %v3267_v49   ;;  %v2688_v5 = vadd.f32 %v3948_v63, %v2687_v17  ;;  %v2756_v59 = vadd.f32 %v2755_v47, %v2725_v54  ;;  %v3867_v57 = vpop.f32.mrb[0].mxu1  ;;  %v3691_v44 = vadd.f32 %v3690_v8, %v3689_v7  ;;  %v3692_v51 = vpop.f32.mrb[130].mxu0 }
 0x206   : > { %v3963_v18 = vadd.f32 %v5260_v11, %v3867_v57  ;;  %v2388_v9 = vpop.f32.mrb[1].mxu1  ;;  %v3693_v50 = vpop.f32.mrb[131].mxu0 }
 0x207   : > { %v2757_v23 = vadd.f32 %v2756_v59, %v2726_v38  ;;  %v3966_v36 = vadd.f32 %v5241_v55, %v2388_v9  ;;  %v2689_v34 = vadd.f32 %v3956_v10, %v2688_v5  ;;  %v3868_v14 = vpop.f32.mrb[2].mxu1  ;;  %v3694_v46 = vadd.f32 %v3693_v50, %v3692_v51 }
 0x208   : > { %v3969_v21 = vadd.f32 %v5264_v29, %v3868_v14  ;;  %v2391_v24 = vpop.f32.mrb[3].mxu1  ;;  %v3989_v3 = vadd.f32 %v5127_v16, %v3691_v44  ;;  %v2730_v29 = vmul.f32 %v3963_v18, %v3963_v18 }
 0x209   : > { %v2690_v20 = vadd.f32 %v3966_v36, %v2689_v34  ;;  %v2728_v60 = vmul.f32 %v3966_v36, %v3966_v36  ;;  %v2758_v35 = vadd.f32 %v2757_v23, %v2727_v56  ;;  %v3972_v11 = vadd.f32 %v5252_v45, %v2391_v24 }
 0x20a   : > { %v3282_v42 = vpack.c.bf16 %v3969_v21, %v3963_v18  ;;  %v3995_v28 = vadd.f32 %v5133_v12, %v3694_v46  ;;  %v2731_v6 = vmul.f32 %v3969_v21, %v3969_v21 }
 0x20b   : > { %v2759_v37 = vadd.f32 %v2758_v35, %v2728_v60  ;;  %v3277_v55 = vpack.c.bf16 %v3972_v11, %v3966_v36  ;;  %v2691_v25 = vadd.f32 %v3972_v11, %v2690_v20  ;;  %v2729_v33 = vmul.f32 %v3972_v11, %v3972_v11  ;;  %v3695_v13 = vpop.f32.mrb[132].mxu0 }
 0x20c   : > { %3322 = vst [vmem:[%s5248_s16 + $0x48] sm:$0xff] %v3282_v42   ;;  %v3696_v63 = vpop.f32.mrb[133].mxu0 }
 0x20d   : > { %3321 = vst [vmem:[%s5248_s16 + $0x40] sm:$0xff] %v3277_v55   ;;  %v2692_v1 = vadd.f32 %v3963_v18, %v2691_v25  ;;  %v2760_v53 = vadd.f32 %v2759_v37, %v2729_v33  ;;  %v3871_v16 = vpop.f32.mrb[4].mxu1  ;;  %v3697_v43 = vadd.f32 %v3696_v63, %v3695_v13  ;;  %v3698_v15 = vpop.f32.mrb[134].mxu0 }
 0x20e   : > { %v3975_v58 = vadd.f32 %v3974_v2, %v3871_v16  ;;  %v2404_v45 = vpop.f32.mrb[5].mxu1  ;;  %v3699_v52 = vpop.f32.mrb[135].mxu0 }
 0x20f   : > { %v2761_v10 = vadd.f32 %v2760_v53, %v2730_v29  ;;  %v3978_v12 = vadd.f32 %v5272_v32, %v2404_v45  ;;  %v2693_v31 = vadd.f32 %v3969_v21, %v2692_v1  ;;  %v3872_v26 = vpop.f32.mrb[6].mxu1  ;;  %v3700_v30 = vadd.f32 %v3699_v52, %v3698_v15 }
 0x210   : > { %v3981_v40 = vadd.f32 %v3980_v27, %v3872_v26  ;;  %v2407_v0 = vpop.f32.mrb[7].mxu1  ;;  %v3986_v4 = vadd.f32 %v5149_v41, %v3697_v43  ;;  %v2734_v27 = vmul.f32 %v3975_v58, %v3975_v58 }
 0x211   : > { %v2694_v47 = vadd.f32 %v3978_v12, %v2693_v31  ;;  %v2732_v49 = vmul.f32 %v3978_v12, %v3978_v12  ;;  %v2762_v17 = vadd.f32 %v2761_v10, %v2731_v6  ;;  %v3984_v54 = vadd.f32 %v5276_v48, %v2407_v0 }
 0x212   : > { %v3292_v2 = vpack.c.bf16 %v3981_v40, %v3975_v58  ;;  %v3992_v7 = vadd.f32 %v5155_v62, %v3700_v30  ;;  %v2735_v9 = vmul.f32 %v3981_v40, %v3981_v40 }
 0x213   : > { %v2763_v8 = vadd.f32 %v2762_v17, %v2732_v49  ;;  %v3287_v38 = vpack.c.bf16 %v3984_v54, %v3978_v12  ;;  %v2695_v32 = vadd.f32 %v3984_v54, %v2694_v47  ;;  %v2733_v5 = vmul.f32 %v3984_v54, %v3984_v54  ;;  %v3701_v59 = vpop.f32.mrb[136].mxu0 }
 0x214   : > { %3324 = vst [vmem:[%s5248_s16 + $0x58] sm:$0xff] %v3292_v2   ;;  %v3702_v57 = vpop.f32.mrb[137].mxu0 }
 0x215   : > { %3323 = vst [vmem:[%s5248_s16 + $0x50] sm:$0xff] %v3287_v38   ;;  %v2696_v44 = vadd.f32 %v3975_v58, %v2695_v32  ;;  %v2764_v51 = vadd.f32 %v2763_v8, %v2733_v5  ;;  %v3875_v41 = vpop.f32.mrb[8].mxu1  ;;  %v3703_v56 = vadd.f32 %v3702_v57, %v3701_v59  ;;  %v3704_v18 = vpop.f32.mrb[138].mxu0 }
 0x216   : > { %v3987_v50 = vadd.f32 %v3986_v4, %v3875_v41  ;;  %v2420_v48 = vpop.f32.mrb[9].mxu1  ;;  %v3705_v23 = vpop.f32.mrb[139].mxu0 }
 0x217   : > { %v2765_v36 = vadd.f32 %v2764_v51, %v2734_v27  ;;  %v3990_v62 = vadd.f32 %v3989_v3, %v2420_v48  ;;  %v2697_v34 = vadd.f32 %v3981_v40, %v2696_v44  ;;  %v3876_v14 = vpop.f32.mrb[10].mxu1  ;;  %v3706_v46 = vadd.f32 %v3705_v23, %v3704_v18 }
 0x218   : > { %v3993_v21 = vadd.f32 %v3992_v7, %v3876_v14  ;;  %v2423_v24 = vpop.f32.mrb[11].mxu1  ;;  %v4001_v20 = vadd.f32 %v5171_v22, %v3703_v56  ;;  %v2738_v1 = vmul.f32 %v3987_v50, %v3987_v50 }
 0x219   : > { %v2698_v60 = vadd.f32 %v3990_v62, %v2697_v34  ;;  %v2736_v35 = vmul.f32 %v3990_v62, %v3990_v62  ;;  %v2766_v11 = vadd.f32 %v2765_v36, %v2735_v9  ;;  %v3996_v42 = vadd.f32 %v3995_v28, %v2423_v24 }
 0x21a   : > { %v3302_v37 = vpack.c.bf16 %v3993_v21, %v3987_v50  ;;  %v4007_v55 = vadd.f32 %v5175_v19, %v3706_v46  ;;  %v2739_v6 = vmul.f32 %v3993_v21, %v3993_v21 }
 0x21b   : > { %v2767_v25 = vadd.f32 %v2766_v11, %v2736_v35  ;;  %v3297_v33 = vpack.c.bf16 %v3996_v42, %v3990_v62  ;;  %v2699_v13 = vadd.f32 %v3996_v42, %v2698_v60  ;;  %v2737_v3 = vmul.f32 %v3996_v42, %v3996_v42  ;;  %v3707_v63 = vpop.f32.mrb[140].mxu0 }
 0x21c   : > { %3326 = vst [vmem:[%s5248_s16 + $0x68] sm:$0xff] %v3302_v37   ;;  %v3708_v29 = vpop.f32.mrb[141].mxu0 }
 0x21d   : > { %3325 = vst [vmem:[%s5248_s16 + $0x60] sm:$0xff] %v3297_v33   ;;  %v2700_v53 = vadd.f32 %v3987_v50, %v2699_v13  ;;  %v2768_v16 = vadd.f32 %v2767_v25, %v2737_v3  ;;  %v3879_v43 = vpop.f32.mrb[12].mxu1  ;;  %v3709_v22 = vadd.f32 %v3708_v29, %v3707_v63  ;;  %v3710_v15 = vpop.f32.mrb[142].mxu0 }
 0x21e   : > { %v2436_v58 = vpop.f32.mrb[13].mxu1  ;;  %v3711_v28 = vpop.f32.mrb[143].mxu0 }
 0x21f   : > { %v2769_v45 = vadd.f32 %v2768_v16, %v2738_v1  ;;  %v3998_v19 = vadd.f32 %v5191_v61, %v3709_v22  ;;  %v4002_v52 = vadd.f32 %v4001_v20, %v2436_v58  ;;  %v2701_v10 = vadd.f32 %v3993_v21, %v2700_v53  ;;  %v3880_v12 = vpop.f32.mrb[14].mxu1 }
 0x220   : > { %v3712_v31 = vadd.f32 %v3711_v28, %v3710_v15  ;;  %v2439_v26 = vpop.f32.mrb[15].mxu1 }
 0x221   : > { %v3999_v30 = vadd.f32 %v3998_v19, %v3879_v43  ;;  %v2702_v40 = vadd.f32 %v4002_v52, %v2701_v10  ;;  %v2740_v0 = vmul.f32 %v4002_v52, %v4002_v52  ;;  %v2770_v4 = vadd.f32 %v2769_v45, %v2739_v6 }
 0x222   : > { %v4004_v47 = vadd.f32 %v5195_v39, %v3712_v31  ;;  %v4008_v49 = vadd.f32 %v4007_v55, %v2439_v26 }
 0x223   : > { %v2742_v17 = vmul.f32 %v3999_v30, %v3999_v30  ;;  %v2771_v54 = vadd.f32 %v2770_v4, %v2740_v0 }
 0x224   : > { %v4005_v2 = vadd.f32 %v4004_v47, %v3880_v12  ;;  %v3307_v7 = vpack.c.bf16 %v4008_v49, %v4002_v52  ;;  %v2703_v8 = vadd.f32 %v4008_v49, %v2702_v40  ;;  %v2741_v61 = vmul.f32 %v4008_v49, %v4008_v49 }
 0x226   : > { %v3312_v38 = vpack.c.bf16 %v4005_v2, %v3999_v30  ;;  %v2743_v32 = vmul.f32 %v4005_v2, %v4005_v2  ;;  %3327 = vst [vmem:[%s5248_s16 + $0x70] sm:$0xff] %v3307_v7   ;;  %v2704_v5 = vadd.f32 %v3999_v30, %v2703_v8  ;;  %v2772_v59 = vadd.f32 %v2771_v54, %v2741_v61 }
 0x228   : > { %3328 = vst [vmem:[%s5248_s16 + $0x78] sm:$0xff] %v3312_v38   ;;  %v2705_v57 = vadd.f32 %v4005_v2, %v2704_v5  ;;  %v2773_v27 = vadd.f32 %v2772_v59, %v2742_v17 }
 0x22a   : > { %v2706_v44 = vrot.slane %v2705_v57, 4  ;;  %v2774_v51 = vadd.f32 %v2773_v27, %v2743_v32 }
 0x22c   : > { %v2707_v41 = vadd.f32 %v2706_v44, %v2705_v57  ;;  %v2775_v39 = vrot.slane %v2774_v51, 4 }
 0x22e   : > { %v2708_v56 = vrot.slane %v2707_v41, 2  ;;  %v2776_v18 = vadd.f32 %v2775_v39, %v2774_v51 }
 0x230   : > { %v2709_v9 = vadd.f32 %v2708_v56, %v2707_v41  ;;  %v2777_v50 = vrot.slane %v2776_v18, 2 }
 0x232   : > { %v2710_v48 = vrot.slane %v2709_v9, 1  ;;  %v2778_v23 = vadd.f32 %v2777_v50, %v2776_v18 }
 0x234   : > { %v2779_v36 = vrot.slane %v2778_v23, 1  ;;  %v2711_v62 = vadd.f32 %v2710_v48, %v2709_v9 }
 0x236   : > { %v2780_v34 = vadd.f32 %v2779_v36, %v2778_v23 }
 0x238   : > { %v2782_v14 = vsel %vm767_vm1, %v2711_v62, %v2780_v34 }
 0x239   : > { %2783 = vst [vmem:[%s411_s21] sm:$0x3] %v2782_v14 }
 0x23a PF: > { %s16_s20 = sadd.s32 1, %s4194_s20   ;;  %s5348_s18 = smov %s4190_s19 }
 0x23b   : > { %p13_p5 = scmp.ge.s32.totalorder %s16_s20, 4   ;;  %s5349_s19 = smov %s5351_s1 }
 0x23d   :  { %15 = sbr.rel (!%p13_p5) target bundleno = 2 (0x2), region = 86 }

</bundles_post_ra>
